<compile_context>
chip_gen: v7x
topology: tpu7x:2x2x1
jax: 0.10.0
libtpu: 0.0.40
codegen_flags: <defaults>
</compile_context>

<pallas_src>
import functools

import jax
import jax.numpy as jnp
import numpy as np
from jax.experimental import pallas as pl
from jax.experimental.pallas import tpu as pltpu


def _round_up(x, m):
    return (x + m - 1) // m * m


# ----------------------------------------------------------------------------
# Kernel: fused 3x3 stride-2 conv + BatchNorm(eval) + ReLU (+ optional global
# average pool).  One grid step == one image.
# ----------------------------------------------------------------------------
def _conv_bn_relu_kernel(xs_ref, w_ref, b_ref, o_ref, *, Ho, Wo, Wop, pool):
    S = Ho * Wop
    Cout = w_ref.shape[2]
    acc = jnp.zeros((S, Cout), jnp.float32)
    for kh in range(3):
        for kw in range(3):
            p, a = kh % 2, kh // 2
            # contiguous, even-offset row slice of the (p, kw) tap slab
            patch = xs_ref[3 * p + kw, a * Wop:a * Wop + S, :]     # (S, Cin) bf16
            acc = acc + jnp.dot(patch, w_ref[3 * kh + kw],
                                preferred_element_type=jnp.float32)
    y = jnp.maximum(acc + b_ref[...], 0.0)                         # BN folded into w/b
    if pool:
        col = jax.lax.broadcasted_iota(jnp.int32, (S, 1), 0) % Wop
        valid = (col < Wo).astype(jnp.float32)
        o_ref[...] = (jnp.sum(y * valid, axis=0, keepdims=True)
                      * (1.0 / float(Ho * Wo))).astype(o_ref.dtype)
    else:
        o_ref[...] = y.astype(o_ref.dtype)


def conv_bn_relu_s2(x, p, *, pool=False):
    """x: (N, H, W, Cin) NHWC bf16.  Returns (N, Ho, Wo, Cout) bf16, or (N, Cout) f32 if pool."""
    N, H, W, Cin = x.shape
    Cout = p["w"].shape[0]
    Ho = (H - 3) // 2 + 1
    Wo = (W - 3) // 2 + 1
    Hr = Ho + 1                        # rows needed by taps kh in {0, 2}
    Wop = Wo + (Wo % 2)                # even width -> aligned bf16 slab offsets
    S = Ho * Wop

    # Fold BatchNorm (eval mode, running stats) into conv weight & bias.
    scale = p["gamma"] / jnp.sqrt(p["var"] + 1e-5)
    bias = (p["beta"] + (p["b"] - p["mean"]) * scale).astype(jnp.float32).reshape(1, Cout)
    wt = (jnp.transpose(p["w"], (2, 3, 1, 0)).reshape(9, Cin, Cout)
          * scale).astype(jnp.bfloat16)                            # tap index = 3*kh + kw

    # Six tap slabs: (row parity) x (column tap), spatially flattened.  Extra
    # zero-padded rows/columns only ever land in "junk" output rows that are
    # masked (pool) or sliced off below.
    slabs = []
    for pp in (0, 1):
        for kw in (0, 1, 2):
            sl = x[:, pp:pp + 2 * Hr:2, kw:kw + 2 * Wo:2, :]
            sl = jnp.pad(sl, ((0, 0), (0, Hr - sl.shape[1]),
                              (0, Wop - sl.shape[2]), (0, 0)))
            slabs.append(sl.reshape(N, Hr * Wop, Cin))
    xs = jnp.stack(slabs, axis=1)                                  # (N, 6, Hr*Wop, Cin) bf16

    if pool:
        out_shape = jax.ShapeDtypeStruct((N, 1, Cout), jnp.float32)
        out_spec = pl.BlockSpec((None, 1, Cout), lambda n: (n, 0, 0))
    else:
        out_shape = jax.ShapeDtypeStruct((N, S, Cout), jnp.bfloat16)
        out_spec = pl.BlockSpec((None, S, Cout), lambda n: (n, 0, 0))

    out = pl.pallas_call(
        functools.partial(_conv_bn_relu_kernel, Ho=Ho, Wo=Wo, Wop=Wop, pool=pool),
        out_shape=out_shape,
        grid=(N,),
        in_specs=[
            pl.BlockSpec((None, 6, Hr * Wop, Cin), lambda n: (n, 0, 0, 0)),
            pl.BlockSpec((9, Cin, Cout), lambda n: (0, 0, 0)),
            pl.BlockSpec((1, Cout), lambda n: (0, 0)),
        ],
        out_specs=out_spec,
        compiler_params=pltpu.CompilerParams(dimension_semantics=("parallel",)),
    )(xs, wt, bias)

    if pool:
        return out.reshape(N, Cout)
    # Drop the (<=1) even-padding junk column; this lazy slice fuses into the
    # next layer's slab slicing under jit (no extra HBM copy).
    return out.reshape(N, Ho, Wop, Cout)[:, :, :Wo, :]


# ----------------------------------------------------------------------------
# Kernel: fused matmul + bias (+ optional ReLU) -- used for the hoisted LSTM
# input projection (bf16 operands, f32 accumulate).
# ----------------------------------------------------------------------------
def _mm_bias_kernel(a_ref, w_ref, b_ref, o_ref, *, relu):
    y = jnp.dot(a_ref[...], w_ref[...], preferred_element_type=jnp.float32) + b_ref[...]
    if relu:
        y = jnp.maximum(y, 0.0)
    o_ref[...] = y.astype(o_ref.dtype)


def matmul_bias(a, w, bias, *, relu=False, out_dtype=jnp.float32, tm=512):
    """a: (M, K), w: (K, N) with N a multiple of 128, bias: (1, N)."""
    M, K = a.shape
    _, N = w.shape
    Mp = _round_up(M, 8)
    tm_eff = min(tm, Mp)
    Mp = _round_up(Mp, tm_eff)
    a_p = a if Mp == M else jnp.pad(a, ((0, Mp - M), (0, 0)))
    out = pl.pallas_call(
        functools.partial(_mm_bias_kernel, relu=relu),
        out_shape=jax.ShapeDtypeStruct((Mp, N), out_dtype),
        grid=(Mp // tm_eff,),
        in_specs=[
            pl.BlockSpec((tm_eff, K), lambda i: (i, 0)),
            pl.BlockSpec((K, N), lambda i: (0, 0)),
            pl.BlockSpec((1, N), lambda i: (0, 0)),
        ],
        out_specs=pl.BlockSpec((tm_eff, N), lambda i: (i, 0)),
        compiler_params=pltpu.CompilerParams(dimension_semantics=("parallel",)),
    )(a_p, w, bias)
    return out if Mp == M else out[:M]


# ----------------------------------------------------------------------------
# Kernel: LSTM recurrence (one time step per sequential grid iteration) with
# the hidden2tag Linear fused into the epilogue.  Gates occupy 128-lane-aligned
# slabs (Hp = round_up(H, 128)); the per-step store is lane-dense (Bp, Np).
# ----------------------------------------------------------------------------
def _lstm_fc_kernel(gx_ref, whh_ref, wfc_ref, bfc_ref, tag_ref, h_sc, c_sc, *, hp):
    t = pl.program_id(0)

    @pl.when(t == 0)
    def _():
        h_sc[...] = jnp.zeros_like(h_sc)
        c_sc[...] = jnp.zeros_like(c_sc)

    gates = gx_ref[...] + jnp.dot(h_sc[...], whh_ref[...],
                                  preferred_element_type=jnp.float32)
    i_g = jax.nn.sigmoid(gates[:, 0 * hp:1 * hp])
    f_g = jax.nn.sigmoid(gates[:, 1 * hp:2 * hp])
    g_g = jnp.tanh(gates[:, 2 * hp:3 * hp])
    o_g = jax.nn.sigmoid(gates[:, 3 * hp:4 * hp])
    c_new = f_g * c_sc[...] + i_g * g_g
    h_new = o_g * jnp.tanh(c_new)
    c_sc[...] = c_new
    h_sc[...] = h_new
    # hidden2tag fused into the recurrence epilogue (dropout = identity, eval)
    tag_ref[...] = (jnp.dot(h_new, wfc_ref[...], preferred_element_type=jnp.float32)
                    + bfc_ref[...])


def lstm_fc_pallas(gx, whh, wfc, bfc):
    """gx: (T, Bp, 4*Hp) f32 precomputed x-gates; returns (T, Bp, Np) f32 tag scores."""
    T, Bp, G = gx.shape
    Hp = G // 4
    Np = wfc.shape[1]
    return pl.pallas_call(
        functools.partial(_lstm_fc_kernel, hp=Hp),
        out_shape=jax.ShapeDtypeStruct((T, Bp, Np), jnp.float32),
        grid=(T,),
        in_specs=[
            pl.BlockSpec((None, Bp, G), lambda t: (t, 0, 0)),
            pl.BlockSpec((Hp, G), lambda t: (0, 0)),
            pl.BlockSpec((Hp, Np), lambda t: (0, 0)),
            pl.BlockSpec((1, Np), lambda t: (0, 0)),
        ],
        out_specs=pl.BlockSpec((None, Bp, Np), lambda t: (t, 0, 0)),
        scratch_shapes=[pltpu.VMEM((Bp, Hp), jnp.float32),
                        pltpu.VMEM((Bp, Hp), jnp.float32)],
        compiler_params=pltpu.CompilerParams(dimension_semantics=("arbitrary",)),
    )(gx, whh, wfc, bfc)


# ----------------------------------------------------------------------------
# Full CNN_LSTM forward
# ----------------------------------------------------------------------------
def cnn_lstm_forward(x, params):
    """x: (b, seq, C, H, W) float -> tag_score: (b, seq, nclass)."""
    x = x.astype(jnp.float32)                                   # mirrors x.float()
    b, seq, c, h, w = x.shape
    N = b * seq
    xN = jnp.transpose(x.reshape(N, c, h, w), (0, 2, 3, 1)).astype(jnp.bfloat16)

    # CnnModule: three stride-2 conv+BN+ReLU; avg-pool fused into conv3 kernel.
    y = conv_bn_relu_s2(xN, params["conv1"])
    y = conv_bn_relu_s2(y, params["conv2"])
    feat = conv_bn_relu_s2(y, params["conv3"], pool=True)       # (N, C) f32

    # --- LSTM (batch_first) + hidden2tag ---
    lstm = params["lstm"]
    Hd = lstm["w_hh"].shape[1]
    Cf = lstm["w_ih"].shape[1]
    nclass = params["fc"]["w"].shape[0]
    Hp = _round_up(Hd, 128)                                     # per-gate lane-aligned slab
    Np = _round_up(nclass, 128)                                 # lane-dense tag output
    Bp = _round_up(b, 8)

    # Gate-major, lane-padded weight layouts (PyTorch gate order i, f, g, o).
    w_ih4 = jnp.transpose(lstm["w_ih"].reshape(4, Hd, Cf), (2, 0, 1))        # (C, 4, H)
    w_ihx = jnp.pad(w_ih4, ((0, 0), (0, 0), (0, Hp - Hd))).reshape(Cf, 4 * Hp)
    w_hh4 = jnp.transpose(lstm["w_hh"].reshape(4, Hd, Hd), (2, 0, 1))        # (Hin, 4, Hout)
    whh = jnp.pad(w_hh4, ((0, Hp - Hd), (0, 0), (0, Hp - Hd))).reshape(Hp, 4 * Hp)
    bias4 = jnp.pad((lstm["b_ih"] + lstm["b_hh"]).reshape(4, Hd),
                    ((0, 0), (0, Hp - Hd))).reshape(1, 4 * Hp)
    wfc = jnp.pad(jnp.transpose(params["fc"]["w"]), ((0, Hp - Hd), (0, Np - nclass)))
    bfc = jnp.pad(params["fc"]["b"], (0, Np - nclass)).reshape(1, Np)

    # Hoisted input projection: one MXU-efficient bf16 matmul over all T*Bp rows.
    x_seq = jnp.transpose(feat.reshape(b, seq, Cf), (1, 0, 2))               # (T, b, C)
    x_seq = jnp.pad(x_seq, ((0, 0), (0, Bp - b), (0, 0)))
    gx = matmul_bias(x_seq.reshape(seq * Bp, Cf).astype(jnp.bfloat16),
                     w_ihx.astype(jnp.bfloat16),
                     bias4.astype(jnp.float32))                              # (T*Bp, 4Hp) f32
    gx = gx.reshape(seq, Bp, 4 * Hp)

    # Dropout(p=0.2) is identity in eval mode; recurrence + fc fused below.
    tag = lstm_fc_pallas(gx, whh.astype(jnp.float32),
                         wfc.astype(jnp.float32), bfc.astype(jnp.float32))   # (T, Bp, Np)
    return jnp.transpose(tag[:, :b, :nclass], (1, 0, 2))                     # (b, seq, nclass)


# ----------------------------------------------------------------------------
# Deterministic parameter construction
# ----------------------------------------------------------------------------
def _conv_bn_params(key, cin, cout):
    ks = jax.random.split(key, 6)
    bound = 1.0 / np.sqrt(cin * 9)
    return {
        "w": jax.random.uniform(ks[0], (cout, cin, 3, 3), jnp.float32, -bound, bound),
        "b": jax.random.uniform(ks[1], (cout,), jnp.float32, -bound, bound),
        "gamma": jax.random.uniform(ks[2], (cout,), jnp.float32, 0.5, 1.5),
        "beta": 0.1 * jax.random.normal(ks[3], (cout,), jnp.float32),
        "mean": 0.1 * jax.random.normal(ks[4], (cout,), jnp.float32),
        "var": jax.random.uniform(ks[5], (cout,), jnp.float32, 0.5, 1.5),
    }


def make_params(key, cin, hidden, nclass):
    keys = jax.random.split(key, 6)
    lb = 1.0 / np.sqrt(hidden)
    lk = jax.random.split(keys[3], 4)
    fb = 1.0 / np.sqrt(hidden)
    fk = jax.random.split(keys[4], 2)
    return {
        "conv1": _conv_bn_params(keys[0], cin, cin),
        "conv2": _conv_bn_params(keys[1], cin, cin),
        "conv3": _conv_bn_params(keys[2], cin, cin),
        "lstm": {
            "w_ih": jax.random.uniform(lk[0], (4 * hidden, cin), jnp.float32, -lb, lb),
            "w_hh": jax.random.uniform(lk[1], (4 * hidden, hidden), jnp.float32, -lb, lb),
            "b_ih": jax.random.uniform(lk[2], (4 * hidden,), jnp.float32, -lb, lb),
            "b_hh": jax.random.uniform(lk[3], (4 * hidden,), jnp.float32, -lb, lb),
        },
        "fc": {
            "w": jax.random.uniform(fk[0], (nclass, hidden), jnp.float32, -fb, fb),
            "b": jax.random.uniform(fk[1], (nclass,), jnp.float32, -fb, fb),
        },
    }


if __name__ == "__main__":
    # Small config consistent with the module: channels=16 (stands in for 256),
    # spatial 24x24 (stands in for 30x40), seq=4, batch=2, hidden=32, nclass=5.
    B, SEQ, C, H, W = 2, 4, 16, 24, 24
    HIDDEN, NCLASS = 32, 5

    key = jax.random.PRNGKey(0)
    kx, kp = jax.random.split(key)
    x = jax.random.normal(kx, (B, SEQ, C, H, W), jnp.float32)
    params = make_params(kp, C, HIDDEN, NCLASS)

    fwd = jax.jit(cnn_lstm_forward)
    out = jax.block_until_ready(fwd(x, params))

    assert out.shape == (B, SEQ, NCLASS), out.shape
    assert bool(jnp.isfinite(out).all())
    print("KERNEL_OK")
</pallas_src>

<mosaic_0001>
module attributes {stable_mosaic.version = 11 : i64} {
  func.func @_conv_bn_relu_kernel(%arg0: i32, %arg1: memref<1x6x144x16xbf16, #tpu.memory_space<vmem>>, %arg2: memref<9x16x16xbf16, #tpu.memory_space<vmem>>, %arg3: memref<1x16xf32, #tpu.memory_space<vmem>>, %arg4: memref<1x132x16xbf16, #tpu.memory_space<vmem>>) attributes {dimension_semantics = [#tpu.dimension_semantics<parallel>], iteration_bounds = array<i64: 8>, scalar_prefetch = 0 : i64, scratch_operands = 0 : i64, tpu.core_type = #tpu.core_type<tc>, window_params = [{transform_indices = @transform_0, window_bounds = array<i64: 1, 6, 144, 16>}, {pipeline_mode = #tpu.pipeline_mode<synchronous>, transform_indices = @transform_1, window_bounds = array<i64: 9, 16, 16>}, {pipeline_mode = #tpu.pipeline_mode<synchronous>, transform_indices = @transform_2, window_bounds = array<i64: 1, 16>}, {transform_indices = @transform_3, window_bounds = array<i64: 1, 132, 16>}]} {
    %cst = arith.constant 0.000000e+00 : f32
    %0 = vector.broadcast %cst : f32 to vector<132x16xf32>
    %c0 = arith.constant 0 : index
    %c0_0 = arith.constant 0 : index
    %c0_1 = arith.constant 0 : index
    %c0_2 = arith.constant 0 : index
    %1 = vector.load %arg1[%c0, %c0_0, %c0_1, %c0_2] : memref<1x6x144x16xbf16, #tpu.memory_space<vmem>>, vector<1x1x132x16xbf16>
    %2 = vector.shape_cast %1 : vector<1x1x132x16xbf16> to vector<132x16xbf16>
    %c0_3 = arith.constant 0 : index
    %c0_4 = arith.constant 0 : index
    %c0_5 = arith.constant 0 : index
    %3 = vector.load %arg2[%c0_3, %c0_4, %c0_5] : memref<9x16x16xbf16, #tpu.memory_space<vmem>>, vector<1x16x16xbf16>
    %4 = vector.shape_cast %3 : vector<1x16x16xbf16> to vector<16x16xbf16>
    %cst_6 = arith.constant dense<0.000000e+00> : vector<132x16xf32>
    %5 = tpu.matmul %2, %4, %cst_6 {dimension_numbers = #tpu.dot_dimension_numbers<[1], [0], [0], [1], [0, 0, 1, 1], [], []>} : vector<132x16xbf16>, vector<16x16xbf16>, vector<132x16xf32> -> vector<132x16xf32>
    %6 = arith.addf %0, %5 : vector<132x16xf32>
    %c0_7 = arith.constant 0 : index
    %c1 = arith.constant 1 : index
    %c0_8 = arith.constant 0 : index
    %c0_9 = arith.constant 0 : index
    %7 = vector.load %arg1[%c0_7, %c1, %c0_8, %c0_9] : memref<1x6x144x16xbf16, #tpu.memory_space<vmem>>, vector<1x1x132x16xbf16>
    %8 = vector.shape_cast %7 : vector<1x1x132x16xbf16> to vector<132x16xbf16>
    %c1_10 = arith.constant 1 : index
    %c0_11 = arith.constant 0 : index
    %c0_12 = arith.constant 0 : index
    %9 = vector.load %arg2[%c1_10, %c0_11, %c0_12] : memref<9x16x16xbf16, #tpu.memory_space<vmem>>, vector<1x16x16xbf16>
    %10 = vector.shape_cast %9 : vector<1x16x16xbf16> to vector<16x16xbf16>
    %cst_13 = arith.constant dense<0.000000e+00> : vector<132x16xf32>
    %11 = tpu.matmul %8, %10, %cst_13 {dimension_numbers = #tpu.dot_dimension_numbers<[1], [0], [0], [1], [0, 0, 1, 1], [], []>} : vector<132x16xbf16>, vector<16x16xbf16>, vector<132x16xf32> -> vector<132x16xf32>
    %12 = arith.addf %6, %11 : vector<132x16xf32>
    %c0_14 = arith.constant 0 : index
    %c2 = arith.constant 2 : index
    %c0_15 = arith.constant 0 : index
    %c0_16 = arith.constant 0 : index
    %13 = vector.load %arg1[%c0_14, %c2, %c0_15, %c0_16] : memref<1x6x144x16xbf16, #tpu.memory_space<vmem>>, vector<1x1x132x16xbf16>
    %14 = vector.shape_cast %13 : vector<1x1x132x16xbf16> to vector<132x16xbf16>
    %c2_17 = arith.constant 2 : index
    %c0_18 = arith.constant 0 : index
    %c0_19 = arith.constant 0 : index
    %15 = vector.load %arg2[%c2_17, %c0_18, %c0_19] : memref<9x16x16xbf16, #tpu.memory_space<vmem>>, vector<1x16x16xbf16>
    %16 = vector.shape_cast %15 : vector<1x16x16xbf16> to vector<16x16xbf16>
    %cst_20 = arith.constant dense<0.000000e+00> : vector<132x16xf32>
    %17 = tpu.matmul %14, %16, %cst_20 {dimension_numbers = #tpu.dot_dimension_numbers<[1], [0], [0], [1], [0, 0, 1, 1], [], []>} : vector<132x16xbf16>, vector<16x16xbf16>, vector<132x16xf32> -> vector<132x16xf32>
    %18 = arith.addf %12, %17 : vector<132x16xf32>
    %c0_21 = arith.constant 0 : index
    %c3 = arith.constant 3 : index
    %c0_22 = arith.constant 0 : index
    %c0_23 = arith.constant 0 : index
    %19 = vector.load %arg1[%c0_21, %c3, %c0_22, %c0_23] : memref<1x6x144x16xbf16, #tpu.memory_space<vmem>>, vector<1x1x132x16xbf16>
    %20 = vector.shape_cast %19 : vector<1x1x132x16xbf16> to vector<132x16xbf16>
    %c3_24 = arith.constant 3 : index
    %c0_25 = arith.constant 0 : index
    %c0_26 = arith.constant 0 : index
    %21 = vector.load %arg2[%c3_24, %c0_25, %c0_26] : memref<9x16x16xbf16, #tpu.memory_space<vmem>>, vector<1x16x16xbf16>
    %22 = vector.shape_cast %21 : vector<1x16x16xbf16> to vector<16x16xbf16>
    %cst_27 = arith.constant dense<0.000000e+00> : vector<132x16xf32>
    %23 = tpu.matmul %20, %22, %cst_27 {dimension_numbers = #tpu.dot_dimension_numbers<[1], [0], [0], [1], [0, 0, 1, 1], [], []>} : vector<132x16xbf16>, vector<16x16xbf16>, vector<132x16xf32> -> vector<132x16xf32>
    %24 = arith.addf %18, %23 : vector<132x16xf32>
    %c0_28 = arith.constant 0 : index
    %c4 = arith.constant 4 : index
    %c0_29 = arith.constant 0 : index
    %c0_30 = arith.constant 0 : index
    %25 = vector.load %arg1[%c0_28, %c4, %c0_29, %c0_30] : memref<1x6x144x16xbf16, #tpu.memory_space<vmem>>, vector<1x1x132x16xbf16>
    %26 = vector.shape_cast %25 : vector<1x1x132x16xbf16> to vector<132x16xbf16>
    %c4_31 = arith.constant 4 : index
    %c0_32 = arith.constant 0 : index
    %c0_33 = arith.constant 0 : index
    %27 = vector.load %arg2[%c4_31, %c0_32, %c0_33] : memref<9x16x16xbf16, #tpu.memory_space<vmem>>, vector<1x16x16xbf16>
    %28 = vector.shape_cast %27 : vector<1x16x16xbf16> to vector<16x16xbf16>
    %cst_34 = arith.constant dense<0.000000e+00> : vector<132x16xf32>
    %29 = tpu.matmul %26, %28, %cst_34 {dimension_numbers = #tpu.dot_dimension_numbers<[1], [0], [0], [1], [0, 0, 1, 1], [], []>} : vector<132x16xbf16>, vector<16x16xbf16>, vector<132x16xf32> -> vector<132x16xf32>
    %30 = arith.addf %24, %29 : vector<132x16xf32>
    %c0_35 = arith.constant 0 : index
    %c5 = arith.constant 5 : index
    %c0_36 = arith.constant 0 : index
    %c0_37 = arith.constant 0 : index
    %31 = vector.load %arg1[%c0_35, %c5, %c0_36, %c0_37] : memref<1x6x144x16xbf16, #tpu.memory_space<vmem>>, vector<1x1x132x16xbf16>
    %32 = vector.shape_cast %31 : vector<1x1x132x16xbf16> to vector<132x16xbf16>
    %c5_38 = arith.constant 5 : index
    %c0_39 = arith.constant 0 : index
    %c0_40 = arith.constant 0 : index
    %33 = vector.load %arg2[%c5_38, %c0_39, %c0_40] : memref<9x16x16xbf16, #tpu.memory_space<vmem>>, vector<1x16x16xbf16>
    %34 = vector.shape_cast %33 : vector<1x16x16xbf16> to vector<16x16xbf16>
    %cst_41 = arith.constant dense<0.000000e+00> : vector<132x16xf32>
    %35 = tpu.matmul %32, %34, %cst_41 {dimension_numbers = #tpu.dot_dimension_numbers<[1], [0], [0], [1], [0, 0, 1, 1], [], []>} : vector<132x16xbf16>, vector<16x16xbf16>, vector<132x16xf32> -> vector<132x16xf32>
    %36 = arith.addf %30, %35 : vector<132x16xf32>
    %c0_42 = arith.constant 0 : index
    %c0_43 = arith.constant 0 : index
    %c12 = arith.constant 12 : index
    %c0_44 = arith.constant 0 : index
    %37 = vector.load %arg1[%c0_42, %c0_43, %c12, %c0_44] : memref<1x6x144x16xbf16, #tpu.memory_space<vmem>>, vector<1x1x132x16xbf16>
    %38 = vector.shape_cast %37 : vector<1x1x132x16xbf16> to vector<132x16xbf16>
    %c6 = arith.constant 6 : index
    %c0_45 = arith.constant 0 : index
    %c0_46 = arith.constant 0 : index
    %39 = vector.load %arg2[%c6, %c0_45, %c0_46] : memref<9x16x16xbf16, #tpu.memory_space<vmem>>, vector<1x16x16xbf16>
    %40 = vector.shape_cast %39 : vector<1x16x16xbf16> to vector<16x16xbf16>
    %cst_47 = arith.constant dense<0.000000e+00> : vector<132x16xf32>
    %41 = tpu.matmul %38, %40, %cst_47 {dimension_numbers = #tpu.dot_dimension_numbers<[1], [0], [0], [1], [0, 0, 1, 1], [], []>} : vector<132x16xbf16>, vector<16x16xbf16>, vector<132x16xf32> -> vector<132x16xf32>
    %42 = arith.addf %36, %41 : vector<132x16xf32>
    %c0_48 = arith.constant 0 : index
    %c1_49 = arith.constant 1 : index
    %c12_50 = arith.constant 12 : index
    %c0_51 = arith.constant 0 : index
    %43 = vector.load %arg1[%c0_48, %c1_49, %c12_50, %c0_51] : memref<1x6x144x16xbf16, #tpu.memory_space<vmem>>, vector<1x1x132x16xbf16>
    %44 = vector.shape_cast %43 : vector<1x1x132x16xbf16> to vector<132x16xbf16>
    %c7 = arith.constant 7 : index
    %c0_52 = arith.constant 0 : index
    %c0_53 = arith.constant 0 : index
    %45 = vector.load %arg2[%c7, %c0_52, %c0_53] : memref<9x16x16xbf16, #tpu.memory_space<vmem>>, vector<1x16x16xbf16>
    %46 = vector.shape_cast %45 : vector<1x16x16xbf16> to vector<16x16xbf16>
    %cst_54 = arith.constant dense<0.000000e+00> : vector<132x16xf32>
    %47 = tpu.matmul %44, %46, %cst_54 {dimension_numbers = #tpu.dot_dimension_numbers<[1], [0], [0], [1], [0, 0, 1, 1], [], []>} : vector<132x16xbf16>, vector<16x16xbf16>, vector<132x16xf32> -> vector<132x16xf32>
    %48 = arith.addf %42, %47 : vector<132x16xf32>
    %c0_55 = arith.constant 0 : index
    %c2_56 = arith.constant 2 : index
    %c12_57 = arith.constant 12 : index
    %c0_58 = arith.constant 0 : index
    %49 = vector.load %arg1[%c0_55, %c2_56, %c12_57, %c0_58] : memref<1x6x144x16xbf16, #tpu.memory_space<vmem>>, vector<1x1x132x16xbf16>
    %50 = vector.shape_cast %49 : vector<1x1x132x16xbf16> to vector<132x16xbf16>
    %c8 = arith.constant 8 : index
    %c0_59 = arith.constant 0 : index
    %c0_60 = arith.constant 0 : index
    %51 = vector.load %arg2[%c8, %c0_59, %c0_60] : memref<9x16x16xbf16, #tpu.memory_space<vmem>>, vector<1x16x16xbf16>
    %52 = vector.shape_cast %51 : vector<1x16x16xbf16> to vector<16x16xbf16>
    %cst_61 = arith.constant dense<0.000000e+00> : vector<132x16xf32>
    %53 = tpu.matmul %50, %52, %cst_61 {dimension_numbers = #tpu.dot_dimension_numbers<[1], [0], [0], [1], [0, 0, 1, 1], [], []>} : vector<132x16xbf16>, vector<16x16xbf16>, vector<132x16xf32> -> vector<132x16xf32>
    %54 = arith.addf %48, %53 : vector<132x16xf32>
    %c0_62 = arith.constant 0 : index
    %c0_63 = arith.constant 0 : index
    %55 = vector.load %arg3[%c0_62, %c0_63] : memref<1x16xf32, #tpu.memory_space<vmem>>, vector<1x16xf32>
    %56 = vector.broadcast %55 : vector<1x16xf32> to vector<132x16xf32>
    %57 = arith.addf %54, %56 : vector<132x16xf32>
    %cst_64 = arith.constant 0.000000e+00 : f32
    %58 = vector.broadcast %cst_64 : f32 to vector<132x16xf32>
    %59 = arith.maximumf %57, %58 : vector<132x16xf32>
    %60 = arith.truncf %59 : vector<132x16xf32> to vector<132x16xbf16>
    %c0_65 = arith.constant 0 : index
    %c0_66 = arith.constant 0 : index
    %c0_67 = arith.constant 0 : index
    %61 = vector.load %arg4[%c0_65, %c0_66, %c0_67] : memref<1x132x16xbf16, #tpu.memory_space<vmem>>, vector<1x132x16xbf16>
    %62 = vector.shape_cast %61 : vector<1x132x16xbf16> to vector<132x16xbf16>
    %63 = vector.shape_cast %60 : vector<132x16xbf16> to vector<1x132x16xbf16>
    tpu.vector_store %arg4[%c0_65, %c0_66, %c0_67], %63 {strides = array<i32>} : memref<1x132x16xbf16, #tpu.memory_space<vmem>>, vector<1x132x16xbf16>,
    return
  }
  func.func @transform_0(%arg0: i32) -> (i32, i32, i32, i32) {
    %c0_i32 = arith.constant 0 : i32
    %c0_i32_0 = arith.constant 0 : i32
    %c0_i32_1 = arith.constant 0 : i32
    %c0_i32_2 = arith.constant 0 : i32
    return %arg0, %c0_i32, %c0_i32_0, %c0_i32_1 : i32, i32, i32, i32
  }
  func.func @transform_1(%arg0: i32) -> (i32, i32, i32) {
    %c0_i32 = arith.constant 0 : i32
    %c0_i32_0 = arith.constant 0 : i32
    %c0_i32_1 = arith.constant 0 : i32
    %c0_i32_2 = arith.constant 0 : i32
    return %c0_i32, %c0_i32_0, %c0_i32_1 : i32, i32, i32
  }
  func.func @transform_2(%arg0: i32) -> (i32, i32) {
    %c0_i32 = arith.constant 0 : i32
    %c0_i32_0 = arith.constant 0 : i32
    %c0_i32_1 = arith.constant 0 : i32
    return %c0_i32, %c0_i32_0 : i32, i32
  }
  func.func @transform_3(%arg0: i32) -> (i32, i32, i32) {
    %c0_i32 = arith.constant 0 : i32
    %c0_i32_0 = arith.constant 0 : i32
    %c0_i32_1 = arith.constant 0 : i32
    return %arg0, %c0_i32, %c0_i32_0 : i32, i32, i32
  }
}

module attributes {stable_mosaic.version = 11 : i64} {
  func.func @_conv_bn_relu_kernel(%arg0: i32, %arg1: memref<1x6x36x16xbf16, #tpu.memory_space<vmem>>, %arg2: memref<9x16x16xbf16, #tpu.memory_space<vmem>>, %arg3: memref<1x16xf32, #tpu.memory_space<vmem>>, %arg4: memref<1x30x16xbf16, #tpu.memory_space<vmem>>) attributes {dimension_semantics = [#tpu.dimension_semantics<parallel>], iteration_bounds = array<i64: 8>, scalar_prefetch = 0 : i64, scratch_operands = 0 : i64, tpu.core_type = #tpu.core_type<tc>, window_params = [{transform_indices = @transform_0, window_bounds = array<i64: 1, 6, 36, 16>}, {pipeline_mode = #tpu.pipeline_mode<synchronous>, transform_indices = @transform_1, window_bounds = array<i64: 9, 16, 16>}, {pipeline_mode = #tpu.pipeline_mode<synchronous>, transform_indices = @transform_2, window_bounds = array<i64: 1, 16>}, {transform_indices = @transform_3, window_bounds = array<i64: 1, 30, 16>}]} {
    %cst = arith.constant 0.000000e+00 : f32
    %0 = vector.broadcast %cst : f32 to vector<30x16xf32>
    %c0 = arith.constant 0 : index
    %c0_0 = arith.constant 0 : index
    %c0_1 = arith.constant 0 : index
    %c0_2 = arith.constant 0 : index
    %1 = vector.load %arg1[%c0, %c0_0, %c0_1, %c0_2] : memref<1x6x36x16xbf16, #tpu.memory_space<vmem>>, vector<1x1x30x16xbf16>
    %2 = vector.shape_cast %1 : vector<1x1x30x16xbf16> to vector<30x16xbf16>
    %c0_3 = arith.constant 0 : index
    %c0_4 = arith.constant 0 : index
    %c0_5 = arith.constant 0 : index
    %3 = vector.load %arg2[%c0_3, %c0_4, %c0_5] : memref<9x16x16xbf16, #tpu.memory_space<vmem>>, vector<1x16x16xbf16>
    %4 = vector.shape_cast %3 : vector<1x16x16xbf16> to vector<16x16xbf16>
    %cst_6 = arith.constant dense<0.000000e+00> : vector<30x16xf32>
    %5 = tpu.matmul %2, %4, %cst_6 {dimension_numbers = #tpu.dot_dimension_numbers<[1], [0], [0], [1], [0, 0, 1, 1], [], []>} : vector<30x16xbf16>, vector<16x16xbf16>, vector<30x16xf32> -> vector<30x16xf32>
    %6 = arith.addf %0, %5 : vector<30x16xf32>
    %c0_7 = arith.constant 0 : index
    %c1 = arith.constant 1 : index
    %c0_8 = arith.constant 0 : index
    %c0_9 = arith.constant 0 : index
    %7 = vector.load %arg1[%c0_7, %c1, %c0_8, %c0_9] : memref<1x6x36x16xbf16, #tpu.memory_space<vmem>>, vector<1x1x30x16xbf16>
    %8 = vector.shape_cast %7 : vector<1x1x30x16xbf16> to vector<30x16xbf16>
    %c1_10 = arith.constant 1 : index
    %c0_11 = arith.constant 0 : index
    %c0_12 = arith.constant 0 : index
    %9 = vector.load %arg2[%c1_10, %c0_11, %c0_12] : memref<9x16x16xbf16, #tpu.memory_space<vmem>>, vector<1x16x16xbf16>
    %10 = vector.shape_cast %9 : vector<1x16x16xbf16> to vector<16x16xbf16>
    %cst_13 = arith.constant dense<0.000000e+00> : vector<30x16xf32>
    %11 = tpu.matmul %8, %10, %cst_13 {dimension_numbers = #tpu.dot_dimension_numbers<[1], [0], [0], [1], [0, 0, 1, 1], [], []>} : vector<30x16xbf16>, vector<16x16xbf16>, vector<30x16xf32> -> vector<30x16xf32>
    %12 = arith.addf %6, %11 : vector<30x16xf32>
    %c0_14 = arith.constant 0 : index
    %c2 = arith.constant 2 : index
    %c0_15 = arith.constant 0 : index
    %c0_16 = arith.constant 0 : index
    %13 = vector.load %arg1[%c0_14, %c2, %c0_15, %c0_16] : memref<1x6x36x16xbf16, #tpu.memory_space<vmem>>, vector<1x1x30x16xbf16>
    %14 = vector.shape_cast %13 : vector<1x1x30x16xbf16> to vector<30x16xbf16>
    %c2_17 = arith.constant 2 : index
    %c0_18 = arith.constant 0 : index
    %c0_19 = arith.constant 0 : index
    %15 = vector.load %arg2[%c2_17, %c0_18, %c0_19] : memref<9x16x16xbf16, #tpu.memory_space<vmem>>, vector<1x16x16xbf16>
    %16 = vector.shape_cast %15 : vector<1x16x16xbf16> to vector<16x16xbf16>
    %cst_20 = arith.constant dense<0.000000e+00> : vector<30x16xf32>
    %17 = tpu.matmul %14, %16, %cst_20 {dimension_numbers = #tpu.dot_dimension_numbers<[1], [0], [0], [1], [0, 0, 1, 1], [], []>} : vector<30x16xbf16>, vector<16x16xbf16>, vector<30x16xf32> -> vector<30x16xf32>
    %18 = arith.addf %12, %17 : vector<30x16xf32>
    %c0_21 = arith.constant 0 : index
    %c3 = arith.constant 3 : index
    %c0_22 = arith.constant 0 : index
    %c0_23 = arith.constant 0 : index
    %19 = vector.load %arg1[%c0_21, %c3, %c0_22, %c0_23] : memref<1x6x36x16xbf16, #tpu.memory_space<vmem>>, vector<1x1x30x16xbf16>
    %20 = vector.shape_cast %19 : vector<1x1x30x16xbf16> to vector<30x16xbf16>
    %c3_24 = arith.constant 3 : index
    %c0_25 = arith.constant 0 : index
    %c0_26 = arith.constant 0 : index
    %21 = vector.load %arg2[%c3_24, %c0_25, %c0_26] : memref<9x16x16xbf16, #tpu.memory_space<vmem>>, vector<1x16x16xbf16>
    %22 = vector.shape_cast %21 : vector<1x16x16xbf16> to vector<16x16xbf16>
    %cst_27 = arith.constant dense<0.000000e+00> : vector<30x16xf32>
    %23 = tpu.matmul %20, %22, %cst_27 {dimension_numbers = #tpu.dot_dimension_numbers<[1], [0], [0], [1], [0, 0, 1, 1], [], []>} : vector<30x16xbf16>, vector<16x16xbf16>, vector<30x16xf32> -> vector<30x16xf32>
    %24 = arith.addf %18, %23 : vector<30x16xf32>
    %c0_28 = arith.constant 0 : index
    %c4 = arith.constant 4 : index
    %c0_29 = arith.constant 0 : index
    %c0_30 = arith.constant 0 : index
    %25 = vector.load %arg1[%c0_28, %c4, %c0_29, %c0_30] : memref<1x6x36x16xbf16, #tpu.memory_space<vmem>>, vector<1x1x30x16xbf16>
    %26 = vector.shape_cast %25 : vector<1x1x30x16xbf16> to vector<30x16xbf16>
    %c4_31 = arith.constant 4 : index
    %c0_32 = arith.constant 0 : index
    %c0_33 = arith.constant 0 : index
    %27 = vector.load %arg2[%c4_31, %c0_32, %c0_33] : memref<9x16x16xbf16, #tpu.memory_space<vmem>>, vector<1x16x16xbf16>
    %28 = vector.shape_cast %27 : vector<1x16x16xbf16> to vector<16x16xbf16>
    %cst_34 = arith.constant dense<0.000000e+00> : vector<30x16xf32>
    %29 = tpu.matmul %26, %28, %cst_34 {dimension_numbers = #tpu.dot_dimension_numbers<[1], [0], [0], [1], [0, 0, 1, 1], [], []>} : vector<30x16xbf16>, vector<16x16xbf16>, vector<30x16xf32> -> vector<30x16xf32>
    %30 = arith.addf %24, %29 : vector<30x16xf32>
    %c0_35 = arith.constant 0 : index
    %c5 = arith.constant 5 : index
    %c0_36 = arith.constant 0 : index
    %c0_37 = arith.constant 0 : index
    %31 = vector.load %arg1[%c0_35, %c5, %c0_36, %c0_37] : memref<1x6x36x16xbf16, #tpu.memory_space<vmem>>, vector<1x1x30x16xbf16>
    %32 = vector.shape_cast %31 : vector<1x1x30x16xbf16> to vector<30x16xbf16>
    %c5_38 = arith.constant 5 : index
    %c0_39 = arith.constant 0 : index
    %c0_40 = arith.constant 0 : index
    %33 = vector.load %arg2[%c5_38, %c0_39, %c0_40] : memref<9x16x16xbf16, #tpu.memory_space<vmem>>, vector<1x16x16xbf16>
    %34 = vector.shape_cast %33 : vector<1x16x16xbf16> to vector<16x16xbf16>
    %cst_41 = arith.constant dense<0.000000e+00> : vector<30x16xf32>
    %35 = tpu.matmul %32, %34, %cst_41 {dimension_numbers = #tpu.dot_dimension_numbers<[1], [0], [0], [1], [0, 0, 1, 1], [], []>} : vector<30x16xbf16>, vector<16x16xbf16>, vector<30x16xf32> -> vector<30x16xf32>
    %36 = arith.addf %30, %35 : vector<30x16xf32>
    %c0_42 = arith.constant 0 : index
    %c0_43 = arith.constant 0 : index
    %c6 = arith.constant 6 : index
    %c0_44 = arith.constant 0 : index
    %37 = vector.load %arg1[%c0_42, %c0_43, %c6, %c0_44] : memref<1x6x36x16xbf16, #tpu.memory_space<vmem>>, vector<1x1x30x16xbf16>
    %38 = vector.shape_cast %37 : vector<1x1x30x16xbf16> to vector<30x16xbf16>
    %c6_45 = arith.constant 6 : index
    %c0_46 = arith.constant 0 : index
    %c0_47 = arith.constant 0 : index
    %39 = vector.load %arg2[%c6_45, %c0_46, %c0_47] : memref<9x16x16xbf16, #tpu.memory_space<vmem>>, vector<1x16x16xbf16>
    %40 = vector.shape_cast %39 : vector<1x16x16xbf16> to vector<16x16xbf16>
    %cst_48 = arith.constant dense<0.000000e+00> : vector<30x16xf32>
    %41 = tpu.matmul %38, %40, %cst_48 {dimension_numbers = #tpu.dot_dimension_numbers<[1], [0], [0], [1], [0, 0, 1, 1], [], []>} : vector<30x16xbf16>, vector<16x16xbf16>, vector<30x16xf32> -> vector<30x16xf32>
    %42 = arith.addf %36, %41 : vector<30x16xf32>
    %c0_49 = arith.constant 0 : index
    %c1_50 = arith.constant 1 : index
    %c6_51 = arith.constant 6 : index
    %c0_52 = arith.constant 0 : index
    %43 = vector.load %arg1[%c0_49, %c1_50, %c6_51, %c0_52] : memref<1x6x36x16xbf16, #tpu.memory_space<vmem>>, vector<1x1x30x16xbf16>
    %44 = vector.shape_cast %43 : vector<1x1x30x16xbf16> to vector<30x16xbf16>
    %c7 = arith.constant 7 : index
    %c0_53 = arith.constant 0 : index
    %c0_54 = arith.constant 0 : index
    %45 = vector.load %arg2[%c7, %c0_53, %c0_54] : memref<9x16x16xbf16, #tpu.memory_space<vmem>>, vector<1x16x16xbf16>
    %46 = vector.shape_cast %45 : vector<1x16x16xbf16> to vector<16x16xbf16>
    %cst_55 = arith.constant dense<0.000000e+00> : vector<30x16xf32>
    %47 = tpu.matmul %44, %46, %cst_55 {dimension_numbers = #tpu.dot_dimension_numbers<[1], [0], [0], [1], [0, 0, 1, 1], [], []>} : vector<30x16xbf16>, vector<16x16xbf16>, vector<30x16xf32> -> vector<30x16xf32>
    %48 = arith.addf %42, %47 : vector<30x16xf32>
    %c0_56 = arith.constant 0 : index
    %c2_57 = arith.constant 2 : index
    %c6_58 = arith.constant 6 : index
    %c0_59 = arith.constant 0 : index
    %49 = vector.load %arg1[%c0_56, %c2_57, %c6_58, %c0_59] : memref<1x6x36x16xbf16, #tpu.memory_space<vmem>>, vector<1x1x30x16xbf16>
    %50 = vector.shape_cast %49 : vector<1x1x30x16xbf16> to vector<30x16xbf16>
    %c8 = arith.constant 8 : index
    %c0_60 = arith.constant 0 : index
    %c0_61 = arith.constant 0 : index
    %51 = vector.load %arg2[%c8, %c0_60, %c0_61] : memref<9x16x16xbf16, #tpu.memory_space<vmem>>, vector<1x16x16xbf16>
    %52 = vector.shape_cast %51 : vector<1x16x16xbf16> to vector<16x16xbf16>
    %cst_62 = arith.constant dense<0.000000e+00> : vector<30x16xf32>
    %53 = tpu.matmul %50, %52, %cst_62 {dimension_numbers = #tpu.dot_dimension_numbers<[1], [0], [0], [1], [0, 0, 1, 1], [], []>} : vector<30x16xbf16>, vector<16x16xbf16>, vector<30x16xf32> -> vector<30x16xf32>
    %54 = arith.addf %48, %53 : vector<30x16xf32>
    %c0_63 = arith.constant 0 : index
    %c0_64 = arith.constant 0 : index
    %55 = vector.load %arg3[%c0_63, %c0_64] : memref<1x16xf32, #tpu.memory_space<vmem>>, vector<1x16xf32>
    %56 = vector.broadcast %55 : vector<1x16xf32> to vector<30x16xf32>
    %57 = arith.addf %54, %56 : vector<30x16xf32>
    %cst_65 = arith.constant 0.000000e+00 : f32
    %58 = vector.broadcast %cst_65 : f32 to vector<30x16xf32>
    %59 = arith.maximumf %57, %58 : vector<30x16xf32>
    %60 = arith.truncf %59 : vector<30x16xf32> to vector<30x16xbf16>
    %c0_66 = arith.constant 0 : index
    %c0_67 = arith.constant 0 : index
    %c0_68 = arith.constant 0 : index
    %61 = vector.load %arg4[%c0_66, %c0_67, %c0_68] : memref<1x30x16xbf16, #tpu.memory_space<vmem>>, vector<1x30x16xbf16>
    %62 = vector.shape_cast %61 : vector<1x30x16xbf16> to vector<30x16xbf16>
    %63 = vector.shape_cast %60 : vector<30x16xbf16> to vector<1x30x16xbf16>
    tpu.vector_store %arg4[%c0_66, %c0_67, %c0_68], %63 {strides = array<i32>} : memref<1x30x16xbf16, #tpu.memory_space<vmem>>, vector<1x30x16xbf16>,
    return
  }
  func.func @transform_0(%arg0: i32) -> (i32, i32, i32, i32) {
    %c0_i32 = arith.constant 0 : i32
    %c0_i32_0 = arith.constant 0 : i32
    %c0_i32_1 = arith.constant 0 : i32
    %c0_i32_2 = arith.constant 0 : i32
    return %arg0, %c0_i32, %c0_i32_0, %c0_i32_1 : i32, i32, i32, i32
  }
  func.func @transform_1(%arg0: i32) -> (i32, i32, i32) {
    %c0_i32 = arith.constant 0 : i32
    %c0_i32_0 = arith.constant 0 : i32
    %c0_i32_1 = arith.constant 0 : i32
    %c0_i32_2 = arith.constant 0 : i32
    return %c0_i32, %c0_i32_0, %c0_i32_1 : i32, i32, i32
  }
  func.func @transform_2(%arg0: i32) -> (i32, i32) {
    %c0_i32 = arith.constant 0 : i32
    %c0_i32_0 = arith.constant 0 : i32
    %c0_i32_1 = arith.constant 0 : i32
    return %c0_i32, %c0_i32_0 : i32, i32
  }
  func.func @transform_3(%arg0: i32) -> (i32, i32, i32) {
    %c0_i32 = arith.constant 0 : i32
    %c0_i32_0 = arith.constant 0 : i32
    %c0_i32_1 = arith.constant 0 : i32
    return %arg0, %c0_i32, %c0_i32_0 : i32, i32, i32
  }
}

module attributes {stable_mosaic.version = 11 : i64} {
  func.func @_conv_bn_relu_kernel(%arg0: i32, %arg1: memref<1x6x6x16xbf16, #tpu.memory_space<vmem>>, %arg2: memref<9x16x16xbf16, #tpu.memory_space<vmem>>, %arg3: memref<1x16xf32, #tpu.memory_space<vmem>>, %arg4: memref<1x1x16xf32, #tpu.memory_space<vmem>>) attributes {dimension_semantics = [#tpu.dimension_semantics<parallel>], iteration_bounds = array<i64: 8>, scalar_prefetch = 0 : i64, scratch_operands = 0 : i64, tpu.core_type = #tpu.core_type<tc>, window_params = [{transform_indices = @transform_0, window_bounds = array<i64: 1, 6, 6, 16>}, {pipeline_mode = #tpu.pipeline_mode<synchronous>, transform_indices = @transform_1, window_bounds = array<i64: 9, 16, 16>}, {pipeline_mode = #tpu.pipeline_mode<synchronous>, transform_indices = @transform_2, window_bounds = array<i64: 1, 16>}, {transform_indices = @transform_3, window_bounds = array<i64: 1, 1, 16>}]} {
    %cst = arith.constant 0.000000e+00 : f32
    %0 = vector.broadcast %cst : f32 to vector<4x16xf32>
    %c0 = arith.constant 0 : index
    %c0_0 = arith.constant 0 : index
    %c0_1 = arith.constant 0 : index
    %c0_2 = arith.constant 0 : index
    %1 = vector.load %arg1[%c0, %c0_0, %c0_1, %c0_2] : memref<1x6x6x16xbf16, #tpu.memory_space<vmem>>, vector<1x1x4x16xbf16>
    %2 = vector.shape_cast %1 : vector<1x1x4x16xbf16> to vector<4x16xbf16>
    %c0_3 = arith.constant 0 : index
    %c0_4 = arith.constant 0 : index
    %c0_5 = arith.constant 0 : index
    %3 = vector.load %arg2[%c0_3, %c0_4, %c0_5] : memref<9x16x16xbf16, #tpu.memory_space<vmem>>, vector<1x16x16xbf16>
    %4 = vector.shape_cast %3 : vector<1x16x16xbf16> to vector<16x16xbf16>
    %cst_6 = arith.constant dense<0.000000e+00> : vector<4x16xf32>
    %5 = tpu.matmul %2, %4, %cst_6 {dimension_numbers = #tpu.dot_dimension_numbers<[1], [0], [0], [1], [0, 0, 1, 1], [], []>} : vector<4x16xbf16>, vector<16x16xbf16>, vector<4x16xf32> -> vector<4x16xf32>
    %6 = arith.addf %0, %5 : vector<4x16xf32>
    %c0_7 = arith.constant 0 : index
    %c1 = arith.constant 1 : index
    %c0_8 = arith.constant 0 : index
    %c0_9 = arith.constant 0 : index
    %7 = vector.load %arg1[%c0_7, %c1, %c0_8, %c0_9] : memref<1x6x6x16xbf16, #tpu.memory_space<vmem>>, vector<1x1x4x16xbf16>
    %8 = vector.shape_cast %7 : vector<1x1x4x16xbf16> to vector<4x16xbf16>
    %c1_10 = arith.constant 1 : index
    %c0_11 = arith.constant 0 : index
    %c0_12 = arith.constant 0 : index
    %9 = vector.load %arg2[%c1_10, %c0_11, %c0_12] : memref<9x16x16xbf16, #tpu.memory_space<vmem>>, vector<1x16x16xbf16>
    %10 = vector.shape_cast %9 : vector<1x16x16xbf16> to vector<16x16xbf16>
    %cst_13 = arith.constant dense<0.000000e+00> : vector<4x16xf32>
    %11 = tpu.matmul %8, %10, %cst_13 {dimension_numbers = #tpu.dot_dimension_numbers<[1], [0], [0], [1], [0, 0, 1, 1], [], []>} : vector<4x16xbf16>, vector<16x16xbf16>, vector<4x16xf32> -> vector<4x16xf32>
    %12 = arith.addf %6, %11 : vector<4x16xf32>
    %c0_14 = arith.constant 0 : index
    %c2 = arith.constant 2 : index
    %c0_15 = arith.constant 0 : index
    %c0_16 = arith.constant 0 : index
    %13 = vector.load %arg1[%c0_14, %c2, %c0_15, %c0_16] : memref<1x6x6x16xbf16, #tpu.memory_space<vmem>>, vector<1x1x4x16xbf16>
    %14 = vector.shape_cast %13 : vector<1x1x4x16xbf16> to vector<4x16xbf16>
    %c2_17 = arith.constant 2 : index
    %c0_18 = arith.constant 0 : index
    %c0_19 = arith.constant 0 : index
    %15 = vector.load %arg2[%c2_17, %c0_18, %c0_19] : memref<9x16x16xbf16, #tpu.memory_space<vmem>>, vector<1x16x16xbf16>
    %16 = vector.shape_cast %15 : vector<1x16x16xbf16> to vector<16x16xbf16>
    %cst_20 = arith.constant dense<0.000000e+00> : vector<4x16xf32>
    %17 = tpu.matmul %14, %16, %cst_20 {dimension_numbers = #tpu.dot_dimension_numbers<[1], [0], [0], [1], [0, 0, 1, 1], [], []>} : vector<4x16xbf16>, vector<16x16xbf16>, vector<4x16xf32> -> vector<4x16xf32>
    %18 = arith.addf %12, %17 : vector<4x16xf32>
    %c0_21 = arith.constant 0 : index
    %c3 = arith.constant 3 : index
    %c0_22 = arith.constant 0 : index
    %c0_23 = arith.constant 0 : index
    %19 = vector.load %arg1[%c0_21, %c3, %c0_22, %c0_23] : memref<1x6x6x16xbf16, #tpu.memory_space<vmem>>, vector<1x1x4x16xbf16>
    %20 = vector.shape_cast %19 : vector<1x1x4x16xbf16> to vector<4x16xbf16>
    %c3_24 = arith.constant 3 : index
    %c0_25 = arith.constant 0 : index
    %c0_26 = arith.constant 0 : index
    %21 = vector.load %arg2[%c3_24, %c0_25, %c0_26] : memref<9x16x16xbf16, #tpu.memory_space<vmem>>, vector<1x16x16xbf16>
    %22 = vector.shape_cast %21 : vector<1x16x16xbf16> to vector<16x16xbf16>
    %cst_27 = arith.constant dense<0.000000e+00> : vector<4x16xf32>
    %23 = tpu.matmul %20, %22, %cst_27 {dimension_numbers = #tpu.dot_dimension_numbers<[1], [0], [0], [1], [0, 0, 1, 1], [], []>} : vector<4x16xbf16>, vector<16x16xbf16>, vector<4x16xf32> -> vector<4x16xf32>
    %24 = arith.addf %18, %23 : vector<4x16xf32>
    %c0_28 = arith.constant 0 : index
    %c4 = arith.constant 4 : index
    %c0_29 = arith.constant 0 : index
    %c0_30 = arith.constant 0 : index
    %25 = vector.load %arg1[%c0_28, %c4, %c0_29, %c0_30] : memref<1x6x6x16xbf16, #tpu.memory_space<vmem>>, vector<1x1x4x16xbf16>
    %26 = vector.shape_cast %25 : vector<1x1x4x16xbf16> to vector<4x16xbf16>
    %c4_31 = arith.constant 4 : index
    %c0_32 = arith.constant 0 : index
    %c0_33 = arith.constant 0 : index
    %27 = vector.load %arg2[%c4_31, %c0_32, %c0_33] : memref<9x16x16xbf16, #tpu.memory_space<vmem>>, vector<1x16x16xbf16>
    %28 = vector.shape_cast %27 : vector<1x16x16xbf16> to vector<16x16xbf16>
    %cst_34 = arith.constant dense<0.000000e+00> : vector<4x16xf32>
    %29 = tpu.matmul %26, %28, %cst_34 {dimension_numbers = #tpu.dot_dimension_numbers<[1], [0], [0], [1], [0, 0, 1, 1], [], []>} : vector<4x16xbf16>, vector<16x16xbf16>, vector<4x16xf32> -> vector<4x16xf32>
    %30 = arith.addf %24, %29 : vector<4x16xf32>
    %c0_35 = arith.constant 0 : index
    %c5 = arith.constant 5 : index
    %c0_36 = arith.constant 0 : index
    %c0_37 = arith.constant 0 : index
    %31 = vector.load %arg1[%c0_35, %c5, %c0_36, %c0_37] : memref<1x6x6x16xbf16, #tpu.memory_space<vmem>>, vector<1x1x4x16xbf16>
    %32 = vector.shape_cast %31 : vector<1x1x4x16xbf16> to vector<4x16xbf16>
    %c5_38 = arith.constant 5 : index
    %c0_39 = arith.constant 0 : index
    %c0_40 = arith.constant 0 : index
    %33 = vector.load %arg2[%c5_38, %c0_39, %c0_40] : memref<9x16x16xbf16, #tpu.memory_space<vmem>>, vector<1x16x16xbf16>
    %34 = vector.shape_cast %33 : vector<1x16x16xbf16> to vector<16x16xbf16>
    %cst_41 = arith.constant dense<0.000000e+00> : vector<4x16xf32>
    %35 = tpu.matmul %32, %34, %cst_41 {dimension_numbers = #tpu.dot_dimension_numbers<[1], [0], [0], [1], [0, 0, 1, 1], [], []>} : vector<4x16xbf16>, vector<16x16xbf16>, vector<4x16xf32> -> vector<4x16xf32>
    %36 = arith.addf %30, %35 : vector<4x16xf32>
    %c0_42 = arith.constant 0 : index
    %c0_43 = arith.constant 0 : index
    %c2_44 = arith.constant 2 : index
    %c0_45 = arith.constant 0 : index
    %37 = vector.load %arg1[%c0_42, %c0_43, %c2_44, %c0_45] : memref<1x6x6x16xbf16, #tpu.memory_space<vmem>>, vector<1x1x4x16xbf16>
    %38 = vector.shape_cast %37 : vector<1x1x4x16xbf16> to vector<4x16xbf16>
    %c6 = arith.constant 6 : index
    %c0_46 = arith.constant 0 : index
    %c0_47 = arith.constant 0 : index
    %39 = vector.load %arg2[%c6, %c0_46, %c0_47] : memref<9x16x16xbf16, #tpu.memory_space<vmem>>, vector<1x16x16xbf16>
    %40 = vector.shape_cast %39 : vector<1x16x16xbf16> to vector<16x16xbf16>
    %cst_48 = arith.constant dense<0.000000e+00> : vector<4x16xf32>
    %41 = tpu.matmul %38, %40, %cst_48 {dimension_numbers = #tpu.dot_dimension_numbers<[1], [0], [0], [1], [0, 0, 1, 1], [], []>} : vector<4x16xbf16>, vector<16x16xbf16>, vector<4x16xf32> -> vector<4x16xf32>
    %42 = arith.addf %36, %41 : vector<4x16xf32>
    %c0_49 = arith.constant 0 : index
    %c1_50 = arith.constant 1 : index
    %c2_51 = arith.constant 2 : index
    %c0_52 = arith.constant 0 : index
    %43 = vector.load %arg1[%c0_49, %c1_50, %c2_51, %c0_52] : memref<1x6x6x16xbf16, #tpu.memory_space<vmem>>, vector<1x1x4x16xbf16>
    %44 = vector.shape_cast %43 : vector<1x1x4x16xbf16> to vector<4x16xbf16>
    %c7 = arith.constant 7 : index
    %c0_53 = arith.constant 0 : index
    %c0_54 = arith.constant 0 : index
    %45 = vector.load %arg2[%c7, %c0_53, %c0_54] : memref<9x16x16xbf16, #tpu.memory_space<vmem>>, vector<1x16x16xbf16>
    %46 = vector.shape_cast %45 : vector<1x16x16xbf16> to vector<16x16xbf16>
    %cst_55 = arith.constant dense<0.000000e+00> : vector<4x16xf32>
    %47 = tpu.matmul %44, %46, %cst_55 {dimension_numbers = #tpu.dot_dimension_numbers<[1], [0], [0], [1], [0, 0, 1, 1], [], []>} : vector<4x16xbf16>, vector<16x16xbf16>, vector<4x16xf32> -> vector<4x16xf32>
    %48 = arith.addf %42, %47 : vector<4x16xf32>
    %c0_56 = arith.constant 0 : index
    %c2_57 = arith.constant 2 : index
    %c2_58 = arith.constant 2 : index
    %c0_59 = arith.constant 0 : index
    %49 = vector.load %arg1[%c0_56, %c2_57, %c2_58, %c0_59] : memref<1x6x6x16xbf16, #tpu.memory_space<vmem>>, vector<1x1x4x16xbf16>
    %50 = vector.shape_cast %49 : vector<1x1x4x16xbf16> to vector<4x16xbf16>
    %c8 = arith.constant 8 : index
    %c0_60 = arith.constant 0 : index
    %c0_61 = arith.constant 0 : index
    %51 = vector.load %arg2[%c8, %c0_60, %c0_61] : memref<9x16x16xbf16, #tpu.memory_space<vmem>>, vector<1x16x16xbf16>
    %52 = vector.shape_cast %51 : vector<1x16x16xbf16> to vector<16x16xbf16>
    %cst_62 = arith.constant dense<0.000000e+00> : vector<4x16xf32>
    %53 = tpu.matmul %50, %52, %cst_62 {dimension_numbers = #tpu.dot_dimension_numbers<[1], [0], [0], [1], [0, 0, 1, 1], [], []>} : vector<4x16xbf16>, vector<16x16xbf16>, vector<4x16xf32> -> vector<4x16xf32>
    %54 = arith.addf %48, %53 : vector<4x16xf32>
    %c0_63 = arith.constant 0 : index
    %c0_64 = arith.constant 0 : index
    %55 = vector.load %arg3[%c0_63, %c0_64] : memref<1x16xf32, #tpu.memory_space<vmem>>, vector<1x16xf32>
    %56 = vector.broadcast %55 : vector<1x16xf32> to vector<4x16xf32>
    %57 = arith.addf %54, %56 : vector<4x16xf32>
    %cst_65 = arith.constant 0.000000e+00 : f32
    %58 = vector.broadcast %cst_65 : f32 to vector<4x16xf32>
    %59 = arith.maximumf %57, %58 : vector<4x16xf32>
    %60 = tpu.iota {dimensions = array<i32: 0>} : vector<4x1xi32>
    %c2_i32 = arith.constant 2 : i32
    %c0_i32 = arith.constant 0 : i32
    %61 = arith.cmpi eq, %c2_i32, %c0_i32 : i32
    %c1_i32 = arith.constant 1 : i32
    %62 = arith.select %61, %c1_i32, %c2_i32 : i32
    %63 = vector.broadcast %62 : i32 to vector<4x1xi32>
    %64 = arith.remsi %60, %63 : vector<4x1xi32>
    %c0_i32_66 = arith.constant 0 : i32
    %65 = vector.broadcast %c0_i32_66 : i32 to vector<4x1xi32>
    %66 = arith.cmpi ne, %64, %65 : vector<4x1xi32>
    %c0_i32_67 = arith.constant 0 : i32
    %67 = vector.broadcast %c0_i32_67 : i32 to vector<4x1xi32>
    %68 = arith.cmpi slt, %64, %67 : vector<4x1xi32>
    %c0_i32_68 = arith.constant 0 : i32
    %69 = arith.cmpi slt, %62, %c0_i32_68 : i32
    %70 = vector.broadcast %69 : i1 to vector<4x1xi1>
    %71 = vector.broadcast %70 : vector<4x1xi1> to vector<4x1xi1>
    %72 = arith.xori %68, %71 : vector<4x1xi1>
    %73 = arith.andi %72, %66 : vector<4x1xi1>
    %74 = vector.broadcast %62 : i32 to vector<4x1xi32>
    %75 = arith.addi %64, %74 : vector<4x1xi32>
    %76 = arith.select %73, %75, %64 : vector<4x1xi1>, vector<4x1xi32>
    %c2_i32_69 = arith.constant 2 : i32
    %77 = vector.broadcast %c2_i32_69 : i32 to vector<4x1xi32>
    %78 = arith.cmpi slt, %76, %77 : vector<4x1xi32>
    %79 = arith.extui %78 : vector<4x1xi1> to vector<4x1xi32>
    %80 = arith.sitofp %79 : vector<4x1xi32> to vector<4x1xf32>
    %81 = vector.broadcast %80 : vector<4x1xf32> to vector<4x16xf32>
    %82 = arith.mulf %59, %81 : vector<4x16xf32>
    %cst_70 = arith.constant dense<0.000000e+00> : vector<16xf32>
    %83 = vector.multi_reduction <add>, %82, %cst_70 [0] : vector<4x16xf32> to vector<16xf32>
    %84 = vector.shape_cast %83 : vector<16xf32> to vector<1x16xf32>
    %cst_71 = arith.constant 2.500000e-01 : f32
    %85 = vector.broadcast %cst_71 : f32 to vector<1x16xf32>
    %86 = arith.mulf %84, %85 : vector<1x16xf32>
    %c0_72 = arith.constant 0 : index
    %c0_73 = arith.constant 0 : index
    %c0_74 = arith.constant 0 : index
    %87 = vector.load %arg4[%c0_72, %c0_73, %c0_74] : memref<1x1x16xf32, #tpu.memory_space<vmem>>, vector<1x1x16xf32>
    %88 = vector.shape_cast %87 : vector<1x1x16xf32> to vector<1x16xf32>
    %89 = vector.shape_cast %86 : vector<1x16xf32> to vector<1x1x16xf32>
    tpu.vector_store %arg4[%c0_72, %c0_73, %c0_74], %89 {strides = array<i32>} : memref<1x1x16xf32, #tpu.memory_space<vmem>>, vector<1x1x16xf32>,
    return
  }
  func.func @transform_0(%arg0: i32) -> (i32, i32, i32, i32) {
    %c0_i32 = arith.constant 0 : i32
    %c0_i32_0 = arith.constant 0 : i32
    %c0_i32_1 = arith.constant 0 : i32
    %c0_i32_2 = arith.constant 0 : i32
    return %arg0, %c0_i32, %c0_i32_0, %c0_i32_1 : i32, i32, i32, i32
  }
  func.func @transform_1(%arg0: i32) -> (i32, i32, i32) {
    %c0_i32 = arith.constant 0 : i32
    %c0_i32_0 = arith.constant 0 : i32
    %c0_i32_1 = arith.constant 0 : i32
    %c0_i32_2 = arith.constant 0 : i32
    return %c0_i32, %c0_i32_0, %c0_i32_1 : i32, i32, i32
  }
  func.func @transform_2(%arg0: i32) -> (i32, i32) {
    %c0_i32 = arith.constant 0 : i32
    %c0_i32_0 = arith.constant 0 : i32
    %c0_i32_1 = arith.constant 0 : i32
    return %c0_i32, %c0_i32_0 : i32, i32
  }
  func.func @transform_3(%arg0: i32) -> (i32, i32, i32) {
    %c0_i32 = arith.constant 0 : i32
    %c0_i32_0 = arith.constant 0 : i32
    %c0_i32_1 = arith.constant 0 : i32
    return %arg0, %c0_i32, %c0_i32_0 : i32, i32, i32
  }
}

module attributes {stable_mosaic.version = 11 : i64} {
  func.func @_mm_bias_kernel(%arg0: i32, %arg1: memref<32x16xbf16, #tpu.memory_space<vmem>>, %arg2: memref<16x512xbf16, #tpu.memory_space<vmem>>, %arg3: memref<1x512xf32, #tpu.memory_space<vmem>>, %arg4: memref<32x512xf32, #tpu.memory_space<vmem>>) attributes {dimension_semantics = [#tpu.dimension_semantics<parallel>], iteration_bounds = array<i64: 1>, scalar_prefetch = 0 : i64, scratch_operands = 0 : i64, tpu.core_type = #tpu.core_type<tc>, window_params = [{transform_indices = @transform_0, window_bounds = array<i64: 32, 16>}, {pipeline_mode = #tpu.pipeline_mode<synchronous>, transform_indices = @transform_1, window_bounds = array<i64: 16, 512>}, {pipeline_mode = #tpu.pipeline_mode<synchronous>, transform_indices = @transform_2, window_bounds = array<i64: 1, 512>}, {transform_indices = @transform_3, window_bounds = array<i64: 32, 512>}]} {
    %c0 = arith.constant 0 : index
    %c0_0 = arith.constant 0 : index
    %0 = vector.load %arg1[%c0, %c0_0] : memref<32x16xbf16, #tpu.memory_space<vmem>>, vector<32x16xbf16>
    %c0_1 = arith.constant 0 : index
    %c0_2 = arith.constant 0 : index
    %1 = vector.load %arg2[%c0_1, %c0_2] : memref<16x512xbf16, #tpu.memory_space<vmem>>, vector<16x512xbf16>
    %cst = arith.constant dense<0.000000e+00> : vector<32x512xf32>
    %2 = tpu.matmul %0, %1, %cst {dimension_numbers = #tpu.dot_dimension_numbers<[1], [0], [0], [1], [0, 0, 1, 1], [], []>} : vector<32x16xbf16>, vector<16x512xbf16>, vector<32x512xf32> -> vector<32x512xf32>
    %c0_3 = arith.constant 0 : index
    %c0_4 = arith.constant 0 : index
    %3 = vector.load %arg3[%c0_3, %c0_4] : memref<1x512xf32, #tpu.memory_space<vmem>>, vector<1x512xf32>
    %4 = vector.broadcast %3 : vector<1x512xf32> to vector<32x512xf32>
    %5 = arith.addf %2, %4 : vector<32x512xf32>
    %c0_5 = arith.constant 0 : index
    %c0_6 = arith.constant 0 : index
    %6 = vector.load %arg4[%c0_5, %c0_6] : memref<32x512xf32, #tpu.memory_space<vmem>>, vector<32x512xf32>
    tpu.vector_store %arg4[%c0_5, %c0_6], %5 {strides = array<i32>} : memref<32x512xf32, #tpu.memory_space<vmem>>, vector<32x512xf32>,
    return
  }
  func.func @transform_0(%arg0: i32) -> (i32, i32) {
    %c0_i32 = arith.constant 0 : i32
    %c0_i32_0 = arith.constant 0 : i32
    return %arg0, %c0_i32 : i32, i32
  }
  func.func @transform_1(%arg0: i32) -> (i32, i32) {
    %c0_i32 = arith.constant 0 : i32
    %c0_i32_0 = arith.constant 0 : i32
    %c0_i32_1 = arith.constant 0 : i32
    return %c0_i32, %c0_i32_0 : i32, i32
  }
  func.func @transform_2(%arg0: i32) -> (i32, i32) {
    %c0_i32 = arith.constant 0 : i32
    %c0_i32_0 = arith.constant 0 : i32
    %c0_i32_1 = arith.constant 0 : i32
    return %c0_i32, %c0_i32_0 : i32, i32
  }
  func.func @transform_3(%arg0: i32) -> (i32, i32) {
    %c0_i32 = arith.constant 0 : i32
    %c0_i32_0 = arith.constant 0 : i32
    return %arg0, %c0_i32 : i32, i32
  }
}

module attributes {stable_mosaic.version = 11 : i64} {
  func.func @_lstm_fc_kernel(%arg0: i32, %arg1: memref<1x8x512xf32, #tpu.memory_space<vmem>>, %arg2: memref<128x512xf32, #tpu.memory_space<vmem>>, %arg3: memref<128x128xf32, #tpu.memory_space<vmem>>, %arg4: memref<1x128xf32, #tpu.memory_space<vmem>>, %arg5: memref<1x8x128xf32, #tpu.memory_space<vmem>>, %arg6: memref<8x128xf32, #tpu.memory_space<vmem>>, %arg7: memref<8x128xf32, #tpu.memory_space<vmem>>) attributes {dimension_semantics = [#tpu.dimension_semantics<arbitrary>], iteration_bounds = array<i64: 4>, scalar_prefetch = 0 : i64, scratch_operands = 2 : i64, tpu.core_type = #tpu.core_type<tc>, window_params = [{transform_indices = @transform_0, window_bounds = array<i64: 1, 8, 512>}, {pipeline_mode = #tpu.pipeline_mode<synchronous>, transform_indices = @transform_1, window_bounds = array<i64: 128, 512>}, {pipeline_mode = #tpu.pipeline_mode<synchronous>, transform_indices = @transform_2, window_bounds = array<i64: 128, 128>}, {pipeline_mode = #tpu.pipeline_mode<synchronous>, transform_indices = @transform_3, window_bounds = array<i64: 1, 128>}, {transform_indices = @transform_4, window_bounds = array<i64: 1, 8, 128>}]} {
    %c0_i32 = arith.constant 0 : i32
    %0 = arith.cmpi eq, %arg0, %c0_i32 : i32
    %1 = arith.extui %0 : i1 to i32
    %c0_i32_0 = arith.constant 0 : i32
    %2 = arith.cmpi ne, %1, %c0_i32_0 : i32
    scf.if %2 {
      %cst_24 = arith.constant 0.000000e+00 : f32
      %45 = vector.broadcast %cst_24 : f32 to vector<8x128xf32>
      %c0_25 = arith.constant 0 : index
      %c0_26 = arith.constant 0 : index
      %46 = vector.load %arg6[%c0_25, %c0_26] : memref<8x128xf32, #tpu.memory_space<vmem>>, vector<8x128xf32>
      tpu.vector_store %arg6[%c0_25, %c0_26], %45 {strides = array<i32>} : memref<8x128xf32, #tpu.memory_space<vmem>>, vector<8x128xf32>,
      %cst_27 = arith.constant 0.000000e+00 : f32
      %47 = vector.broadcast %cst_27 : f32 to vector<8x128xf32>
      %c0_28 = arith.constant 0 : index
      %c0_29 = arith.constant 0 : index
      %48 = vector.load %arg7[%c0_28, %c0_29] : memref<8x128xf32, #tpu.memory_space<vmem>>, vector<8x128xf32>
      tpu.vector_store %arg7[%c0_28, %c0_29], %47 {strides = array<i32>} : memref<8x128xf32, #tpu.memory_space<vmem>>, vector<8x128xf32>,
    } else {
    }
    %c0 = arith.constant 0 : index
    %c0_1 = arith.constant 0 : index
    %c0_2 = arith.constant 0 : index
    %3 = vector.load %arg1[%c0, %c0_1, %c0_2] : memref<1x8x512xf32, #tpu.memory_space<vmem>>, vector<1x8x512xf32>
    %4 = vector.shape_cast %3 : vector<1x8x512xf32> to vector<8x512xf32>
    %c0_3 = arith.constant 0 : index
    %c0_4 = arith.constant 0 : index
    %5 = vector.load %arg6[%c0_3, %c0_4] : memref<8x128xf32, #tpu.memory_space<vmem>>, vector<8x128xf32>
    %c0_5 = arith.constant 0 : index
    %c0_6 = arith.constant 0 : index
    %6 = vector.load %arg2[%c0_5, %c0_6] : memref<128x512xf32, #tpu.memory_space<vmem>>, vector<128x512xf32>
    %cst = arith.constant dense<0.000000e+00> : vector<8x512xf32>
    %7 = tpu.matmul %5, %6, %cst {dimension_numbers = #tpu.dot_dimension_numbers<[1], [0], [0], [1], [0, 0, 1, 1], [], []>} : vector<8x128xf32>, vector<128x512xf32>, vector<8x512xf32> -> vector<8x512xf32>
    %8 = arith.addf %4, %7 : vector<8x512xf32>
    %9 = vector.extract_strided_slice %8 {offsets = [0, 0], sizes = [8, 128], strides = [1, 1]} : vector<8x512xf32> to vector<8x128xf32>
    %10 = arith.negf %9 : vector<8x128xf32>
    %11 = math.exp %10 : vector<8x128xf32>
    %cst_7 = arith.constant 1.000000e+00 : f32
    %12 = vector.broadcast %cst_7 : f32 to vector<8x128xf32>
    %13 = arith.addf %12, %11 : vector<8x128xf32>
    %14 = arith.divf %12, %13 : vector<8x128xf32>
    %15 = vector.extract_strided_slice %8 {offsets = [0, 128], sizes = [8, 128], strides = [1, 1]} : vector<8x512xf32> to vector<8x128xf32>
    %16 = arith.negf %15 : vector<8x128xf32>
    %17 = math.exp %16 : vector<8x128xf32>
    %cst_8 = arith.constant 1.000000e+00 : f32
    %18 = vector.broadcast %cst_8 : f32 to vector<8x128xf32>
    %19 = arith.addf %18, %17 : vector<8x128xf32>
    %20 = arith.divf %18, %19 : vector<8x128xf32>
    %21 = vector.extract_strided_slice %8 {offsets = [0, 256], sizes = [8, 128], strides = [1, 1]} : vector<8x512xf32> to vector<8x128xf32>
    %22 = math.tanh %21 : vector<8x128xf32>
    %23 = vector.extract_strided_slice %8 {offsets = [0, 384], sizes = [8, 128], strides = [1, 1]} : vector<8x512xf32> to vector<8x128xf32>
    %24 = arith.negf %23 : vector<8x128xf32>
    %25 = math.exp %24 : vector<8x128xf32>
    %cst_9 = arith.constant 1.000000e+00 : f32
    %26 = vector.broadcast %cst_9 : f32 to vector<8x128xf32>
    %27 = arith.addf %26, %25 : vector<8x128xf32>
    %28 = arith.divf %26, %27 : vector<8x128xf32>
    %c0_10 = arith.constant 0 : index
    %c0_11 = arith.constant 0 : index
    %29 = vector.load %arg7[%c0_10, %c0_11] : memref<8x128xf32, #tpu.memory_space<vmem>>, vector<8x128xf32>
    %30 = arith.mulf %20, %29 : vector<8x128xf32>
    %31 = arith.mulf %14, %22 : vector<8x128xf32>
    %32 = arith.addf %30, %31 : vector<8x128xf32>
    %33 = math.tanh %32 : vector<8x128xf32>
    %34 = arith.mulf %28, %33 : vector<8x128xf32>
    %c0_12 = arith.constant 0 : index
    %c0_13 = arith.constant 0 : index
    %35 = vector.load %arg7[%c0_12, %c0_13] : memref<8x128xf32, #tpu.memory_space<vmem>>, vector<8x128xf32>
    tpu.vector_store %arg7[%c0_12, %c0_13], %32 {strides = array<i32>} : memref<8x128xf32, #tpu.memory_space<vmem>>, vector<8x128xf32>,
    %c0_14 = arith.constant 0 : index
    %c0_15 = arith.constant 0 : index
    %36 = vector.load %arg6[%c0_14, %c0_15] : memref<8x128xf32, #tpu.memory_space<vmem>>, vector<8x128xf32>
    tpu.vector_store %arg6[%c0_14, %c0_15], %34 {strides = array<i32>} : memref<8x128xf32, #tpu.memory_space<vmem>>, vector<8x128xf32>,
    %c0_16 = arith.constant 0 : index
    %c0_17 = arith.constant 0 : index
    %37 = vector.load %arg3[%c0_16, %c0_17] : memref<128x128xf32, #tpu.memory_space<vmem>>, vector<128x128xf32>
    %cst_18 = arith.constant dense<0.000000e+00> : vector<8x128xf32>
    %38 = tpu.matmul %34, %37, %cst_18 {dimension_numbers = #tpu.dot_dimension_numbers<[1], [0], [0], [1], [0, 0, 1, 1], [], []>} : vector<8x128xf32>, vector<128x128xf32>, vector<8x128xf32> -> vector<8x128xf32>
    %c0_19 = arith.constant 0 : index
    %c0_20 = arith.constant 0 : index
    %39 = vector.load %arg4[%c0_19, %c0_20] : memref<1x128xf32, #tpu.memory_space<vmem>>, vector<1x128xf32>
    %40 = vector.broadcast %39 : vector<1x128xf32> to vector<8x128xf32>
    %41 = arith.addf %38, %40 : vector<8x128xf32>
    %c0_21 = arith.constant 0 : index
    %c0_22 = arith.constant 0 : index
    %c0_23 = arith.constant 0 : index
    %42 = vector.load %arg5[%c0_21, %c0_22, %c0_23] : memref<1x8x128xf32, #tpu.memory_space<vmem>>, vector<1x8x128xf32>
    %43 = vector.shape_cast %42 : vector<1x8x128xf32> to vector<8x128xf32>
    %44 = vector.shape_cast %41 : vector<8x128xf32> to vector<1x8x128xf32>
    tpu.vector_store %arg5[%c0_21, %c0_22, %c0_23], %44 {strides = array<i32>} : memref<1x8x128xf32, #tpu.memory_space<vmem>>, vector<1x8x128xf32>,
    return
  }
  func.func @transform_0(%arg0: i32) -> (i32, i32, i32) {
    %c0_i32 = arith.constant 0 : i32
    %c0_i32_0 = arith.constant 0 : i32
    %c0_i32_1 = arith.constant 0 : i32
    return %arg0, %c0_i32, %c0_i32_0 : i32, i32, i32
  }
  func.func @transform_1(%arg0: i32) -> (i32, i32) {
    %c0_i32 = arith.constant 0 : i32
    %c0_i32_0 = arith.constant 0 : i32
    %c0_i32_1 = arith.constant 0 : i32
    return %c0_i32, %c0_i32_0 : i32, i32
  }
  func.func @transform_2(%arg0: i32) -> (i32, i32) {
    %c0_i32 = arith.constant 0 : i32
    %c0_i32_0 = arith.constant 0 : i32
    %c0_i32_1 = arith.constant 0 : i32
    return %c0_i32, %c0_i32_0 : i32, i32
  }
  func.func @transform_3(%arg0: i32) -> (i32, i32) {
    %c0_i32 = arith.constant 0 : i32
    %c0_i32_0 = arith.constant 0 : i32
    %c0_i32_1 = arith.constant 0 : i32
    return %c0_i32, %c0_i32_0 : i32, i32
  }
  func.func @transform_4(%arg0: i32) -> (i32, i32, i32) {
    %c0_i32 = arith.constant 0 : i32
    %c0_i32_0 = arith.constant 0 : i32
    %c0_i32_1 = arith.constant 0 : i32
    return %arg0, %c0_i32, %c0_i32_0 : i32, i32, i32
  }
}

</mosaic_0001>

<bundles_post_ra>
// kernel: cnn_lstm_forward.5
= control target key start
LH: loop header
LB: loop body
LE: loop exit
PB: predicated region body
PF: predicated region fallthrough
CT: control target
= control target key end

     0   :  { %s3248_s12 = smov 0   ;;  %s3917_s0 = inlined_call_operand.vmem [shape: bf16[8,6,144,16], index: 0, kind: input, shape index: {}]   ;;  %s3918_s1 = inlined_call_operand.vmem [shape: bf16[9,16,16], index: 1, kind: input, shape index: {}]   ;;  %s3919_s2 = inlined_call_operand.vmem [shape: f32[1,16], index: 2, kind: input, shape index: {}]   ;;  %s3920_s3 = inlined_call_operand.vmem [shape: bf16[8,132,16], index: 3, kind: output, shape index: {}]  }
   0x1 LB: > { %s2332_s13 = sadd.s32 4294967295, %s3224_s12   ;;  %p2336_p0 = scmp.ge.s32.totalorder %s3224_s12, 1  ;;  %s3224_s12 = sphi %s3248_s12, %s13_s12  }
   0x2   : > { %p137_p1 = scmp.lt.s32.totalorder %s3224_s12, 9 }
   0x4   : > { %p138_p2 = pnand %p2336_p0, %p137_p1 }
   0x5   : > { %v3128_v0 = vld [vmem:[%s3918_s1 + $0x8] sm:$0xff] (!%p138_p2)   ;;  %v3226_v1 = vmov (!%p138_p2), 0.0   ;;  %p161_p3 = scmp.lt.s32.totalorder (!%p138_p2), %s2332_s13, 7  ;;  %vm3227_vm0 = vmmov (!%p138_p2), 0   ;;  %v3131_v2 = vld [vmem:[%s3918_s1 + $0x10] sm:$0xff] (!%p138_p2)   ;;  %vm261_vm1 = vcmask (!%p138_p2), 130048  }
   0x6   : > { %141 = sbr.rel (%p138_p2) target bundleno = 559 (0x22f), region = 32  ;;  %2772 = vmatprep.subr.bf16.mxu0 (!%p138_p2), %v3226_v1  ;;  %3114 = vmatprep.subr.bf16.mxu1 (!%p138_p2), %v3226_v1  ;;  %v3132_v3 = vld [vmem:[%s3918_s1] sm:$0xff] (!%p138_p2)   ;;  %v3141_v14 = vld [vmem:[%s3918_s1 + $0x18] sm:$0xff] (!%p138_p2)   ;;  %v3161_v34 = vld [vmem:[%s3918_s1 + $0x28] sm:$0xff] (!%p138_p2)   ;;  %vm1508_vm2 = vcmask (!%p138_p2), 1045504   ;;  %vm2258_vm3 = vcmask (!%p138_p2), 125952  }
   0x7   : > { %2773 = vmatpush3.bf16.msra.mxu0 (!%p138_p2), %v3128_v0  ;;  %3115 = vmatpush3.bf16.msra.mxu1 (!%p138_p2), %v3128_v0  ;;  %v3144_v15 = vld [vmem:[%s3918_s1 + $0x20] sm:$0xff] (!%p138_p2)   ;;  %v3164_v37 = vld [vmem:[%s3918_s1 + $0x30] sm:$0xff] (!%p138_p2)   ;;  %v3181_v56 = vld [vmem:[%s3918_s1 + $0x38] sm:$0xff] (!%p138_p2)   ;;  %vm2275_vm4 = vcmask (!%p138_p2), 123904  }
   0x8   : > { %2774 = vmatprep.mubr.msk.bf16.mxu0 (!%p138_p2), %vm3227_vm0, %v3226_v1  ;;  %2794 = vmatprep.mubr.msk.bf16.mxu1 (!%p138_p2), %vm3227_vm0, %v3226_v1  ;;  %v3185_v61 = vld [vmem:[%s3918_s1 + $0x40] sm:$0xff] (!%p138_p2)  }
   0x9   : > { %2848 = vmatprep.subr.bf16.mxu0 (!%p138_p2), %v3226_v1  ;;  %2810 = vmatprep.subr.bf16.mxu1 (!%p138_p2), %v3226_v1 }
   0xd   : > { %s3922_s13 = smov (!%p161_p3, %s2332_s13), 7 }
   0xe   : > { %s3116_s16 = smul.u32 432, %s3922_s13 }
   0xf   : > { %s3117_s11 = smul.u32 68, %s3922_s13 }
  0x10   : > { %s3276_s21 = scalar_lea.vmem %s3917_s0, %s3116_s16 }
  0x11   : > { %v3129_v4 = vld [vmem:[%s3276_s21 + $0x48] sm:$0xff]   ;;  %v3130_v5 = vld [vmem:[%s3276_s21 + $0x70] sm:$0xff]   ;;  %v3134_v7 = vld [vmem:[%s3276_s21 + $0x78] sm:$0xff]   ;;  %s3851_s16 = scalar_lea.vmem %s3920_s3, %s3117_s11 }
  0x12   : > { %2775 = vmatmul.mubr.msk.bf16.vlgmr.msra.gmra.mrb[0].mxu0 %vm261_vm1, %v3129_v4  ;;  %2795 = vmatmul.mubr.msk.bf16.vlgmr.msra.gmra.mrb[0].mxu1 %vm261_vm1, %v3130_v5  ;;  %v3133_v6 = vld [vmem:[%s3276_s21 + $0x50] sm:$0xff]   ;;  %v3135_v8 = vld [vmem:[%s3276_s21 + $0x58] sm:$0xff]   ;;  %v3136_v9 = vld [vmem:[%s3276_s21 + $0x80] sm:$0xff]  }
  0x13   : > { %2849 = vmatpush3.bf16.msra.mxu0 %v3131_v2  ;;  %2811 = vmatpush3.bf16.msra.mxu1 %v3132_v3  ;;  %v3138_v10 = vld [vmem:[%s3276_s21 + $0x88] ss:$0 sps:$4 sm:$0x33]   ;;  %v3137_v11 = vld [vmem:[%s3276_s21 + $0x60] sm:$0xff]   ;;  %v3143_v16 = vld [vmem:[%s3276_s21 + $0x90] sm:$0xff]  }
  0x14   : > { %2778 = vmatprep.mubr.msk.bf16.mxu0 %vm3227_vm0, %v3226_v1  ;;  %2798 = vmatprep.mubr.msk.bf16.mxu1 %vm3227_vm0, %v3226_v1  ;;  %v3139_v12 = vld [vmem:[%s3276_s21 + $0x68] sm:$0xff]   ;;  %v3140_v13 = vld [vmem:[%s3276_s21] sm:$0xff]   ;;  %v3146_v18 = vld [vmem:[%s3276_s21 + $0x98] sm:$0xff]  }
  0x15   : > { %2886 = vmatprep.subr.bf16.mxu1 %v3226_v1  ;;  %2924 = vmatprep.subr.bf16.mxu0 %v3226_v1  ;;  %v3142_v17 = vld [vmem:[%s3276_s21 + $0x8] sm:$0xff]   ;;  %v3145_v19 = vld [vmem:[%s3276_s21 + $0x10] sm:$0xff]   ;;  %v3147_v20 = vld [vmem:[%s3276_s21 + $0x18] sm:$0xff]  }
  0x16   : > { %v3148_v21 = vld [vmem:[%s3276_s21 + $0xa0] sm:$0xff]   ;;  %v3150_v23 = vld [vmem:[%s3276_s21 + $0xa8] sm:$0xff]   ;;  %v3152_v24 = vld [vmem:[%s3276_s21 + $0xb0] sm:$0xff]  }
  0x17   : > { %v3149_v22 = vld [vmem:[%s3276_s21 + $0x20] sm:$0xff]   ;;  %v3151_v25 = vld [vmem:[%s3276_s21 + $0x28] sm:$0xff]   ;;  %v3154_v26 = vld [vmem:[%s3276_s21 + $0xb8] sm:$0xff]  }
  0x18   : > { %v3153_v27 = vld [vmem:[%s3276_s21 + $0x30] sm:$0xff]   ;;  %v3156_v28 = vld [vmem:[%s3276_s21 + $0xc0] sm:$0xff]   ;;  %v3155_v29 = vld [vmem:[%s3276_s21 + $0x38] sm:$0xff]  }
  0x19   : > { %v3158_v30 = vld [vmem:[%s3276_s21 + $0xc8] sm:$0xff]   ;;  %v3157_v31 = vld [vmem:[%s3276_s21 + $0x40] ss:$0 sps:$4 sm:$0x33]   ;;  %v3160_v33 = vld [vmem:[%s3276_s21 + $0xd8] sm:$0xff]  }
  0x1a   : > { %2779 = vmatmul.mubr.msk.bf16.gmra.mrb[4].mxu0 %vm261_vm1, %v3133_v6  ;;  %2799 = vmatmul.mubr.msk.bf16.gmra.mrb[4].mxu1 %vm261_vm1, %v3134_v7  ;;  %v3159_v32 = vld [vmem:[%s3276_s21 + $0xd0] ss:$0 sps:$4 sm:$0x33]   ;;  %v3163_v35 = vld [vmem:[%s3276_s21 + $0x120] sm:$0xff]   ;;  %v3166_v38 = vld [vmem:[%s3276_s21 + $0x128] sm:$0xff]  }
  0x1b   : > { %2782 = vmatprep.mubr.msk.bf16.mxu0 %vm3227_vm0, %v3226_v1  ;;  %2802 = vmatprep.mubr.msk.bf16.mxu1 %vm3227_vm0, %v3226_v1  ;;  %v3162_v36 = vld [vmem:[%s3276_s21 + $0xe0] sm:$0xff]   ;;  %v3165_v39 = vld [vmem:[%s3276_s21 + $0xe8] sm:$0xff]   ;;  %v3168_v40 = vld [vmem:[%s3276_s21 + $0x130] sm:$0xff]  }
  0x1c   : > { %v3167_v41 = vld [vmem:[%s3276_s21 + $0xf0] sm:$0xff]   ;;  %v3170_v42 = vld [vmem:[%s3276_s21 + $0x138] sm:$0xff]   ;;  %v3172_v44 = vld [vmem:[%s3276_s21 + $0x140] sm:$0xff]  }
  0x1d   : > { %v3169_v43 = vld [vmem:[%s3276_s21 + $0xf8] sm:$0xff]   ;;  %v3171_v45 = vld [vmem:[%s3276_s21 + $0x100] sm:$0xff]   ;;  %v3174_v46 = vld [vmem:[%s3276_s21 + $0x148] sm:$0xff]  }
  0x1e   : > { %v3173_v47 = vld [vmem:[%s3276_s21 + $0x108] sm:$0xff]   ;;  %v3176_v48 = vld [vmem:[%s3276_s21 + $0x150] sm:$0xff]   ;;  %v3178_v50 = vld [vmem:[%s3276_s21 + $0x158] sm:$0xff]  }
  0x1f   : > { %v3175_v49 = vld [vmem:[%s3276_s21 + $0x110] sm:$0xff]   ;;  %v3177_v51 = vld [vmem:[%s3276_s21 + $0x118] ss:$0 sps:$4 sm:$0x33]   ;;  %v3180_v53 = vld [vmem:[%s3276_s21 + $0x168] sm:$0xff]  }
  0x20   : > { %v3179_v52 = vld [vmem:[%s3276_s21 + $0x160] ss:$0 sps:$4 sm:$0x33]   ;;  %v3183_v54 = vld [vmem:[%s3276_s21 + $0x4] sm:$0xfc]   ;;  %v3184_v55 = vld [vmem:[%s3276_s21 + $0xc] sm:$0xff]  }
  0x21   : > { %v1509_v57 = vrot.slane %v3183_v54, 2  ;;  %v1510_v58 = vrot.slane %v3184_v55, 2  ;;  %v3182_v59 = vld [vmem:[%s3276_s21 + $0x170] sm:$0xff]   ;;  %v3186_v0 = vld [vmem:[%s3276_s21 + $0x178] sm:$0xff]   ;;  %v3188_v5 = vld [vmem:[%s3276_s21 + $0x180] sm:$0xff]  }
  0x22   : > { %2783 = vmatmul.mubr.msk.bf16.gmra.mrb[8].mxu0 %vm261_vm1, %v3135_v8  ;;  %2803 = vmatmul.mubr.msk.bf16.gmra.mrb[8].mxu1 %vm261_vm1, %v3136_v9  ;;  %v3187_v62 = vld [vmem:[%s3276_s21 + $0x14] sm:$0xff]   ;;  %v3189_v3 = vld [vmem:[%s3276_s21 + $0x1c] sm:$0xff]   ;;  %v3191_v7 = vld [vmem:[%s3276_s21 + $0x24] sm:$0xff]  }
  0x23   : > { %2786 = vmatprep.mubr.msk.bf16.mxu0 %vm3227_vm0, %v3226_v1  ;;  %2806 = vmatprep.mubr.msk.bf16.mxu1 %vm3227_vm0, %v3226_v1  ;;  %v1511_v60 = vsel %vm1508_vm2, %v1509_v57, %v1510_v58  ;;  %v1512_v63 = vrot.slane %v3187_v62, 2  ;;  %v1514_v4 = vrot.slane %v3189_v3, 2  ;;  %v1516_v8 = vrot.slane %v3191_v7, 2  ;;  %v3190_v9 = vld [vmem:[%s3276_s21 + $0x188] sm:$0xff]   ;;  %v3204_v7 = vld [vmem:[%s3276_s21 + $0x9c] sm:$0xff]  }
  0x24   : > { %v3198_v54 = vld [vmem:[%s3276_s21 + $0x1a8] ss:$0 sps:$4 sm:$0x33]  }
  0x25   : > { %v1513_v2 = vsel %vm1508_vm2, %v1510_v58, %v1512_v63  ;;  %v1515_v6 = vsel %vm1508_vm2, %v1512_v63, %v1514_v4  ;;  %v3200_v58 = vld [vmem:[%s3276_s21 + $0x4c] sm:$0xfc]  }
  0x2a   : > { %2787 = vmatmul.mubr.msk.bf16.gmra.mrb[12].mxu0 %vm261_vm1, %v3137_v11  ;;  %2807 = vmatmul.mubr.msk.bf16.gmra.mrb[12].mxu1 %vm261_vm1, %v3138_v10  ;;  %v1517_v10 = vsel %vm1508_vm2, %v1514_v4, %v1516_v8  ;;  %v3193_v11 = vld [vmem:[%s3276_s21 + $0x2c] sm:$0xff]  }
  0x2b   : > { %2790 = vmatprep.mubr.msk.bf16.mxu0 %vm3227_vm0, %v3226_v1  ;;  %2812 = vmatprep.mubr.msk.bf16.mxu1 %vm3227_vm0, %v3226_v1 }
  0x32   : > { %2791 = vmatmul.mubr.msk.bf16.gmra.mrb[16].mxu0 %vm261_vm1, %v3139_v12  ;;  %2813 = vmatmul.mubr.msk.bf16.vlgmr.msra.gmra.mrb[16].mxu1 %vm261_vm1, %v3140_v13  ;;  %v1518_v12 = vrot.slane %v3193_v11, 2  ;;  %v3202_v11 = vld [vmem:[%s3276_s21 + $0x5c] sm:$0xff]  }
  0x33   : > { %2850 = vmatprep.mubr.msk.bf16.mxu0 %vm3227_vm0, %v3226_v1  ;;  %2887 = vmatpush3.bf16.msra.mxu1 %v3141_v14 }
  0x34   : > { %2816 = vmatprep.mubr.msk.bf16.mxu1 %vm3227_vm0, %v3226_v1  ;;  %2962 = vmatprep.subr.bf16.mxu1 %v3226_v1 }
  0x3a   : > { %2851 = vmatmul.mubr.msk.bf16.vlgmr.msra.gmra.mrb[20].mxu0 %vm261_vm1, %v3143_v16  ;;  %2817 = vmatmul.mubr.msk.bf16.gmra.mrb[20].mxu1 %vm261_vm1, %v3142_v17 }
  0x3b   : > { %2925 = vmatpush3.bf16.msra.mxu0 %v3144_v15  ;;  %2820 = vmatprep.mubr.msk.bf16.mxu1 %vm3227_vm0, %v3226_v1 }
  0x3c   : > { %2854 = vmatprep.mubr.msk.bf16.mxu0 %vm3227_vm0, %v3226_v1  ;;  %3000 = vmatprep.subr.bf16.mxu0 %v3226_v1 }
  0x42   : > { %2855 = vmatmul.mubr.msk.bf16.gmra.mrb[24].mxu0 %vm261_vm1, %v3146_v18  ;;  %2821 = vmatmul.mubr.msk.bf16.gmra.mrb[24].mxu1 %vm261_vm1, %v3145_v19  ;;  %v3192_v18 = vld [vmem:[%s3276_s21 + $0x190] sm:$0xff]   ;;  %v1519_v19 = vsel %vm1508_vm2, %v1516_v8, %v1518_v12 }
  0x43   : > { %2858 = vmatprep.mubr.msk.bf16.mxu0 %vm3227_vm0, %v3226_v1  ;;  %2824 = vmatprep.mubr.msk.bf16.mxu1 %vm3227_vm0, %v3226_v1 }
  0x4a   : > { %2859 = vmatmul.mubr.msk.bf16.gmra.mrb[28].mxu0 %vm261_vm1, %v3148_v21  ;;  %2825 = vmatmul.mubr.msk.bf16.gmra.mrb[28].mxu1 %vm261_vm1, %v3147_v20  ;;  %v3195_v20 = vld [vmem:[%s3276_s21 + $0x34] sm:$0xff]  }
  0x4b   : > { %2862 = vmatprep.mubr.msk.bf16.mxu0 %vm3227_vm0, %v3226_v1  ;;  %2828 = vmatprep.mubr.msk.bf16.mxu1 %vm3227_vm0, %v3226_v1 }
  0x52   : > { %2863 = vmatmul.mubr.msk.bf16.gmra.mrb[32].mxu0 %vm261_vm1, %v3150_v23  ;;  %2829 = vmatmul.mubr.msk.bf16.gmra.mrb[32].mxu1 %vm261_vm1, %v3149_v22 }
  0x53   : > { %2866 = vmatprep.mubr.msk.bf16.mxu0 %vm3227_vm0, %v3226_v1  ;;  %2832 = vmatprep.mubr.msk.bf16.mxu1 %vm3227_vm0, %v3226_v1 }
  0x5a   : > { %2867 = vmatmul.mubr.msk.bf16.gmra.mrb[36].mxu0 %vm261_vm1, %v3152_v24  ;;  %2833 = vmatmul.mubr.msk.bf16.gmra.mrb[36].mxu1 %vm261_vm1, %v3151_v25  ;;  %v1520_v24 = vrot.slane %v3195_v20, 2 }
  0x5b   : > { %2870 = vmatprep.mubr.msk.bf16.mxu0 %vm3227_vm0, %v3226_v1  ;;  %2836 = vmatprep.mubr.msk.bf16.mxu1 %vm3227_vm0, %v3226_v1 }
  0x62   : > { %2871 = vmatmul.mubr.msk.bf16.gmra.mrb[40].mxu0 %vm261_vm1, %v3154_v26  ;;  %2837 = vmatmul.mubr.msk.bf16.gmra.mrb[40].mxu1 %vm261_vm1, %v3153_v27 }
  0x63   : > { %2874 = vmatprep.mubr.msk.bf16.mxu0 %vm3227_vm0, %v3226_v1  ;;  %2840 = vmatprep.mubr.msk.bf16.mxu1 %vm3227_vm0, %v3226_v1 }
  0x6a   : > { %2875 = vmatmul.mubr.msk.bf16.gmra.mrb[44].mxu0 %vm261_vm1, %v3156_v28  ;;  %2841 = vmatmul.mubr.msk.bf16.gmra.mrb[44].mxu1 %vm261_vm1, %v3155_v29 }
  0x6b   : > { %2878 = vmatprep.mubr.msk.bf16.mxu0 %vm3227_vm0, %v3226_v1  ;;  %2844 = vmatprep.mubr.msk.bf16.mxu1 %vm3227_vm0, %v3226_v1 }
  0x72   : > { %2879 = vmatmul.mubr.msk.bf16.gmra.mrb[48].mxu0 %vm261_vm1, %v3158_v30  ;;  %2845 = vmatmul.mubr.msk.bf16.gmra.mrb[48].mxu1 %vm261_vm1, %v3157_v31  ;;  %v3194_v30 = vld [vmem:[%s3276_s21 + $0x198] sm:$0xff]   ;;  %v1521_v31 = vsel %vm1508_vm2, %v1518_v12, %v1520_v24 }
  0x73   : > { %2882 = vmatprep.mubr.msk.bf16.mxu0 %vm3227_vm0, %v3226_v1  ;;  %2888 = vmatprep.mubr.msk.bf16.mxu1 %vm3227_vm0, %v3226_v1 }
  0x7a   : > { %2883 = vmatmul.mubr.msk.bf16.gmra.mrb[52].mxu0 %vm261_vm1, %v3159_v32  ;;  %2889 = vmatmul.mubr.msk.bf16.vlgmr.msra.gmra.mrb[52].mxu1 %vm261_vm1, %v3160_v33  ;;  %v3197_v32 = vld [vmem:[%s3276_s21 + $0x3c] sm:$0xff]  }
  0x7b   : > { %2926 = vmatprep.mubr.msk.bf16.mxu0 %vm3227_vm0, %v3226_v1  ;;  %2963 = vmatpush3.bf16.msra.mxu1 %v3161_v34 }
  0x7c   : > { %2892 = vmatprep.mubr.msk.bf16.mxu1 %vm3227_vm0, %v3226_v1  ;;  %3038 = vmatprep.subr.bf16.mxu1 %v3226_v1 }
  0x82   : > { %2927 = vmatmul.mubr.msk.bf16.vlgmr.msra.gmra.mrb[56].mxu0 %vm261_vm1, %v3163_v35  ;;  %2893 = vmatmul.mubr.msk.bf16.gmra.mrb[56].mxu1 %vm261_vm1, %v3162_v36  ;;  %v1522_v36 = vrot.slane %v3197_v32, 2 }
  0x83   : > { %3001 = vmatpush3.bf16.msra.mxu0 %v3164_v37  ;;  %2896 = vmatprep.mubr.msk.bf16.mxu1 %vm3227_vm0, %v3226_v1 }
  0x84   : > { %2930 = vmatprep.mubr.msk.bf16.mxu0 %vm3227_vm0, %v3226_v1  ;;  %3076 = vmatprep.subr.bf16.mxu0 %v3226_v1 }
  0x8a   : > { %2931 = vmatmul.mubr.msk.bf16.gmra.mrb[60].mxu0 %vm261_vm1, %v3166_v38  ;;  %2897 = vmatmul.mubr.msk.bf16.gmra.mrb[60].mxu1 %vm261_vm1, %v3165_v39 }
  0x8b   : > { %2934 = vmatprep.mubr.msk.bf16.mxu0 %vm3227_vm0, %v3226_v1  ;;  %2900 = vmatprep.mubr.msk.bf16.mxu1 %vm3227_vm0, %v3226_v1 }
  0x92   : > { %2935 = vmatmul.mubr.msk.bf16.gmra.mrb[64].mxu0 %vm261_vm1, %v3168_v40  ;;  %2901 = vmatmul.mubr.msk.bf16.gmra.mrb[64].mxu1 %vm261_vm1, %v3167_v41 }
  0x93   : > { %2938 = vmatprep.mubr.msk.bf16.mxu0 %vm3227_vm0, %v3226_v1  ;;  %2904 = vmatprep.mubr.msk.bf16.mxu1 %vm3227_vm0, %v3226_v1 }
  0x9a   : > { %2939 = vmatmul.mubr.msk.bf16.gmra.mrb[68].mxu0 %vm261_vm1, %v3170_v42  ;;  %2905 = vmatmul.mubr.msk.bf16.gmra.mrb[68].mxu1 %vm261_vm1, %v3169_v43  ;;  %v3196_v42 = vld [vmem:[%s3276_s21 + $0x1a0] sm:$0xff]   ;;  %v1523_v43 = vsel %vm1508_vm2, %v1520_v24, %v1522_v36 }
  0x9b   : > { %2942 = vmatprep.mubr.msk.bf16.mxu0 %vm3227_vm0, %v3226_v1  ;;  %2908 = vmatprep.mubr.msk.bf16.mxu1 %vm3227_vm0, %v3226_v1 }
  0xa2   : > { %2943 = vmatmul.mubr.msk.bf16.gmra.mrb[72].mxu0 %vm261_vm1, %v3172_v44  ;;  %2909 = vmatmul.mubr.msk.bf16.gmra.mrb[72].mxu1 %vm261_vm1, %v3171_v45  ;;  %v3199_v44 = vld [vmem:[%s3276_s21 + $0x44] ss:$0 sps:$4 sm:$0xff]  }
  0xa3   : > { %2946 = vmatprep.mubr.msk.bf16.mxu0 %vm3227_vm0, %v3226_v1  ;;  %2912 = vmatprep.mubr.msk.bf16.mxu1 %vm3227_vm0, %v3226_v1 }
  0xaa   : > { %2947 = vmatmul.mubr.msk.bf16.gmra.mrb[76].mxu0 %vm261_vm1, %v3174_v46  ;;  %2913 = vmatmul.mubr.msk.bf16.gmra.mrb[76].mxu1 %vm261_vm1, %v3173_v47 }
  0xab   : > { %2950 = vmatprep.mubr.msk.bf16.mxu0 %vm3227_vm0, %v3226_v1  ;;  %2916 = vmatprep.mubr.msk.bf16.mxu1 %vm3227_vm0, %v3226_v1 }
  0xb2   : > { %2951 = vmatmul.mubr.msk.bf16.gmra.mrb[80].mxu0 %vm261_vm1, %v3176_v48  ;;  %2917 = vmatmul.mubr.msk.bf16.gmra.mrb[80].mxu1 %vm261_vm1, %v3175_v49  ;;  %v1524_v48 = vrot.slane %v3199_v44, 2 }
  0xb3   : > { %2954 = vmatprep.mubr.msk.bf16.mxu0 %vm3227_vm0, %v3226_v1  ;;  %2920 = vmatprep.mubr.msk.bf16.mxu1 %vm3227_vm0, %v3226_v1 }
  0xb4   : > { %v1525_v55 = vsel %vm1508_vm2, %v1522_v36, %v1524_v48  ;;  %v3205_v36 = vld [vmem:[%s3276_s21 + $0x64] sm:$0xff]  }
  0xba   : > { %2955 = vmatmul.mubr.msk.bf16.gmra.mrb[84].mxu0 %vm261_vm1, %v3178_v50  ;;  %2921 = vmatmul.mubr.msk.bf16.gmra.mrb[84].mxu1 %vm261_vm1, %v3177_v51 }
  0xbb   : > { %2958 = vmatprep.mubr.msk.bf16.mxu0 %vm3227_vm0, %v3226_v1  ;;  %2964 = vmatprep.mubr.msk.bf16.mxu1 %vm3227_vm0, %v3226_v1 }
  0xc2   : > { %2959 = vmatmul.mubr.msk.bf16.gmra.mrb[88].mxu0 %vm261_vm1, %v3179_v52  ;;  %2965 = vmatmul.mubr.msk.bf16.vlgmr.msra.gmra.mrb[88].mxu1 %vm261_vm1, %v3180_v53 }
  0xc3   : > { %3002 = vmatprep.mubr.msk.bf16.mxu0 %vm3227_vm0, %v3226_v1  ;;  %3039 = vmatpush3.bf16.msra.mxu1 %v3181_v56 }
  0xc4   : > { %2968 = vmatprep.mubr.msk.bf16.mxu1 %vm3227_vm0, %v3226_v1 }
  0xca   : > { %3003 = vmatmul.mubr.msk.bf16.vlgmr.msra.gmra.mrb[92].mxu0 %vm261_vm1, %v1511_v60  ;;  %2969 = vmatmul.mubr.msk.bf16.gmra.mrb[92].mxu1 %vm261_vm1, %v3182_v59  ;;  %v3201_v59 = vld [vmem:[%s3276_s21 + $0x54] sm:$0xff]  }
  0xcb   : > { %3077 = vmatpush3.bf16.msra.mxu0 %v3185_v61  ;;  %2972 = vmatprep.mubr.msk.bf16.mxu1 %vm3227_vm0, %v3226_v1  ;;  %v1743_v61 = vrot.slane %v3200_v58, 2  ;;  %v1744_v62 = vrot.slane %v3201_v59, 2  ;;  %v3207_v59 = vld [vmem:[%s3276_s21 + $0x6c] sm:$0xff]  }
  0xcc   : > { %3006 = vmatprep.mubr.msk.bf16.mxu0 %vm3227_vm0, %v3226_v1 }
  0xd2   : > { %3007 = vmatmul.mubr.msk.bf16.gmra.mrb[96].mxu0 %vm261_vm1, %v1513_v2  ;;  %2973 = vmatmul.mubr.msk.bf16.gmra.mrb[96].mxu1 %vm261_vm1, %v3186_v0 }
  0xd3   : > { %3010 = vmatprep.mubr.msk.bf16.mxu0 %vm3227_vm0, %v3226_v1  ;;  %2976 = vmatprep.mubr.msk.bf16.mxu1 %vm3227_vm0, %v3226_v1 }
  0xda   : > { %3011 = vmatmul.mubr.msk.bf16.gmra.mrb[100].mxu0 %vm261_vm1, %v1515_v6  ;;  %2977 = vmatmul.mubr.msk.bf16.gmra.mrb[100].mxu1 %vm261_vm1, %v3188_v5  ;;  %v3203_v6 = vld [vmem:[%s3276_s21 + $0x94] sm:$0xfc]  }
  0xdb   : > { %3014 = vmatprep.mubr.msk.bf16.mxu0 %vm3227_vm0, %v3226_v1  ;;  %2980 = vmatprep.mubr.msk.bf16.mxu1 %vm3227_vm0, %v3226_v1 }
  0xe2   : > { %3015 = vmatmul.mubr.msk.bf16.gmra.mrb[104].mxu0 %vm261_vm1, %v1517_v10  ;;  %2981 = vmatmul.mubr.msk.bf16.gmra.mrb[104].mxu1 %vm261_vm1, %v3190_v9  ;;  %v1745_v10 = vsel %vm1508_vm2, %v1743_v61, %v1744_v62 }
  0xe3   : > { %3018 = vmatprep.mubr.msk.bf16.mxu0 %vm3227_vm0, %v3226_v1  ;;  %2984 = vmatprep.mubr.msk.bf16.mxu1 %vm3227_vm0, %v3226_v1 }
  0xe5   : > { %v3527_v13 = vpop.f32.mrb[0].mxu0  ;;  %v3529_v15 = vpop.f32.mrb[0].mxu1 }
  0xe6   : > { %v2776_v14 = vpop.f32.mrb[1].mxu0  ;;  %v2796_v17 = vpop.f32.mrb[1].mxu1 }
  0xe7   : > { %v3531_v16 = vpop.f32.mrb[2].mxu0  ;;  %v3536_v22 = vpop.f32.mrb[2].mxu1  ;;  %v1978_v17 = vrot.slane %v3204_v7, 2 }
  0xe8   : > { %v2777_v21 = vpop.f32.mrb[3].mxu0  ;;  %v2797_v23 = vpop.f32.mrb[3].mxu1 }
  0xea   : > { %3019 = vmatmul.mubr.msk.bf16.gmra.mrb[108].mxu0 %vm261_vm1, %v1519_v19  ;;  %2985 = vmatmul.mubr.msk.bf16.gmra.mrb[108].mxu1 %vm261_vm1, %v3192_v18  ;;  %v1746_v18 = vrot.slane %v3202_v11, 2 }
  0xeb   : > { %3022 = vmatprep.mubr.msk.bf16.mxu0 %vm3227_vm0, %v3226_v1  ;;  %2988 = vmatprep.mubr.msk.bf16.mxu1 %vm3227_vm0, %v3226_v1 }
  0xed   : > { %v3544_v25 = vpop.f32.mrb[4].mxu0  ;;  %v3546_v27 = vpop.f32.mrb[4].mxu1 }
  0xee   : > { %v2780_v26 = vpop.f32.mrb[5].mxu0  ;;  %v2800_v29 = vpop.f32.mrb[5].mxu1 }
  0xef   : > { %v3548_v28 = vpop.f32.mrb[6].mxu0  ;;  %v3553_v34 = vpop.f32.mrb[6].mxu1 }
  0xf0   : > { %v2781_v33 = vpop.f32.mrb[7].mxu0  ;;  %v2801_v35 = vpop.f32.mrb[7].mxu1 }
  0xf1   : > { %v1747_v35 = vsel %vm1508_vm2, %v1744_v62, %v1746_v18  ;;  %v1750_v62 = vrot.slane %v3207_v59, 2 }
  0xf2   : > { %3023 = vmatmul.mubr.msk.bf16.gmra.mrb[112].mxu0 %vm261_vm1, %v1521_v31  ;;  %2989 = vmatmul.mubr.msk.bf16.gmra.mrb[112].mxu1 %vm261_vm1, %v3194_v30  ;;  %v3206_v30 = vld [vmem:[%s3276_s21 + $0xa4] sm:$0xff]  }
  0xf3   : > { %3026 = vmatprep.mubr.msk.bf16.mxu0 %vm3227_vm0, %v3226_v1  ;;  %2992 = vmatprep.mubr.msk.bf16.mxu1 %vm3227_vm0, %v3226_v1 }
  0xf5   : > { %v3561_v37 = vpop.f32.mrb[8].mxu0  ;;  %v3563_v39 = vpop.f32.mrb[8].mxu1 }
  0xf6   : > { %v2784_v38 = vpop.f32.mrb[9].mxu0  ;;  %v2804_v41 = vpop.f32.mrb[9].mxu1 }
  0xf7   : > { %v3565_v40 = vpop.f32.mrb[10].mxu0  ;;  %v3570_v46 = vpop.f32.mrb[10].mxu1 }
  0xf8   : > { %v2785_v45 = vpop.f32.mrb[11].mxu0  ;;  %v2805_v47 = vpop.f32.mrb[11].mxu1 }
  0xfa   : > { %3027 = vmatmul.mubr.msk.bf16.gmra.mrb[116].mxu0 %vm261_vm1, %v1523_v43  ;;  %2993 = vmatmul.mubr.msk.bf16.gmra.mrb[116].mxu1 %vm261_vm1, %v3196_v42  ;;  %v1748_v42 = vrot.slane %v3205_v36, 2 }
  0xfb   : > { %3030 = vmatprep.mubr.msk.bf16.mxu0 %vm3227_vm0, %v3226_v1  ;;  %2996 = vmatprep.mubr.msk.bf16.mxu1 %vm3227_vm0, %v3226_v1 }
  0xfc   : > { %v1749_v58 = vsel %vm1508_vm2, %v1746_v18, %v1748_v42 }
  0xfd   : > { %v3578_v49 = vpop.f32.mrb[12].mxu0  ;;  %v3580_v51 = vpop.f32.mrb[12].mxu1 }
  0xfe   : > { %v2788_v50 = vpop.f32.mrb[13].mxu0  ;;  %v2808_v53 = vpop.f32.mrb[13].mxu1 }
  0xff   : > { %v3582_v52 = vpop.f32.mrb[14].mxu0  ;;  %v390_v57 = vpop.f32.mrb[14].mxu1 }
 0x100   : > { %v2789_v56 = vpop.f32.mrb[15].mxu0  ;;  %v2809_v60 = vpop.f32.mrb[15].mxu1 }
 0x102   : > { %3031 = vmatmul.mubr.msk.bf16.gmra.mrb[120].mxu0 %vm261_vm1, %v1525_v55  ;;  %2997 = vmatmul.mubr.msk.bf16.gmra.mrb[120].mxu1 %vm261_vm1, %v3198_v54  ;;  %v3208_v54 = vld [vmem:[%s3276_s21 + $0xac] sm:$0xff]  }
 0x103   : > { %3034 = vmatprep.mubr.msk.bf16.mxu0 %vm3227_vm0, %v3226_v1  ;;  %3040 = vmatprep.mubr.msk.bf16.mxu1 %vm3227_vm0, %v3226_v1 }
 0x105   : > { %v3594_v63 = vpop.f32.mrb[16].mxu0  ;;  %v503_v0 = vpop.f32.mrb[16].mxu1 }
 0x106   : > { %v2792_v2 = vpop.f32.mrb[17].mxu0  ;;  %v504_v3 = vadd.f32 %v503_v0, %v3527_v13  ;;  %v2814_v4 = vpop.f32.mrb[17].mxu1  ;;  %v1977_v13 = vrot.slane %v3203_v6, 2 }
 0x107   : > { %v3597_v5 = vpop.f32.mrb[18].mxu0  ;;  %v506_v8 = vpop.f32.mrb[18].mxu1 }
 0x108   : > { %v2793_v9 = vpop.f32.mrb[19].mxu0  ;;  %v507_v12 = vadd.f32 %v506_v8, %v3531_v16  ;;  %v2815_v14 = vpop.f32.mrb[19].mxu1  ;;  %v1979_v29 = vsel %vm1508_vm2, %v1977_v13, %v1978_v17  ;;  %v3209_v13 = vld [vmem:[%s3276_s21 + $0x74] sm:$0xff]  }
 0x109   : > { %v3210_v9 = vld [vmem:[%s3276_s21 + $0xb4] sm:$0xff]   ;;  %v1751_v14 = vsel %vm1508_vm2, %v1748_v42, %v1750_v62 }
 0x10a   : > { %3035 = vmatmul.mubr.msk.bf16.gmra.mrb[124].mxu0 %vm261_vm1, %v1524_v48  ;;  %3041 = vmatmul.mubr.msk.bf16.vlgmr.msra.gmra.mrb[124].mxu1 %vm261_vm1, %v1745_v10 }
 0x10b   : > { %3078 = vmatprep.mubr.msk.bf16.mxu0 %vm3227_vm0, %v3226_v1  ;;  %3044 = vmatprep.mubr.msk.bf16.mxu1 %vm3227_vm0, %v3226_v1 }
 0x10d   : > { %v704_v19 = vpop.f32.mrb[20].mxu0  ;;  %v511_v20 = vpop.f32.mrb[20].mxu1 }
 0x10e   : > { %v3610_v21 = vadd.f32 %v704_v19, %v504_v3  ;;  %v2852_v16 = vpop.f32.mrb[21].mxu0  ;;  %v512_v23 = vadd.f32 %v511_v20, %v3544_v25  ;;  %v2818_v24 = vpop.f32.mrb[21].mxu1  ;;  %v1980_v25 = vrot.slane %v3206_v30, 2  ;;  %v1752_v19 = vrot.slane %v3209_v13, 2 }
 0x10f   : > { %v707_v26 = vpop.f32.mrb[22].mxu0  ;;  %v514_v31 = vpop.f32.mrb[22].mxu1 }
 0x110   : > { %v3615_v32 = vadd.f32 %v707_v26, %v507_v12  ;;  %v2853_v33 = vpop.f32.mrb[23].mxu0  ;;  %v515_v38 = vadd.f32 %v514_v31, %v3548_v28  ;;  %v2819_v41 = vpop.f32.mrb[23].mxu1  ;;  %v1981_v53 = vsel %vm1508_vm2, %v1978_v17, %v1980_v25  ;;  %v3212_v31 = vld [vmem:[%s3276_s21 + $0xbc] sm:$0xff]  }
 0x111   : > { %v3211_v41 = vld [vmem:[%s3276_s21 + $0x7c] sm:$0xff]  }
 0x112   : > { %3079 = vmatmul.mubr.msk.bf16.vlgmr.msra.gmra.mrb[128].mxu0 %vm261_vm1, %v1979_v29  ;;  %3045 = vmatmul.mubr.msk.bf16.gmra.mrb[128].mxu1 %vm261_vm1, %v1747_v35 }
 0x113   : > { %3082 = vmatprep.mubr.msk.bf16.mxu0 %vm3227_vm0, %v3226_v1  ;;  %3048 = vmatprep.mubr.msk.bf16.mxu1 %vm3227_vm0, %v3226_v1 }
 0x115   : > { %v712_v43 = vpop.f32.mrb[24].mxu0  ;;  %v519_v44 = vpop.f32.mrb[24].mxu1 }
 0x116   : > { %v3626_v45 = vadd.f32 %v712_v43, %v512_v23  ;;  %v2856_v28 = vpop.f32.mrb[25].mxu0  ;;  %v520_v47 = vadd.f32 %v519_v44, %v3561_v37  ;;  %v2822_v48 = vpop.f32.mrb[25].mxu1  ;;  %v1982_v37 = vrot.slane %v3208_v54, 2  ;;  %v1754_v43 = vrot.slane %v3211_v41, 2 }
 0x117   : > { %v715_v50 = vpop.f32.mrb[26].mxu0  ;;  %v522_v55 = vpop.f32.mrb[26].mxu1 }
 0x118   : > { %v3631_v56 = vadd.f32 %v715_v50, %v515_v38  ;;  %v2857_v57 = vpop.f32.mrb[27].mxu0  ;;  %v523_v60 = vadd.f32 %v522_v55, %v3565_v40  ;;  %v2823_v61 = vpop.f32.mrb[27].mxu1  ;;  %v1983_v8 = vsel %vm1508_vm2, %v1980_v25, %v1982_v37  ;;  %v1753_v38 = vsel %vm1508_vm2, %v1750_v62, %v1752_v19  ;;  %v3214_v55 = vld [vmem:[%s3276_s21 + $0xc4] sm:$0xff]  }
 0x119   : > { %v3213_v61 = vld [vmem:[%s3276_s21 + $0x84] sm:$0xff]  }
 0x11a   : > { %3083 = vmatmul.mubr.msk.bf16.gmra.mrb[132].mxu0 %vm261_vm1, %v1981_v53  ;;  %3049 = vmatmul.mubr.msk.bf16.gmra.mrb[132].mxu1 %vm261_vm1, %v1749_v58 }
 0x11b   : > { %3086 = vmatprep.mubr.msk.bf16.mxu0 %vm3227_vm0, %v3226_v1  ;;  %3052 = vmatprep.mubr.msk.bf16.mxu1 %vm3227_vm0, %v3226_v1 }
 0x11d   : > { %v720_v0 = vpop.f32.mrb[28].mxu0  ;;  %v527_v2 = vpop.f32.mrb[28].mxu1 }
 0x11e   : > { %v3642_v3 = vadd.f32 %v720_v0, %v520_v47  ;;  %v2860_v40 = vpop.f32.mrb[29].mxu0  ;;  %v528_v4 = vadd.f32 %v527_v2, %v3578_v49  ;;  %v2826_v6 = vpop.f32.mrb[29].mxu1  ;;  %v1984_v49 = vrot.slane %v3210_v9, 2  ;;  %v1756_v0 = vrot.slane %v3213_v61, 2 }
 0x11f   : > { %v723_v7 = vpop.f32.mrb[30].mxu0  ;;  %v530_v10 = vpop.f32.mrb[30].mxu1 }
 0x120   : > { %v3647_v11 = vadd.f32 %v723_v7, %v523_v60  ;;  %v2861_v12 = vpop.f32.mrb[31].mxu0  ;;  %v531_v17 = vadd.f32 %v530_v10, %v3582_v52  ;;  %v2827_v18 = vpop.f32.mrb[31].mxu1  ;;  %v1985_v30 = vsel %vm1508_vm2, %v1982_v37, %v1984_v49  ;;  %v1755_v60 = vsel %vm1508_vm2, %v1752_v19, %v1754_v43  ;;  %v3216_v10 = vld [vmem:[%s3276_s21 + $0xcc] sm:$0xff]  }
 0x121   : > { %v3215_v18 = vld [vmem:[%s3276_s21 + $0x8c] ss:$0 sps:$4 sm:$0xff]  }
 0x122   : > { %3087 = vmatmul.mubr.msk.bf16.gmra.mrb[136].mxu0 %vm261_vm1, %v1983_v8  ;;  %3053 = vmatmul.mubr.msk.bf16.gmra.mrb[136].mxu1 %vm261_vm1, %v1751_v14 }
 0x123   : > { %3090 = vmatprep.mubr.msk.bf16.mxu0 %vm3227_vm0, %v3226_v1  ;;  %3056 = vmatprep.mubr.msk.bf16.mxu1 %vm3227_vm0, %v3226_v1 }
 0x125   : > { %v728_v20 = vpop.f32.mrb[32].mxu0  ;;  %v535_v16 = vpop.f32.mrb[32].mxu1 }
 0x126   : > { %v3658_v23 = vadd.f32 %v728_v20, %v528_v4  ;;  %v2864_v52 = vpop.f32.mrb[33].mxu0  ;;  %v536_v24 = vadd.f32 %v535_v16, %v3594_v63  ;;  %v2830_v26 = vpop.f32.mrb[33].mxu1  ;;  %v1986_v63 = vrot.slane %v3212_v31, 2  ;;  %v1758_v20 = vrot.slane %v3215_v18, 2 }
 0x127   : > { %v731_v29 = vpop.f32.mrb[34].mxu0  ;;  %v538_v33 = vpop.f32.mrb[34].mxu1 }
 0x128   : > { %v3663_v35 = vadd.f32 %v731_v29, %v531_v17  ;;  %v2865_v36 = vpop.f32.mrb[35].mxu0  ;;  %v539_v25 = vadd.f32 %v538_v33, %v3597_v5  ;;  %v2831_v42 = vpop.f32.mrb[35].mxu1  ;;  %v1987_v54 = vsel %vm1508_vm2, %v1984_v49, %v1986_v63  ;;  %v1757_v17 = vsel %vm1508_vm2, %v1754_v43, %v1756_v0  ;;  %v3217_v33 = vld [vmem:[%s3276_s21 + $0xd4] ss:$0 sps:$4 sm:$0xff]  }
 0x12a   : > { %3091 = vmatmul.mubr.msk.bf16.gmra.mrb[140].mxu0 %vm261_vm1, %v1985_v30  ;;  %3057 = vmatmul.mubr.msk.bf16.gmra.mrb[140].mxu1 %vm261_vm1, %v1753_v38 }
 0x12b   : > { %3094 = vmatprep.mubr.msk.bf16.mxu0 %vm3227_vm0, %v3226_v1  ;;  %3060 = vmatprep.mubr.msk.bf16.mxu1 %vm3227_vm0, %v3226_v1 }
 0x12d   : > { %v736_v44 = vpop.f32.mrb[36].mxu0  ;;  %v543_v28 = vpop.f32.mrb[36].mxu1 }
 0x12e   : > { %v3674_v47 = vadd.f32 %v736_v44, %v536_v24  ;;  %v2868_v5 = vpop.f32.mrb[37].mxu0  ;;  %v544_v48 = vadd.f32 %v543_v28, %v3529_v15  ;;  %v2834_v50 = vpop.f32.mrb[37].mxu1  ;;  %v1988_v15 = vrot.slane %v3214_v55, 2 }
 0x12f   : > { %v739_v53 = vpop.f32.mrb[38].mxu0  ;;  %v546_v57 = vpop.f32.mrb[38].mxu1 }
 0x130   : > { %v3679_v58 = vadd.f32 %v739_v53, %v539_v25  ;;  %v2869_v59 = vpop.f32.mrb[39].mxu0  ;;  %v547_v37 = vadd.f32 %v546_v57, %v3536_v22  ;;  %v2835_v62 = vpop.f32.mrb[39].mxu1  ;;  %v1989_v9 = vsel %vm1508_vm2, %v1986_v63, %v1988_v15  ;;  %v1759_v25 = vsel %vm1508_vm2, %v1756_v0, %v1758_v20 }
 0x132   : > { %3095 = vmatmul.mubr.msk.bf16.gmra.mrb[144].mxu0 %vm261_vm1, %v1987_v54  ;;  %3061 = vmatmul.mubr.msk.bf16.gmra.mrb[144].mxu1 %vm261_vm1, %v1755_v60 }
 0x133   : > { %3098 = vmatprep.mubr.msk.bf16.mxu0 %vm3227_vm0, %v3226_v1  ;;  %3064 = vmatprep.mubr.msk.bf16.mxu1 %vm3227_vm0, %v3226_v1 }
 0x135   : > { %v744_v2 = vpop.f32.mrb[40].mxu0  ;;  %v551_v40 = vpop.f32.mrb[40].mxu1 }
 0x136   : > { %v3690_v4 = vadd.f32 %v744_v2, %v544_v48  ;;  %v2872_v22 = vpop.f32.mrb[41].mxu0  ;;  %v552_v6 = vadd.f32 %v551_v40, %v3546_v27  ;;  %v2838_v7 = vpop.f32.mrb[41].mxu1  ;;  %v1990_v27 = vrot.slane %v3216_v10, 2 }
 0x137   : > { %v747_v8 = vpop.f32.mrb[42].mxu0  ;;  %v554_v12 = vpop.f32.mrb[42].mxu1 }
 0x138   : > { %v3695_v14 = vadd.f32 %v747_v8, %v547_v37  ;;  %v2873_v13 = vpop.f32.mrb[43].mxu0  ;;  %v555_v49 = vadd.f32 %v554_v12, %v3553_v34  ;;  %v2839_v19 = vpop.f32.mrb[43].mxu1  ;;  %v1991_v31 = vsel %vm1508_vm2, %v1988_v15, %v1990_v27 }
 0x13a   : > { %3099 = vmatmul.mubr.msk.bf16.gmra.mrb[148].mxu0 %vm261_vm1, %v1989_v9  ;;  %3065 = vmatmul.mubr.msk.bf16.gmra.mrb[148].mxu1 %vm261_vm1, %v1757_v17 }
 0x13b   : > { %3102 = vmatprep.mubr.msk.bf16.mxu0 %vm3227_vm0, %v3226_v1  ;;  %3068 = vmatprep.mubr.msk.bf16.mxu1 %vm3227_vm0, %v3226_v1 }
 0x13d   : > { %v752_v16 = vpop.f32.mrb[44].mxu0  ;;  %v559_v52 = vpop.f32.mrb[44].mxu1 }
 0x13e   : > { %v3706_v24 = vadd.f32 %v752_v16, %v552_v6  ;;  %v2876_v26 = vpop.f32.mrb[45].mxu0  ;;  %v560_v34 = vadd.f32 %v559_v52, %v3563_v39  ;;  %v2842_v29 = vpop.f32.mrb[45].mxu1  ;;  %v1992_v39 = vrot.slane %v3217_v33, 2 }
 0x13f   : > { %v755_v30 = vpop.f32.mrb[46].mxu0  ;;  %v562_v36 = vpop.f32.mrb[46].mxu1 }
 0x140   : > { %v3711_v38 = vadd.f32 %v755_v30, %v555_v49  ;;  %v2877_v41 = vpop.f32.mrb[47].mxu0  ;;  %v563_v42 = vadd.f32 %v562_v36, %v3570_v46  ;;  %v2843_v63 = vpop.f32.mrb[47].mxu1  ;;  %v1993_v53 = vsel %vm1508_vm2, %v1990_v27, %v1992_v39 }
 0x142   : > { %3103 = vmatmul.mubr.msk.bf16.gmra.mrb[152].mxu0 %vm261_vm1, %v1991_v31  ;;  %3069 = vmatmul.mubr.msk.bf16.gmra.mrb[152].mxu1 %vm261_vm1, %v1759_v25 }
 0x143   : > { %3106 = vmatprep.mubr.msk.bf16.mxu0 %vm3227_vm0, %v3226_v1  ;;  %3072 = vmatprep.mubr.msk.bf16.mxu1 %vm3227_vm0, %v3226_v1 }
 0x145   : > { %v760_v43 = vpop.f32.mrb[48].mxu0  ;;  %v567_v44 = vpop.f32.mrb[48].mxu1 }
 0x146   : > { %v3721_v28 = vadd.f32 %v760_v43, %v560_v34  ;;  %v2880_v5 = vpop.f32.mrb[49].mxu0  ;;  %v568_v48 = vadd.f32 %v567_v44, %v3580_v51  ;;  %v2846_v50 = vpop.f32.mrb[49].mxu1 }
 0x147   : > { %v763_v46 = vpop.f32.mrb[50].mxu0  ;;  %v570_v57 = vpop.f32.mrb[50].mxu1 }
 0x148   : > { %v3725_v54 = vadd.f32 %v763_v46, %v563_v42  ;;  %v2881_v55 = vpop.f32.mrb[51].mxu0  ;;  %v2847_v59 = vpop.f32.mrb[51].mxu1 }
 0x14a   : > { %3107 = vmatmul.mubr.msk.bf16.gmra.mrb[156].mxu0 %vm261_vm1, %v1993_v53  ;;  %3073 = vmatmul.mubr.msk.bf16.gmra.mrb[156].mxu1 %vm261_vm1, %v1758_v20 }
 0x14b   : > { %3110 = vmatprep.mubr.msk.bf16.mxu0 %vm3227_vm0, %v3226_v1 }
 0x14d   : > { %v768_v60 = vpop.f32.mrb[52].mxu0  ;;  %v922_v51 = vpop.f32.mrb[52].mxu1 }
 0x14e   : > { %v3731_v61 = vadd.f32 %v768_v60, %v568_v48  ;;  %v2884_v37 = vpop.f32.mrb[53].mxu0  ;;  %v992_v62 = vadd.f32 %v922_v51, %v3610_v21  ;;  %v2890_v15 = vpop.f32.mrb[53].mxu1 }
 0x14f   : > { %v771_v0 = vpop.f32.mrb[54].mxu0  ;;  %v925_v2 = vpop.f32.mrb[54].mxu1 }
 0x150   : > { %v2885_v40 = vpop.f32.mrb[55].mxu0  ;;  %v993_v22 = vadd.f32 %v925_v2, %v3615_v32  ;;  %v2891_v6 = vpop.f32.mrb[55].mxu1 }
 0x152   : > { %3111 = vmatmul.mubr.msk.bf16.gmra.mrb[160].mxu0 %vm261_vm1, %v1992_v39 }
 0x155   : > { %v1140_v7 = vpop.f32.mrb[56].mxu0  ;;  %v930_v8 = vpop.f32.mrb[56].mxu1 }
 0x156   : > { %v3736_v9 = vadd.f32 %v1140_v7, %v992_v62  ;;  %v2928_v1 = vpop.f32.mrb[57].mxu0  ;;  %v994_v10 = vadd.f32 %v930_v8, %v3626_v45  ;;  %v2894_v12 = vpop.f32.mrb[57].mxu1 }
 0x157   : > { %v1143_v13 = vpop.f32.mrb[58].mxu0  ;;  %v933_v17 = vpop.f32.mrb[58].mxu1 }
 0x158   : > { %v3739_v21 = vadd.f32 %v1143_v13, %v993_v22  ;;  %v2929_v18 = vpop.f32.mrb[59].mxu0  ;;  %v995_v49 = vadd.f32 %v933_v17, %v3631_v56  ;;  %v2895_v19 = vpop.f32.mrb[59].mxu1 }
 0x15d   : > { %v1148_v32 = vpop.f32.mrb[60].mxu0  ;;  %v938_v27 = vpop.f32.mrb[60].mxu1 }
 0x15e   : > { %v3742_v20 = vadd.f32 %v1148_v32, %v994_v10  ;;  %v2932_v16 = vpop.f32.mrb[61].mxu0  ;;  %v996_v52 = vadd.f32 %v938_v27, %v3642_v3  ;;  %v2898_v26 = vpop.f32.mrb[61].mxu1 }
 0x15f   : > { %v1151_v34 = vpop.f32.mrb[62].mxu0  ;;  %v941_v29 = vpop.f32.mrb[62].mxu1 }
 0x160   : > { %v3745_v45 = vadd.f32 %v1151_v34, %v995_v49  ;;  %v2933_v30 = vpop.f32.mrb[63].mxu0  ;;  %v997_v31 = vadd.f32 %v941_v29, %v3647_v11  ;;  %v2899_v33 = vpop.f32.mrb[63].mxu1 }
 0x165   : > { %v1156_v36 = vpop.f32.mrb[64].mxu0  ;;  %v946_v41 = vpop.f32.mrb[64].mxu1 }
 0x166   : > { %v3748_v56 = vadd.f32 %v1156_v36, %v996_v52  ;;  %v2936_v25 = vpop.f32.mrb[65].mxu0  ;;  %v998_v42 = vadd.f32 %v946_v41, %v3658_v23  ;;  %v2902_v63 = vpop.f32.mrb[65].mxu1 }
 0x167   : > { %v1159_v39 = vpop.f32.mrb[66].mxu0  ;;  %v949_v43 = vpop.f32.mrb[66].mxu1 }
 0x168   : > { %v3751_v3 = vadd.f32 %v1159_v39, %v997_v31  ;;  %v2937_v44 = vpop.f32.mrb[67].mxu0  ;;  %v999_v5 = vadd.f32 %v949_v43, %v3663_v35  ;;  %v2903_v48 = vpop.f32.mrb[67].mxu1 }
 0x16d   : > { %v1164_v46 = vpop.f32.mrb[68].mxu0  ;;  %v954_v50 = vpop.f32.mrb[68].mxu1 }
 0x16e   : > { %v3754_v11 = vadd.f32 %v1164_v46, %v998_v42  ;;  %v2940_v53 = vpop.f32.mrb[69].mxu0  ;;  %v1000_v55 = vadd.f32 %v954_v50, %v3674_v47  ;;  %v2906_v57 = vpop.f32.mrb[69].mxu1 }
 0x16f   : > { %v1167_v59 = vpop.f32.mrb[70].mxu0  ;;  %v957_v60 = vpop.f32.mrb[70].mxu1 }
 0x170   : > { %v3757_v23 = vadd.f32 %v1167_v59, %v999_v5  ;;  %v2941_v51 = vpop.f32.mrb[71].mxu0  ;;  %v1001_v37 = vadd.f32 %v957_v60, %v3679_v58  ;;  %v2907_v62 = vpop.f32.mrb[71].mxu1 }
 0x175   : > { %v1172_v15 = vpop.f32.mrb[72].mxu0  ;;  %v962_v0 = vpop.f32.mrb[72].mxu1 }
 0x176   : > { %v3760_v35 = vadd.f32 %v1172_v15, %v1000_v55  ;;  %v2944_v2 = vpop.f32.mrb[73].mxu0  ;;  %v1002_v40 = vadd.f32 %v962_v0, %v3690_v4  ;;  %v2910_v22 = vpop.f32.mrb[73].mxu1 }
 0x177   : > { %v1175_v6 = vpop.f32.mrb[74].mxu0  ;;  %v965_v7 = vpop.f32.mrb[74].mxu1 }
 0x178   : > { %v3763_v47 = vadd.f32 %v1175_v6, %v1001_v37  ;;  %v2945_v8 = vpop.f32.mrb[75].mxu0  ;;  %v1003_v1 = vadd.f32 %v965_v7, %v3695_v14  ;;  %v2911_v10 = vpop.f32.mrb[75].mxu1 }
 0x17d   : > { %v1180_v12 = vpop.f32.mrb[76].mxu0  ;;  %v970_v13 = vpop.f32.mrb[76].mxu1 }
 0x17e   : > { %v3766_v58 = vadd.f32 %v1180_v12, %v1002_v40  ;;  %v2948_v17 = vpop.f32.mrb[77].mxu0  ;;  %v1004_v18 = vadd.f32 %v970_v13, %v3706_v24  ;;  %v2914_v49 = vpop.f32.mrb[77].mxu1 }
 0x17f   : > { %v1183_v19 = vpop.f32.mrb[78].mxu0  ;;  %v973_v32 = vpop.f32.mrb[78].mxu1 }
 0x180   : > { %v3769_v4 = vadd.f32 %v1183_v19, %v1003_v1  ;;  %v2949_v27 = vpop.f32.mrb[79].mxu0  ;;  %v1005_v16 = vadd.f32 %v973_v32, %v3711_v38  ;;  %v2915_v52 = vpop.f32.mrb[79].mxu1 }
 0x185   : > { %v1188_v26 = vpop.f32.mrb[80].mxu0  ;;  %v978_v34 = vpop.f32.mrb[80].mxu1 }
 0x186   : > { %v3772_v14 = vadd.f32 %v1188_v26, %v1004_v18  ;;  %v2952_v29 = vpop.f32.mrb[81].mxu0  ;;  %v1006_v30 = vadd.f32 %v978_v34, %v3721_v28  ;;  %v2918_v31 = vpop.f32.mrb[81].mxu1 }
 0x187   : > { %v1191_v33 = vpop.f32.mrb[82].mxu0  ;;  %v981_v36 = vpop.f32.mrb[82].mxu1 }
 0x188   : > { %v3775_v24 = vadd.f32 %v1191_v33, %v1005_v16  ;;  %v2953_v41 = vpop.f32.mrb[83].mxu0  ;;  %v1007_v25 = vadd.f32 %v981_v36, %v3725_v54  ;;  %v2919_v42 = vpop.f32.mrb[83].mxu1 }
 0x18d   : > { %v1196_v63 = vpop.f32.mrb[84].mxu0  ;;  %v986_v39 = vpop.f32.mrb[84].mxu1 }
 0x18e   : > { %v3778_v38 = vadd.f32 %v1196_v63, %v1006_v30  ;;  %v2956_v43 = vpop.f32.mrb[85].mxu0  ;;  %v1008_v44 = vadd.f32 %v986_v39, %v3731_v61  ;;  %v2922_v48 = vpop.f32.mrb[85].mxu1 }
 0x18f   : > { %v1199_v5 = vpop.f32.mrb[86].mxu0  ;;  %v989_v50 = vpop.f32.mrb[86].mxu1 }
 0x190   : > { %v3781_v46 = vadd.f32 %v1199_v5, %v1007_v25  ;;  %v2957_v28 = vpop.f32.mrb[87].mxu0  ;;  %v2923_v53 = vpop.f32.mrb[87].mxu1 }
 0x195   : > { %v1204_v55 = vpop.f32.mrb[88].mxu0  ;;  %v1358_v59 = vpop.f32.mrb[88].mxu1 }
 0x196   : > { %v3783_v57 = vadd.f32 %v1204_v55, %v1008_v44  ;;  %v2960_v54 = vpop.f32.mrb[89].mxu0  ;;  %v1428_v60 = vadd.f32 %v1358_v59, %v3736_v9  ;;  %v2966_v51 = vpop.f32.mrb[89].mxu1 }
 0x197   : > { %v1207_v37 = vpop.f32.mrb[90].mxu0  ;;  %v1361_v62 = vpop.f32.mrb[90].mxu1 }
 0x198   : > { %v2961_v15 = vpop.f32.mrb[91].mxu0  ;;  %v1429_v61 = vadd.f32 %v1361_v62, %v3739_v21  ;;  %v2967_v0 = vpop.f32.mrb[91].mxu1 }
 0x19d   : > { %v1593_v2 = vpop.f32.mrb[92].mxu0  ;;  %v1366_v40 = vpop.f32.mrb[92].mxu1 }
 0x19e   : > { %v3787_v22 = vadd.f32 %v1593_v2, %v1428_v60  ;;  %v3004_v6 = vpop.f32.mrb[93].mxu0  ;;  %v1430_v7 = vadd.f32 %v1366_v40, %v3742_v20  ;;  %v2970_v8 = vpop.f32.mrb[93].mxu1 }
 0x19f   : > { %v1596_v1 = vpop.f32.mrb[94].mxu0  ;;  %v1369_v10 = vpop.f32.mrb[94].mxu1 }
 0x1a0   : > { %v3790_v12 = vadd.f32 %v1596_v1, %v1429_v61  ;;  %v3005_v9 = vpop.f32.mrb[95].mxu0  ;;  %v1431_v13 = vadd.f32 %v1369_v10, %v3745_v45  ;;  %v2971_v17 = vpop.f32.mrb[95].mxu1 }
 0x1a5   : > { %v1601_v18 = vpop.f32.mrb[96].mxu0  ;;  %v1374_v49 = vpop.f32.mrb[96].mxu1 }
 0x1a6   : > { %v3793_v21 = vadd.f32 %v1601_v18, %v1430_v7  ;;  %v3008_v19 = vpop.f32.mrb[97].mxu0  ;;  %v1432_v32 = vadd.f32 %v1374_v49, %v3748_v56  ;;  %v2974_v27 = vpop.f32.mrb[97].mxu1 }
 0x1a7   : > { %v1604_v16 = vpop.f32.mrb[98].mxu0  ;;  %v1377_v52 = vpop.f32.mrb[98].mxu1 }
 0x1a8   : > { %v3796_v20 = vadd.f32 %v1604_v16, %v1431_v13  ;;  %v3009_v26 = vpop.f32.mrb[99].mxu0  ;;  %v1433_v34 = vadd.f32 %v1377_v52, %v3751_v3  ;;  %v2975_v29 = vpop.f32.mrb[99].mxu1 }
 0x1ad   : > { %v1609_v30 = vpop.f32.mrb[100].mxu0  ;;  %v1382_v31 = vpop.f32.mrb[100].mxu1 }
 0x1ae   : > { %v3799_v45 = vadd.f32 %v1609_v30, %v1432_v32  ;;  %v3012_v33 = vpop.f32.mrb[101].mxu0  ;;  %v1434_v36 = vadd.f32 %v1382_v31, %v3754_v11  ;;  %v2978_v41 = vpop.f32.mrb[101].mxu1 }
 0x1af   : > { %v1612_v25 = vpop.f32.mrb[102].mxu0  ;;  %v1385_v42 = vpop.f32.mrb[102].mxu1 }
 0x1b0   : > { %v3802_v56 = vadd.f32 %v1612_v25, %v1433_v34  ;;  %v3013_v63 = vpop.f32.mrb[103].mxu0  ;;  %v1435_v39 = vadd.f32 %v1385_v42, %v3757_v23  ;;  %v2979_v43 = vpop.f32.mrb[103].mxu1 }
 0x1b5   : > { %v1617_v44 = vpop.f32.mrb[104].mxu0  ;;  %v1390_v5 = vpop.f32.mrb[104].mxu1 }
 0x1b6   : > { %v3805_v3 = vadd.f32 %v1617_v44, %v1434_v36  ;;  %v3016_v48 = vpop.f32.mrb[105].mxu0  ;;  %v1436_v28 = vadd.f32 %v1390_v5, %v3760_v35  ;;  %v2982_v50 = vpop.f32.mrb[105].mxu1 }
 0x1b7   : > { %v1620_v53 = vpop.f32.mrb[106].mxu0  ;;  %v1393_v55 = vpop.f32.mrb[106].mxu1 }
 0x1b8   : > { %v3808_v11 = vadd.f32 %v1620_v53, %v1435_v39  ;;  %v3017_v59 = vpop.f32.mrb[107].mxu0  ;;  %v1437_v54 = vadd.f32 %v1393_v55, %v3763_v47  ;;  %v2983_v60 = vpop.f32.mrb[107].mxu1 }
 0x1bd   : > { %v1625_v51 = vpop.f32.mrb[108].mxu0  ;;  %v1398_v37 = vpop.f32.mrb[108].mxu1 }
 0x1be   : > { %v3811_v23 = vadd.f32 %v1625_v51, %v1436_v28  ;;  %v3020_v62 = vpop.f32.mrb[109].mxu0  ;;  %v1438_v15 = vadd.f32 %v1398_v37, %v3766_v58  ;;  %v2986_v61 = vpop.f32.mrb[109].mxu1 }
 0x1bf   : > { %v1628_v0 = vpop.f32.mrb[110].mxu0  ;;  %v1401_v2 = vpop.f32.mrb[110].mxu1 }
 0x1c0   : > { %v3814_v35 = vadd.f32 %v1628_v0, %v1437_v54  ;;  %v3021_v40 = vpop.f32.mrb[111].mxu0  ;;  %v1439_v6 = vadd.f32 %v1401_v2, %v3769_v4  ;;  %v2987_v7 = vpop.f32.mrb[111].mxu1 }
 0x1c5   : > { %v1633_v8 = vpop.f32.mrb[112].mxu0  ;;  %v1406_v1 = vpop.f32.mrb[112].mxu1 }
 0x1c6   : > { %v3817_v47 = vadd.f32 %v1633_v8, %v1438_v15  ;;  %v3024_v10 = vpop.f32.mrb[113].mxu0  ;;  %v1440_v9 = vadd.f32 %v1406_v1, %v3772_v14  ;;  %v2990_v13 = vpop.f32.mrb[113].mxu1  ;;  %v3841_v15 = vld [vmem:[%s3919_s2] ss:$0 sm:$0xff] }
 0x1c7   : > { %v1636_v17 = vpop.f32.mrb[114].mxu0  ;;  %v1409_v18 = vpop.f32.mrb[114].mxu1 }
 0x1c8   : > { %v3820_v58 = vadd.f32 %v1636_v17, %v1439_v6  ;;  %v3025_v49 = vpop.f32.mrb[115].mxu0  ;;  %v1441_v19 = vadd.f32 %v1409_v18, %v3775_v24  ;;  %v2991_v32 = vpop.f32.mrb[115].mxu1 }
 0x1cd   : > { %v1641_v27 = vpop.f32.mrb[116].mxu0  ;;  %v1414_v16 = vpop.f32.mrb[116].mxu1 }
 0x1ce   : > { %v3823_v4 = vadd.f32 %v1641_v27, %v1440_v9  ;;  %v3028_v52 = vpop.f32.mrb[117].mxu0  ;;  %v1442_v26 = vadd.f32 %v1414_v16, %v3778_v38  ;;  %v2994_v34 = vpop.f32.mrb[117].mxu1 }
 0x1cf   : > { %v1644_v29 = vpop.f32.mrb[118].mxu0  ;;  %v1417_v30 = vpop.f32.mrb[118].mxu1 }
 0x1d0   : > { %v3826_v14 = vadd.f32 %v1644_v29, %v1441_v19  ;;  %v3029_v31 = vpop.f32.mrb[119].mxu0  ;;  %v1443_v33 = vadd.f32 %v1417_v30, %v3781_v46  ;;  %v2995_v36 = vpop.f32.mrb[119].mxu1 }
 0x1d5   : > { %v1649_v41 = vpop.f32.mrb[120].mxu0  ;;  %v1422_v25 = vpop.f32.mrb[120].mxu1 }
 0x1d6   : > { %v3829_v24 = vadd.f32 %v1649_v41, %v1442_v26  ;;  %v3032_v42 = vpop.f32.mrb[121].mxu0  ;;  %v1444_v63 = vadd.f32 %v1422_v25, %v3783_v57  ;;  %v2998_v43 = vpop.f32.mrb[121].mxu1 }
 0x1d7   : > { %v1652_v39 = vpop.f32.mrb[122].mxu0  ;;  %v1425_v5 = vpop.f32.mrb[122].mxu1 }
 0x1d8   : > { %v3832_v44 = vadd.f32 %v1652_v39, %v1443_v33  ;;  %v3033_v38 = vpop.f32.mrb[123].mxu0  ;;  %v2999_v48 = vpop.f32.mrb[123].mxu1 }
 0x1dd   : > { %v1657_v28 = vpop.f32.mrb[124].mxu0  ;;  %v1827_v46 = vpop.f32.mrb[124].mxu1 }
 0x1de   : > { %v3834_v50 = vadd.f32 %v1657_v28, %v1444_v63  ;;  %v3036_v53 = vpop.f32.mrb[125].mxu0  ;;  %v1897_v55 = vadd.f32 %v1827_v46, %v3787_v22  ;;  %v3042_v59 = vpop.f32.mrb[125].mxu1 }
 0x1df   : > { %v1660_v54 = vpop.f32.mrb[126].mxu0  ;;  %v1830_v60 = vpop.f32.mrb[126].mxu1 }
 0x1e0   : > { %v3037_v51 = vpop.f32.mrb[127].mxu0  ;;  %v1898_v57 = vadd.f32 %v1830_v60, %v3790_v12  ;;  %v3043_v37 = vpop.f32.mrb[127].mxu1 }
 0x1e5   : > { %v2061_v62 = vpop.f32.mrb[128].mxu0  ;;  %v1835_v61 = vpop.f32.mrb[128].mxu1 }
 0x1e6   : > { %v2131_v0 = vadd.f32 %v2061_v62, %v1897_v55  ;;  %v3080_v2 = vpop.f32.mrb[129].mxu0  ;;  %v1899_v40 = vadd.f32 %v1835_v61, %v3793_v21  ;;  %v3046_v22 = vpop.f32.mrb[129].mxu1 }
 0x1e7   : > { %v2064_v6 = vpop.f32.mrb[130].mxu0  ;;  %v1838_v8 = vpop.f32.mrb[130].mxu1 }
 0x1e8   : > { %v2155_v7 = vadd.f32 %v3841_v15, %v2131_v0  ;;  %v2132_v1 = vadd.f32 %v2064_v6, %v1898_v57  ;;  %v3081_v12 = vpop.f32.mrb[131].mxu0  ;;  %v1900_v10 = vadd.f32 %v1838_v8, %v3796_v20  ;;  %v3047_v9 = vpop.f32.mrb[131].mxu1 }
 0x1ea   : > { %v2172_v13 = vmax.f32 %v2155_v7, 0.0  ;;  %v2156_v17 = vadd.f32 %v3841_v15, %v2132_v1 }
 0x1ec   : > { %v2665_v21 = vpack.c.bf16 %v2172_v13, %v2172_v13  ;;  %v2173_v18 = vmax.f32 %v2156_v17, 0.0 }
 0x1ed   : > { %v2069_v49 = vpop.f32.mrb[132].mxu0  ;;  %v1843_v32 = vpop.f32.mrb[132].mxu1 }
 0x1ee   : > { %2259 = vst.msk [vmem:[%s3851_s16] sm:$0xf] %vm2258_vm3, %v2665_v21  ;;  %v2666_v19 = vpack.c.bf16 %v2173_v18, %v2173_v18  ;;  %v2133_v20 = vadd.f32 %v2069_v49, %v1899_v40  ;;  %v3084_v27 = vpop.f32.mrb[133].mxu0  ;;  %v1901_v16 = vadd.f32 %v1843_v32, %v3799_v45  ;;  %v3050_v52 = vpop.f32.mrb[133].mxu1 }
 0x1ef   : > { %v2072_v26 = vpop.f32.mrb[134].mxu0  ;;  %v1846_v29 = vpop.f32.mrb[134].mxu1 }
 0x1f0   : > { %2260 = vst.msk [vmem:[%s3851_s16 + $0x4] sm:$0xf] %vm2258_vm3, %v2666_v19  ;;  %v2157_v34 = vadd.f32 %v3841_v15, %v2133_v20  ;;  %v2134_v30 = vadd.f32 %v2072_v26, %v1900_v10  ;;  %v3085_v31 = vpop.f32.mrb[135].mxu0  ;;  %v1902_v33 = vadd.f32 %v1846_v29, %v3802_v56  ;;  %v3051_v36 = vpop.f32.mrb[135].mxu1 }
 0x1f2   : > { %v2174_v41 = vmax.f32 %v2157_v34, 0.0  ;;  %v2158_v25 = vadd.f32 %v3841_v15, %v2134_v30 }
 0x1f4   : > { %v2667_v42 = vpack.c.bf16 %v2174_v41, %v2174_v41  ;;  %v2175_v63 = vmax.f32 %v2158_v25, 0.0 }
 0x1f5   : > { %v2077_v39 = vpop.f32.mrb[136].mxu0  ;;  %v1851_v43 = vpop.f32.mrb[136].mxu1 }
 0x1f6   : > { %2261 = vst.msk [vmem:[%s3851_s16 + $0x8] sm:$0xf] %vm2258_vm3, %v2667_v42  ;;  %v2668_v45 = vpack.c.bf16 %v2175_v63, %v2175_v63  ;;  %v2135_v38 = vadd.f32 %v2077_v39, %v1901_v16  ;;  %v3088_v5 = vpop.f32.mrb[137].mxu0  ;;  %v1903_v48 = vadd.f32 %v1851_v43, %v3805_v3  ;;  %v3054_v28 = vpop.f32.mrb[137].mxu1 }
 0x1f7   : > { %v2080_v46 = vpop.f32.mrb[138].mxu0  ;;  %v1854_v53 = vpop.f32.mrb[138].mxu1 }
 0x1f8   : > { %2262 = vst.msk [vmem:[%s3851_s16 + $0xc] sm:$0xf] %vm2258_vm3, %v2668_v45  ;;  %v2159_v56 = vadd.f32 %v3841_v15, %v2135_v38  ;;  %v2136_v55 = vadd.f32 %v2080_v46, %v1902_v33  ;;  %v3089_v59 = vpop.f32.mrb[139].mxu0  ;;  %v1904_v54 = vadd.f32 %v1854_v53, %v3808_v11  ;;  %v3055_v60 = vpop.f32.mrb[139].mxu1 }
 0x1fa   : > { %v2176_v51 = vmax.f32 %v2159_v56, 0.0  ;;  %v2160_v57 = vadd.f32 %v3841_v15, %v2136_v55 }
 0x1fc   : > { %v2669_v37 = vpack.c.bf16 %v2176_v51, %v2176_v51  ;;  %v2177_v62 = vmax.f32 %v2160_v57, 0.0 }
 0x1fd   : > { %v2085_v61 = vpop.f32.mrb[140].mxu0  ;;  %v1859_v0 = vpop.f32.mrb[140].mxu1 }
 0x1fe   : > { %2263 = vst.msk [vmem:[%s3851_s16 + $0x10] sm:$0xf] %vm2258_vm3, %v2669_v37  ;;  %v2670_v3 = vpack.c.bf16 %v2177_v62, %v2177_v62  ;;  %v2137_v2 = vadd.f32 %v2085_v61, %v1903_v48  ;;  %v3092_v40 = vpop.f32.mrb[141].mxu0  ;;  %v1905_v22 = vadd.f32 %v1859_v0, %v3811_v23  ;;  %v3058_v6 = vpop.f32.mrb[141].mxu1 }
 0x1ff   : > { %v2088_v7 = vpop.f32.mrb[142].mxu0  ;;  %v1862_v8 = vpop.f32.mrb[142].mxu1 }
 0x200   : > { %2264 = vst.msk [vmem:[%s3851_s16 + $0x14] sm:$0xf] %vm2258_vm3, %v2670_v3  ;;  %v2161_v11 = vadd.f32 %v3841_v15, %v2137_v2  ;;  %v2138_v1 = vadd.f32 %v2088_v7, %v1904_v54  ;;  %v3093_v12 = vpop.f32.mrb[143].mxu0  ;;  %v1906_v10 = vadd.f32 %v1862_v8, %v3814_v35  ;;  %v3059_v9 = vpop.f32.mrb[143].mxu1 }
 0x202   : > { %v2178_v13 = vmax.f32 %v2161_v11, 0.0  ;;  %v2162_v17 = vadd.f32 %v3841_v15, %v2138_v1 }
 0x204   : > { %v2671_v21 = vpack.c.bf16 %v2178_v13, %v2178_v13  ;;  %v2179_v18 = vmax.f32 %v2162_v17, 0.0 }
 0x205   : > { %v2093_v49 = vpop.f32.mrb[144].mxu0  ;;  %v1867_v19 = vpop.f32.mrb[144].mxu1 }
 0x206   : > { %2265 = vst.msk [vmem:[%s3851_s16 + $0x18] sm:$0xf] %vm2258_vm3, %v2671_v21  ;;  %v2672_v23 = vpack.c.bf16 %v2179_v18, %v2179_v18  ;;  %v2139_v32 = vadd.f32 %v2093_v49, %v1905_v22  ;;  %v3096_v20 = vpop.f32.mrb[145].mxu0  ;;  %v1907_v27 = vadd.f32 %v1867_v19, %v3817_v47  ;;  %v3062_v16 = vpop.f32.mrb[145].mxu1 }
 0x207   : > { %v2096_v52 = vpop.f32.mrb[146].mxu0  ;;  %v1870_v26 = vpop.f32.mrb[146].mxu1 }
 0x208   : > { %2266 = vst.msk [vmem:[%s3851_s16 + $0x1c] sm:$0xf] %vm2258_vm3, %v2672_v23  ;;  %v2163_v35 = vadd.f32 %v3841_v15, %v2139_v32  ;;  %v2140_v34 = vadd.f32 %v2096_v52, %v1906_v10  ;;  %v3097_v29 = vpop.f32.mrb[147].mxu0  ;;  %v1908_v30 = vadd.f32 %v1870_v26, %v3820_v58  ;;  %v3063_v31 = vpop.f32.mrb[147].mxu1 }
 0x20a   : > { %v2180_v33 = vmax.f32 %v2163_v35, 0.0  ;;  %v2164_v36 = vadd.f32 %v3841_v15, %v2140_v34 }
 0x20c   : > { %v2673_v41 = vpack.c.bf16 %v2180_v33, %v2180_v33  ;;  %v2181_v25 = vmax.f32 %v2164_v36, 0.0 }
 0x20d   : > { %v2101_v42 = vpop.f32.mrb[148].mxu0  ;;  %v1875_v63 = vpop.f32.mrb[148].mxu1 }
 0x20e   : > { %2267 = vst.msk [vmem:[%s3851_s16 + $0x20] sm:$0xf] %vm2258_vm3, %v2673_v41  ;;  %v2674_v47 = vpack.c.bf16 %v2181_v25, %v2181_v25  ;;  %v2141_v39 = vadd.f32 %v2101_v42, %v1907_v27  ;;  %v3100_v45 = vpop.f32.mrb[149].mxu0  ;;  %v1909_v43 = vadd.f32 %v1875_v63, %v3823_v4  ;;  %v3066_v38 = vpop.f32.mrb[149].mxu1 }
 0x20f   : > { %v2104_v5 = vpop.f32.mrb[150].mxu0  ;;  %v1878_v48 = vpop.f32.mrb[150].mxu1 }
 0x210   : > { %2268 = vst.msk [vmem:[%s3851_s16 + $0x24] sm:$0xf] %vm2258_vm3, %v2674_v47  ;;  %v2165_v58 = vadd.f32 %v3841_v15, %v2141_v39  ;;  %v2142_v28 = vadd.f32 %v2104_v5, %v1908_v30  ;;  %v3101_v46 = vpop.f32.mrb[151].mxu0  ;;  %v1910_v56 = vadd.f32 %v1878_v48, %v3826_v14  ;;  %v3067_v53 = vpop.f32.mrb[151].mxu1 }
 0x212   : > { %v2182_v55 = vmax.f32 %v2165_v58, 0.0  ;;  %v2166_v59 = vadd.f32 %v3841_v15, %v2142_v28 }
 0x214   : > { %v2675_v54 = vpack.c.bf16 %v2182_v55, %v2182_v55  ;;  %v2183_v60 = vmax.f32 %v2166_v59, 0.0 }
 0x215   : > { %v2109_v51 = vpop.f32.mrb[152].mxu0  ;;  %v1883_v57 = vpop.f32.mrb[152].mxu1 }
 0x216   : > { %2269 = vst.msk [vmem:[%s3851_s16 + $0x28] sm:$0xf] %vm2258_vm3, %v2675_v54  ;;  %v2676_v4 = vpack.c.bf16 %v2183_v60, %v2183_v60  ;;  %v2143_v37 = vadd.f32 %v2109_v51, %v1909_v43  ;;  %v3104_v62 = vpop.f32.mrb[153].mxu0  ;;  %v1911_v61 = vadd.f32 %v1883_v57, %v3829_v24  ;;  %v3070_v3 = vpop.f32.mrb[153].mxu1 }
 0x217   : > { %v2112_v0 = vpop.f32.mrb[154].mxu0  ;;  %v1886_v2 = vpop.f32.mrb[154].mxu1 }
 0x218   : > { %2270 = vst.msk [vmem:[%s3851_s16 + $0x2c] sm:$0xf] %vm2258_vm3, %v2676_v4  ;;  %v2167_v14 = vadd.f32 %v3841_v15, %v2143_v37  ;;  %v2144_v40 = vadd.f32 %v2112_v0, %v1910_v56  ;;  %v3105_v22 = vpop.f32.mrb[155].mxu0  ;;  %v1912_v6 = vadd.f32 %v1886_v2, %v3832_v44  ;;  %v3071_v7 = vpop.f32.mrb[155].mxu1 }
 0x21a   : > { %v2184_v11 = vmax.f32 %v2167_v14, 0.0  ;;  %v2168_v8 = vadd.f32 %v3841_v15, %v2144_v40 }
 0x21c   : > { %v2677_v1 = vpack.c.bf16 %v2184_v11, %v2184_v11  ;;  %v2185_v12 = vmax.f32 %v2168_v8, 0.0 }
 0x21d   : > { %v2117_v10 = vpop.f32.mrb[156].mxu0  ;;  %v1891_v9 = vpop.f32.mrb[156].mxu1 }
 0x21e   : > { %2271 = vst.msk [vmem:[%s3851_s16 + $0x30] sm:$0xf] %vm2258_vm3, %v2677_v1  ;;  %v2678_v24 = vpack.c.bf16 %v2185_v12, %v2185_v12  ;;  %v2145_v13 = vadd.f32 %v2117_v10, %v1911_v61  ;;  %v3108_v17 = vpop.f32.mrb[157].mxu0  ;;  %v1913_v21 = vadd.f32 %v1891_v9, %v3834_v50  ;;  %v3074_v49 = vpop.f32.mrb[157].mxu1 }
 0x21f   : > { %v2120_v18 = vpop.f32.mrb[158].mxu0  ;;  %v1894_v32 = vpop.f32.mrb[158].mxu1 }
 0x220   : > { %2272 = vst.msk [vmem:[%s3851_s16 + $0x34] sm:$0xf] %vm2258_vm3, %v2678_v24  ;;  %v2169_v44 = vadd.f32 %v3841_v15, %v2145_v13  ;;  %v2146_v23 = vadd.f32 %v2120_v18, %v1912_v6  ;;  %v3109_v19 = vpop.f32.mrb[159].mxu0  ;;  %v3075_v20 = vpop.f32.mrb[159].mxu1 }
 0x222   : > { %v2186_v27 = vmax.f32 %v2169_v44, 0.0  ;;  %v2170_v16 = vadd.f32 %v3841_v15, %v2146_v23 }
 0x224   : > { %v2679_v52 = vpack.c.bf16 %v2186_v27, %v2186_v27  ;;  %v2187_v35 = vmax.f32 %v2170_v16, 0.0 }
 0x225   : > { %v2125_v26 = vpop.f32.mrb[160].mxu0 }
 0x226   : > { %2273 = vst.msk [vmem:[%s3851_s16 + $0x38] sm:$0xf] %vm2258_vm3, %v2679_v52  ;;  %v2680_v50 = vpack.c.bf16 %v2187_v35, %v2187_v35  ;;  %v2147_v34 = vadd.f32 %v2125_v26, %v1913_v21  ;;  %v3112_v29 = vpop.f32.mrb[161].mxu0 }
 0x227   : > { %v2128_v30 = vpop.f32.mrb[162].mxu0 }
 0x228   : > { %2274 = vst.msk [vmem:[%s3851_s16 + $0x3c] sm:$0xf] %vm2258_vm3, %v2680_v50  ;;  %v2171_v31 = vadd.f32 %v3841_v15, %v2147_v34  ;;  %v3113_v33 = vpop.f32.mrb[163].mxu0 }
 0x22a   : > { %v2188_v36 = vmax.f32 %v2171_v31, 0.0 }
 0x22c   : > { %v2681_v41 = vpack.c.bf16 %v2188_v36, %v2188_v36 }
 0x22e   : > { %2276 = vst.msk [vmem:[%s3851_s16 + $0x40] sm:$0x3] %vm2275_vm4, %v2681_v41 }
 0x22f PF: > { %s13_s12 = sadd.s32 1, %s3224_s12  }
 0x230   : > { %p10_p4 = scmp.ge.s32.totalorder %s13_s12, 10  }
 0x232   :  { %12 = sbr.rel (!%p10_p4) target bundleno = 1 (0x1), region = 75 }

// kernel: cnn_lstm_forward.6
= control target key start
LH: loop header
LB: loop body
LE: loop exit
PB: predicated region body
PF: predicated region fallthrough
CT: control target
= control target key end

     0   :  { %s1321_s12 = smov 0   ;;  %s1419_s0 = inlined_call_operand.vmem [shape: bf16[8,6,36,16], index: 0, kind: input, shape index: {}]   ;;  %s1420_s1 = inlined_call_operand.vmem [shape: bf16[9,16,16], index: 1, kind: input, shape index: {}]   ;;  %s1421_s2 = inlined_call_operand.vmem [shape: f32[1,16], index: 2, kind: input, shape index: {}]   ;;  %s1422_s3 = inlined_call_operand.vmem [shape: bf16[8,30,16], index: 3, kind: output, shape index: {}]  }
   0x1 LB: > { %s1027_s13 = sadd.s32 4294967295, %s1299_s12   ;;  %p1031_p0 = scmp.ge.s32.totalorder %s1299_s12, 1  ;;  %s1299_s12 = sphi %s1321_s12, %s13_s12  }
   0x2   : > { %p137_p1 = scmp.lt.s32.totalorder %s1299_s12, 9 }
   0x4   : > { %p138_p2 = pnand %p1031_p0, %p137_p1 }
   0x5   : > { %v1263_v0 = vld [vmem:[%s1420_s1 + $0x20] sm:$0xff] (!%p138_p2)   ;;  %p161_p3 = scmp.lt.s32.totalorder (!%p138_p2), %s1027_s13, 7  ;;  %v1264_v1 = vld [vmem:[%s1420_s1 + $0x8] sm:$0xff] (!%p138_p2)   ;;  %vm202_vm0 = vcmask (!%p138_p2), 130048   ;;  %v1273_v6 = vld [vmem:[%s1420_s1 + $0x30] sm:$0xff] (!%p138_p2)   ;;  %vm682_vm1 = vcmask (!%p138_p2), 1044480  }
   0x6   : > { %141 = sbr.rel (%p138_p2) target bundleno = 292 (0x124), region = 32  ;;  %1192 = vmatprep.subr.bf16.mxu0 (!%p138_p2), %v1263_v0  ;;  %v1267_v2 = vld [vmem:[%s1420_s1 + $0x28] sm:$0xff] (!%p138_p2)   ;;  %1168 = vmatprep.subr.bf16.mxu1 (!%p138_p2), %v1264_v1  ;;  %v1270_v3 = vld [vmem:[%s1420_s1] sm:$0xff] (!%p138_p2)   ;;  %v1276_v8 = vld [vmem:[%s1420_s1 + $0x10] sm:$0xff] (!%p138_p2)   ;;  %vm966_vm2 = vcmask (!%p138_p2), 125952   ;;  %vm970_vm3 = vcmask (!%p138_p2), 124928  }
   0x7   : > { %1193 = vmatpush3.bf16.msra.mxu0 (!%p138_p2), %v1263_v0  ;;  %1169 = vmatpush3.bf16.msra.mxu1 (!%p138_p2), %v1264_v1  ;;  %v1280_v19 = vld [vmem:[%s1420_s1 + $0x38] sm:$0xff] (!%p138_p2)   ;;  %v1287_v31 = vld [vmem:[%s1420_s1 + $0x40] sm:$0xff] (!%p138_p2)  }
   0x8   : > { %1198 = vmatprep.subr.bf16.mxu0 (!%p138_p2), %v1267_v2  ;;  %1174 = vmatprep.subr.bf16.mxu1 (!%p138_p2), %v1270_v3  ;;  %v1283_v22 = vld [vmem:[%s1420_s1 + $0x18] sm:$0xff] (!%p138_p2)   ;;  %v1129_v50 = vld [vmem:[%s1421_s2] ss:$0 sm:$0xff] (!%p138_p2) }
   0xd   : > { %s1424_s13 = smov (!%p161_p3, %s1027_s13), 7 }
   0xe   : > { %s1254_s22 = smul.u32 120, %s1424_s13  ;;  %s1136_s11 = sshll.u32 %s1424_s13, 4 }
   0xf   : > { %s170_s16 = scalar_lea.vmem %s1422_s3, %s1136_s11 }
  0x10   : > { %s1347_s25 = scalar_lea.vmem %s1419_s0, %s1254_s22 }
  0x11   : > { %v1265_v4 = vld [vmem:[%s1347_s25 + $0x14] sm:$0xff]   ;;  %v1268_v7 = vld [vmem:[%s1347_s25 + $0x1c] sm:$0x7f]   ;;  %v1272_v11 = vld [vmem:[%s1347_s25 + $0x64] sm:$0xff]  }
  0x12   : > { %v1266_v5 = vld [vmem:[%s1347_s25 + $0x50] sm:$0xff]   ;;  %1170 = vmatprep.mubr.msk.bf16.mxu1 %vm202_vm0, %v1265_v4  ;;  %v1269_v9 = vld [vmem:[%s1347_s25 + $0x58] sm:$0x7f]   ;;  %v1271_v10 = vld [vmem:[%s1347_s25] sm:$0xff]  }
  0x13   : > { %1194 = vmatprep.mubr.msk.bf16.mxu0 %vm202_vm0, %v1266_v5  ;;  %1171 = vmatmul.mubr.msk.bf16.vlgmr.msra.gmra.mrb[0].mxu1 %vm202_vm0, %v1268_v7  ;;  %v1278_v12 = vld [vmem:[%s1347_s25] sm:$0xf8]   ;;  %v1279_v13 = vld [vmem:[%s1347_s25 + $0x8] sm:$0xff]   ;;  %v1282_v21 = vld [vmem:[%s1347_s25 + $0x10] ss:$0 sps:$4 sm:$0x33]  }
  0x14   : > { %1195 = vmatmul.mubr.msk.bf16.vlgmr.msra.gmra.mrb[0].mxu0 %vm202_vm0, %v1269_v9  ;;  %1175 = vmatpush3.bf16.msra.mxu1 %v1270_v3  ;;  %v1274_v14 = vld [vmem:[%s1347_s25 + $0x8] sm:$0x7f]   ;;  %v683_v15 = vrot.slane %v1278_v12, 3  ;;  %v684_v16 = vrot.slane %v1279_v13, 3  ;;  %v1285_v23 = vld [vmem:[%s1347_s25 + $0x14] sm:$0xf8]  }
  0x15   : > { %1199 = vmatpush3.bf16.msra.mxu0 %v1267_v2  ;;  %1176 = vmatprep.mubr.msk.bf16.mxu1 %vm202_vm0, %v1271_v10  ;;  %v1275_v17 = vld [vmem:[%s1347_s25 + $0x6c] sm:$0x7f]   ;;  %v1286_v24 = vld [vmem:[%s1347_s25 + $0x1c] sm:$0xff]   ;;  %v686_v25 = vrot.slane %v1282_v21, 3  ;;  %v774_v27 = vrot.slane %v1285_v23, 3 }
  0x16   : > { %1200 = vmatprep.mubr.msk.bf16.mxu0 %vm202_vm0, %v1272_v11  ;;  %1204 = vmatprep.subr.bf16.mxu0 %v1273_v6  ;;  %v1277_v18 = vld [vmem:[%s1347_s25 + $0x28] sm:$0xff]   ;;  %v685_v20 = vsel %vm682_vm1, %v683_v15, %v684_v16  ;;  %v1281_v26 = vld [vmem:[%s1347_s25 + $0x30] sm:$0x7f]   ;;  %v775_v28 = vrot.slane %v1286_v24, 3  ;;  %v1284_v30 = vld [vmem:[%s1347_s25 + $0x3c] sm:$0xff]  }
  0x17   : > { %1180 = vmatprep.subr.bf16.mxu1 %v1276_v8  ;;  %v687_v29 = vsel %vm682_vm1, %v684_v16, %v686_v25  ;;  %v1289_v33 = vld [vmem:[%s1347_s25 + $0x24] ss:$0 sps:$4 sm:$0x33]   ;;  %v1290_v34 = vld [vmem:[%s1347_s25 + $0x28] sm:$0xf8]   ;;  %v1291_v35 = vld [vmem:[%s1347_s25 + $0x30] sm:$0xff]  }
  0x18   : > { %v776_v32 = vsel %vm682_vm1, %v774_v27, %v775_v28  ;;  %v777_v36 = vrot.slane %v1289_v33, 3  ;;  %v865_v37 = vrot.slane %v1290_v34, 3  ;;  %v866_v38 = vrot.slane %v1291_v35, 3  ;;  %v1288_v39 = vld [vmem:[%s1347_s25 + $0x44] sm:$0x7f]  }
  0x19   : > { %v1292_v42 = vld [vmem:[%s1347_s25 + $0x38] ss:$0 sps:$4 sm:$0x33]  }
  0x1a   : > { %v778_v40 = vsel %vm682_vm1, %v775_v28, %v777_v36  ;;  %v867_v41 = vsel %vm682_vm1, %v865_v37, %v866_v38  ;;  %v868_v43 = vrot.slane %v1292_v42, 3 }
  0x1c   : > { %v869_v44 = vsel %vm682_vm1, %v866_v38, %v868_v43 }
  0x1f   : > { %1177 = vmatmul.mubr.msk.bf16.vlgmr.msra.gmra.mrb[0].mxu1 %vm202_vm0, %v1274_v14 }
  0x20   : > { %1201 = vmatmul.mubr.msk.bf16.vlgmr.msra.gmra.mrb[0].mxu0 %vm202_vm0, %v1275_v17  ;;  %1181 = vmatpush3.bf16.msra.mxu1 %v1276_v8 }
  0x21   : > { %1205 = vmatpush3.bf16.msra.mxu0 %v1273_v6  ;;  %1182 = vmatprep.mubr.msk.bf16.mxu1 %vm202_vm0, %v1277_v18 }
  0x22   : > { %1206 = vmatprep.mubr.msk.bf16.mxu0 %vm202_vm0, %v685_v20  ;;  %1210 = vmatprep.subr.bf16.mxu0 %v1280_v19 }
  0x23   : > { %1186 = vmatprep.subr.bf16.mxu1 %v1283_v22 }
  0x2b   : > { %1183 = vmatmul.mubr.msk.bf16.vlgmr.msra.gmra.mrb[0].mxu1 %vm202_vm0, %v1281_v26 }
  0x2c   : > { %1207 = vmatmul.mubr.msk.bf16.vlgmr.msra.gmra.mrb[0].mxu0 %vm202_vm0, %v687_v29  ;;  %1187 = vmatpush3.bf16.msra.mxu1 %v1283_v22 }
  0x2d   : > { %1211 = vmatpush3.bf16.msra.mxu0 %v1280_v19  ;;  %1188 = vmatprep.mubr.msk.bf16.mxu1 %vm202_vm0, %v1284_v30 }
  0x2e   : > { %1212 = vmatprep.mubr.msk.bf16.mxu0 %vm202_vm0, %v776_v32  ;;  %1216 = vmatprep.subr.bf16.mxu0 %v1287_v31 }
  0x37   : > { %1189 = vmatmul.mubr.msk.bf16.vlgmr.msra.gmra.mrb[0].mxu1 %vm202_vm0, %v1288_v39 }
  0x38   : > { %1213 = vmatmul.mubr.msk.bf16.vlgmr.msra.gmra.mrb[0].mxu0 %vm202_vm0, %v778_v40 }
  0x39   : > { %1217 = vmatpush3.bf16.msra.mxu0 %v1287_v31  ;;  %1218 = vmatprep.mubr.msk.bf16.mxu0 %vm202_vm0, %v867_v41 }
  0x44   : > { %1219 = vmatmul.mubr.msk.bf16.vlgmr.msra.gmra.mrb[0].mxu0 %vm202_vm0, %v869_v44 }
 0x10a   : > { %v1190_v45 = vpop.f32.mrb[0].mxu1 }
 0x10b   : > { %v476_v46 = vpop.f32.mrb[1].mxu1 }
 0x10c   : > { %v1191_v47 = vpop.f32.mrb[2].mxu1 }
 0x10d   : > { %v479_v48 = vpop.f32.mrb[3].mxu1 }
 0x117   : > { %v1220_v49 = vpop.f32.mrb[0].mxu0 }
 0x118   : > { %v1222_v51 = vadd.f32 %v1220_v49, %v1190_v45  ;;  %v916_v52 = vpop.f32.mrb[1].mxu0 }
 0x119   : > { %v1223_v53 = vadd.f32 %v916_v52, %v476_v46  ;;  %v1221_v54 = vpop.f32.mrb[2].mxu0 }
 0x11a   : > { %v944_v55 = vadd.f32 %v1222_v51, %v1129_v50  ;;  %v1224_v56 = vadd.f32 %v1221_v54, %v1191_v47  ;;  %v919_v57 = vpop.f32.mrb[3].mxu0 }
 0x11b   : > { %v942_v58 = vadd.f32 %v1223_v53, %v1129_v50  ;;  %v1225_v59 = vadd.f32 %v919_v57, %v479_v48 }
 0x11c   : > { %v948_v60 = vmax.f32 %v944_v55, 0.0  ;;  %v945_v61 = vadd.f32 %v1224_v56, %v1129_v50 }
 0x11d   : > { %v946_v62 = vmax.f32 %v942_v58, 0.0  ;;  %v943_v63 = vadd.f32 %v1225_v59, %v1129_v50 }
 0x11e   : > { %v1139_v0 = vpack.c.bf16 %v948_v60, %v948_v60  ;;  %v949_v1 = vmax.f32 %v945_v61, 0.0 }
 0x11f   : > { %v1137_v2 = vpack.c.bf16 %v946_v62, %v946_v62  ;;  %v947_v3 = vmax.f32 %v943_v63, 0.0 }
 0x120   : > { %969 = vst.msk [vmem:[%s170_s16 + $0x8] sm:$0xf] %vm966_vm2, %v1139_v0  ;;  %v1140_v4 = vpack.c.bf16 %v949_v1, %v949_v1 }
 0x121   : > { %967 = vst.msk [vmem:[%s170_s16] sm:$0xf] %vm966_vm2, %v1137_v2  ;;  %v1138_v5 = vpack.c.bf16 %v947_v3, %v947_v3 }
 0x122   : > { %971 = vst.msk [vmem:[%s170_s16 + $0xc] sm:$0x7] %vm970_vm3, %v1140_v4 }
 0x123   : > { %968 = vst.msk [vmem:[%s170_s16 + $0x4] sm:$0xf] %vm966_vm2, %v1138_v5 }
 0x124 PF: > { %s13_s12 = sadd.s32 1, %s1299_s12  }
 0x125   : > { %p10_p4 = scmp.ge.s32.totalorder %s13_s12, 10  }
 0x127   :  { %12 = sbr.rel (!%p10_p4) target bundleno = 1 (0x1), region = 75 }

// kernel: cnn_lstm_forward.7
= control target key start
LH: loop header
LB: loop body
LE: loop exit
PB: predicated region body
PF: predicated region fallthrough
CT: control target
= control target key end

     0   :  { %s932_s12 = smov 0   ;;  %s1012_s0 = inlined_call_operand.vmem [shape: bf16[8,6,6,16], index: 0, kind: input, shape index: {}]   ;;  %s1013_s1 = inlined_call_operand.vmem [shape: bf16[9,16,16], index: 1, kind: input, shape index: {}]   ;;  %s1014_s2 = inlined_call_operand.vmem [shape: f32[1,16], index: 2, kind: input, shape index: {}]   ;;  %s1015_s3 = inlined_call_operand.vmem [shape: f32[8,1,16], index: 3, kind: output, shape index: {}]  }
   0x1 LB: > { %s754_s13 = sadd.s32 4294967295, %s908_s12   ;;  %p758_p0 = scmp.ge.s32.totalorder %s908_s12, 1  ;;  %s908_s12 = sphi %s932_s12, %s13_s12  }
   0x2   : > { %p137_p1 = scmp.lt.s32.totalorder %s908_s12, 9 }
   0x4   : > { %p138_p2 = pnand %p758_p0, %p137_p1 }
   0x5   : > { %v890_v0 = vld [vmem:[%s1013_s1 + $0x8] sm:$0xff] (!%p138_p2)   ;;  %v910_v1 = vmov (!%p138_p2), 0.0   ;;  %v891_v2 = vld [vmem:[%s1013_s1] sm:$0xff] (!%p138_p2)   ;;  %vm911_vm0 = vmmov (!%p138_p2), 0   ;;  %p159_p3 = scmp.lt.s32.totalorder (!%p138_p2), %s754_s13, 7  ;;  %v892_v3 = vld [vmem:[%s1013_s1 + $0x10] sm:$0xff] (!%p138_p2)  }
   0x6   : > { %141 = sbr.rel (%p138_p2) target bundleno = 284 (0x11c), region = 32  ;;  %825 = vmatprep.subr.bf16.mxu0 (!%p138_p2), %v910_v1  ;;  %831 = vmatprep.subr.bf16.mxu1 (!%p138_p2), %v910_v1  ;;  %vm182_vm1 = vcmask (!%p138_p2), 130048   ;;  %v893_v4 = vld [vmem:[%s1013_s1 + $0x18] sm:$0xff] (!%p138_p2)   ;;  %v894_v7 = vld [vmem:[%s1013_s1 + $0x20] sm:$0xff] (!%p138_p2)   ;;  %v895_v10 = vld [vmem:[%s1013_s1 + $0x28] sm:$0xff] (!%p138_p2)   ;;  %vm696_vm2 = vcmask (!%p138_p2), 125952  }
   0x7   : > { %826 = vmatpush3.bf16.msra.mxu0 (!%p138_p2), %v890_v0  ;;  %827 = vmatprep.mubr.msk.bf16.mxu0 (!%p138_p2), %vm911_vm0, %v910_v1  ;;  %v896_v11 = vld [vmem:[%s1013_s1 + $0x30] sm:$0xff] (!%p138_p2)   ;;  %v897_v14 = vld [vmem:[%s1013_s1 + $0x38] sm:$0xff] (!%p138_p2)   ;;  %v899_v19 = vld [vmem:[%s1013_s1 + $0x40] sm:$0xff] (!%p138_p2)   ;;  %vm705_vm3 = vcmask (!%p138_p2), 122880  }
   0x8   : > { %832 = vmatpush3.bf16.msra.mxu1 (!%p138_p2), %v891_v2  ;;  %833 = vmatprep.mubr.msk.bf16.mxu1 (!%p138_p2), %vm911_vm0, %v910_v1  ;;  %v804_v62 = vld [vmem:[%s1014_s2] ss:$0 sm:$0xff] (!%p138_p2) }
   0x9   : > { %837 = vmatprep.subr.bf16.mxu0 (!%p138_p2), %v910_v1  ;;  %843 = vmatprep.subr.bf16.mxu1 (!%p138_p2), %v910_v1 }
   0xd   : > { %s1017_s13 = smov (!%p159_p3, %s754_s13), 7 }
   0xe   : > { %s879_s18 = smul.u32 24, %s1017_s13  ;;  %s166_s15 = scalar_lea.vmem %s1015_s3, %s1017_s13 }
  0x10   : > { %s960_s25 = scalar_lea.vmem %s1012_s0, %s879_s18 }
  0x11   : > { %v760_v5 = vld [vmem:[%s960_s25 + $0x4] sm:$0x3]  ;;  %v168_v6 = vld [vmem:[%s960_s25] sm:$0x3]  ;;  %v767_v8 = vld [vmem:[%s960_s25 + $0x8] sm:$0x3] }
  0x12   : > { %828 = vmatmul.mubr.msk.bf16.vlgmr.msra.gmra.mrb[0].mxu0 %vm182_vm1, %v760_v5  ;;  %834 = vmatmul.mubr.msk.bf16.vlgmr.msra.gmra.mrb[0].mxu1 %vm182_vm1, %v168_v6  ;;  %v772_v9 = vld [vmem:[%s960_s25 + $0xc] sm:$0x3]  ;;  %v777_v12 = vld [vmem:[%s960_s25 + $0x10] sm:$0x3]  ;;  %v782_v13 = vld [vmem:[%s960_s25 + $0x14] sm:$0x3] }
  0x13   : > { %838 = vmatpush3.bf16.msra.mxu0 %v892_v3  ;;  %844 = vmatpush3.bf16.msra.mxu1 %v893_v4  ;;  %v898_v15 = vld [vmem:[%s960_s25] ss:$0 sps:$4 sm:$0x66]   ;;  %v900_v16 = vld [vmem:[%s960_s25 + $0x4] ss:$0 sps:$4 sm:$0x66]  }
  0x14   : > { %839 = vmatprep.mubr.msk.bf16.mxu0 %vm911_vm0, %v910_v1  ;;  %849 = vmatprep.subr.bf16.mxu0 %v910_v1  ;;  %v502_v17 = vrot.slane %v898_v15, 1  ;;  %v560_v18 = vrot.slane %v900_v16, 1  ;;  %v901_v20 = vld [vmem:[%s960_s25 + $0x8] ss:$0 sps:$4 sm:$0x66]  }
  0x15   : > { %845 = vmatprep.mubr.msk.bf16.mxu1 %vm911_vm0, %v910_v1  ;;  %855 = vmatprep.subr.bf16.mxu1 %v910_v1  ;;  %v618_v21 = vrot.slane %v901_v20, 1 }
  0x1a   : > { %840 = vmatmul.mubr.msk.bf16.vlgmr.msra.gmra.mrb[4].mxu0 %vm182_vm1, %v767_v8  ;;  %846 = vmatmul.mubr.msk.bf16.vlgmr.msra.gmra.mrb[4].mxu1 %vm182_vm1, %v772_v9 }
  0x1b   : > { %850 = vmatpush3.bf16.msra.mxu0 %v894_v7  ;;  %856 = vmatpush3.bf16.msra.mxu1 %v895_v10 }
  0x1c   : > { %851 = vmatprep.mubr.msk.bf16.mxu0 %vm911_vm0, %v910_v1  ;;  %861 = vmatprep.subr.bf16.mxu0 %v910_v1 }
  0x1d   : > { %857 = vmatprep.mubr.msk.bf16.mxu1 %vm911_vm0, %v910_v1  ;;  %867 = vmatprep.subr.bf16.mxu1 %v910_v1 }
  0x22   : > { %852 = vmatmul.mubr.msk.bf16.vlgmr.msra.gmra.mrb[8].mxu0 %vm182_vm1, %v777_v12  ;;  %858 = vmatmul.mubr.msk.bf16.vlgmr.msra.gmra.mrb[8].mxu1 %vm182_vm1, %v782_v13 }
  0x23   : > { %862 = vmatpush3.bf16.msra.mxu0 %v896_v11  ;;  %868 = vmatpush3.bf16.msra.mxu1 %v897_v14 }
  0x24   : > { %863 = vmatprep.mubr.msk.bf16.mxu0 %vm911_vm0, %v910_v1  ;;  %873 = vmatprep.subr.bf16.mxu0 %v910_v1 }
  0x25   : > { %869 = vmatprep.mubr.msk.bf16.mxu1 %vm911_vm0, %v910_v1 }
  0x2a   : > { %864 = vmatmul.mubr.msk.bf16.vlgmr.msra.gmra.mrb[12].mxu0 %vm182_vm1, %v502_v17  ;;  %870 = vmatmul.mubr.msk.bf16.vlgmr.msra.gmra.mrb[12].mxu1 %vm182_vm1, %v560_v18 }
  0x2b   : > { %874 = vmatpush3.bf16.msra.mxu0 %v899_v19  ;;  %875 = vmatprep.mubr.msk.bf16.mxu0 %vm911_vm0, %v910_v1 }
  0x32   : > { %876 = vmatmul.mubr.msk.bf16.vlgmr.msra.gmra.mrb[16].mxu0 %vm182_vm1, %v618_v21 }
  0xe5   : > { %v220_v22 = vpop.f32.mrb[0].mxu0  ;;  %v269_v23 = vpop.f32.mrb[0].mxu1 }
  0xe6   : > { %v270_v24 = vadd.f32 %v269_v23, %v220_v22  ;;  %v829_v25 = vpop.f32.mrb[1].mxu0  ;;  %v835_v26 = vpop.f32.mrb[1].mxu1 }
  0xe7   : > { %v223_v27 = vpop.f32.mrb[2].mxu0  ;;  %v272_v28 = vpop.f32.mrb[2].mxu1 }
  0xe8   : > { %v830_v29 = vpop.f32.mrb[3].mxu0  ;;  %v836_v30 = vpop.f32.mrb[3].mxu1 }
  0xed   : > { %v323_v31 = vpop.f32.mrb[4].mxu0  ;;  %v378_v32 = vpop.f32.mrb[4].mxu1 }
  0xee   : > { %v329_v33 = vadd.f32 %v323_v31, %v270_v24  ;;  %v841_v34 = vpop.f32.mrb[5].mxu0  ;;  %v847_v35 = vpop.f32.mrb[5].mxu1 }
  0xef   : > { %v326_v36 = vpop.f32.mrb[6].mxu0  ;;  %v381_v37 = vpop.f32.mrb[6].mxu1 }
  0xf0   : > { %v384_v38 = vadd.f32 %v378_v32, %v329_v33  ;;  %v842_v39 = vpop.f32.mrb[7].mxu0  ;;  %v848_v40 = vpop.f32.mrb[7].mxu1 }
  0xf5   : > { %v433_v41 = vpop.f32.mrb[8].mxu0  ;;  %v488_v42 = vpop.f32.mrb[8].mxu1 }
  0xf6   : > { %v439_v43 = vadd.f32 %v433_v41, %v384_v38  ;;  %v853_v44 = vpop.f32.mrb[9].mxu0  ;;  %v859_v45 = vpop.f32.mrb[9].mxu1 }
  0xf7   : > { %v436_v46 = vpop.f32.mrb[10].mxu0  ;;  %v491_v47 = vpop.f32.mrb[10].mxu1 }
  0xf8   : > { %v494_v48 = vadd.f32 %v488_v42, %v439_v43  ;;  %v854_v49 = vpop.f32.mrb[11].mxu0  ;;  %v860_v50 = vpop.f32.mrb[11].mxu1 }
  0xfd   : > { %v546_v51 = vpop.f32.mrb[12].mxu0  ;;  %v604_v52 = vpop.f32.mrb[12].mxu1 }
  0xfe   : > { %v552_v53 = vadd.f32 %v546_v51, %v494_v48  ;;  %v865_v54 = vpop.f32.mrb[13].mxu0  ;;  %v871_v55 = vpop.f32.mrb[13].mxu1 }
  0xff   : > { %v549_v56 = vpop.f32.mrb[14].mxu0  ;;  %v607_v57 = vpop.f32.mrb[14].mxu1 }
 0x100   : > { %v610_v58 = vadd.f32 %v604_v52, %v552_v53  ;;  %v866_v59 = vpop.f32.mrb[15].mxu0  ;;  %v872_v60 = vpop.f32.mrb[15].mxu1 }
 0x105   : > { %v662_v61 = vpop.f32.mrb[16].mxu0 }
 0x106   : > { %v668_v63 = vadd.f32 %v662_v61, %v610_v58  ;;  %v877_v0 = vpop.f32.mrb[17].mxu0 }
 0x107   : > { %v665_v1 = vpop.f32.mrb[18].mxu0 }
 0x108   : > { %v676_v2 = vadd.f32 %v804_v62, %v668_v63  ;;  %v878_v3 = vpop.f32.mrb[19].mxu0 }
 0x10a   : > { %v677_v4 = vmax.f32 %v676_v2, 0.0 }
 0x10c   : > { %v697_v5 = vsel %vm696_vm2, %v677_v4, 0.0 }
 0x10d   : > { %v698_v6 = vrot.slane %v697_v5, 4 }
 0x10f   : > { %v699_v7 = vadd.f32 %v698_v6, %v697_v5 }
 0x111   : > { %v700_v8 = vrot.slane %v699_v7, 2 }
 0x113   : > { %v701_v9 = vadd.f32 %v700_v8, %v699_v7 }
 0x115   : > { %v702_v10 = vrot.slane %v701_v9, 1 }
 0x117   : > { %v703_v11 = vadd.f32 %v702_v10, %v701_v9 }
 0x119   : > { %v704_v12 = vmul.f32 0.25, %v703_v11 }
 0x11b   : > { %706 = vst.msk [vmem:[%s166_s15] sm:$0x1] %vm705_vm3, %v704_v12 }
 0x11c PF: > { %s13_s12 = sadd.s32 1, %s908_s12  }
 0x11d   : > { %p10_p4 = scmp.ge.s32.totalorder %s13_s12, 10  }
 0x11f   :  { %12 = sbr.rel (!%p10_p4) target bundleno = 1 (0x1), region = 75 }

// kernel: cnn_lstm_forward.8
= control target key start
LH: loop header
LB: loop body
LE: loop exit
PB: predicated region body
PF: predicated region fallthrough
CT: control target
= control target key end

     0   :  { %v227_v1 = vmov 0   ;;  %vm75_vm0 = vcmask 130048   ;;  %v25_v7 = vlaneseq  ;;  %s317_s1 = inlined_call_operand.vmem [shape: bf16[16,512], index: 1, kind: input, shape index: {}]   ;;  %s318_s0 = inlined_call_operand.vmem [shape: bf16[32,16], index: 0, kind: input, shape index: {}]   ;;  %s319_s2 = inlined_call_operand.vmem [shape: f32[1,512], index: 2, kind: input, shape index: {}]   ;;  %s320_s3 = inlined_call_operand.vmem [shape: f32[32,512], index: 3, kind: output, shape index: {}]  }
   0x1   :  { %v219_v0 = vld [vmem:[%s317_s1 + $0x4] ss:$16 sps:$4 sm:$0xff]   ;;  %114 = vmatprep.mubr.bf16.mxu0 %v227_v1  ;;  %167 = vmatprep.mubr.bf16.mxu1 %v227_v1  ;;  %v221_v2 = vld [vmem:[%s317_s1 + $0xc] ss:$16 sps:$4 sm:$0xff]   ;;  %v223_v3 = vld [vmem:[%s317_s1] ss:$16 sps:$4 sm:$0xff]  }
   0x2   :  { %82 = vmatprep.subr.bf16.mxu0 %v219_v0  ;;  %v224_v4 = vld [vmem:[%s317_s1 + $0x8] ss:$16 sps:$4 sm:$0xff]   ;;  %135 = vmatprep.subr.bf16.mxu1 %v221_v2  ;;  %v225_v5 = vld [vmem:[%s318_s0] sm:$0xff]   ;;  %v26_v8 = vshrl.u32 %v25_v7, 7 }
   0x3   :  { %83 = vmatpush1.bf16.msra.mxu0 %v223_v3  ;;  %136 = vmatpush1.bf16.msra.mxu1 %v224_v4  ;;  %v226_v6 = vld [vmem:[%s318_s0 + $0x8] sm:$0xff]   ;;  %v23_v11 = vld [vmem:[%s319_s2] sm:$0xf] }
   0x4   :  { %v27_v9 = vsub.s32 0, %v26_v8  ;;  %v35_v10 = vsub.s32 2, %v26_v8  ;;  %v31_v12 = vsub.s32 1, %v26_v8  ;;  %v39_v13 = vsub.s32 3, %v26_v8 }
   0x6   :  { %214 = vmatmul.mubr.msk.bf16.vlgmr.msra.gmra.mrb[0].mxu0 %vm75_vm0, %v225_v5  ;;  %216 = vmatmul.mubr.msk.bf16.vlgmr.msra.gmra.mrb[0].mxu1 %vm75_vm0, %v225_v5  ;;  %v28_v14 = vrot.slane %v23_v11, %v27_v9  ;;  %v36_v15 = vrot.slane %v23_v11, %v35_v10  ;;  %v32_v16 = vrot.slane %v23_v11, %v31_v12 }
   0x7   :  { %124 = vmatprep.mubr.bf16.mxu0 %v227_v1  ;;  %177 = vmatprep.mubr.bf16.mxu1 %v227_v1  ;;  %v40_v17 = vrot.slane %v23_v11, %v39_v13 }
   0xe   :  { %215 = vmatmul.mubr.msk.bf16.gmra.mrb[4].mxu0 %vm75_vm0, %v226_v6  ;;  %217 = vmatmul.mubr.msk.bf16.gmra.mrb[4].mxu1 %vm75_vm0, %v226_v6 }
  0xd9   :  { %v116_v18 = vpop.f32.mrb[0].mxu0  ;;  %v169_v19 = vpop.f32.mrb[0].mxu1 }
  0xda   :  { %v117_v20 = vadd.f32 %v116_v18, %v28_v14  ;;  %v170_v21 = vadd.f32 %v169_v19, %v36_v15  ;;  %v118_v22 = vpop.f32.mrb[1].mxu0  ;;  %v171_v23 = vpop.f32.mrb[1].mxu1 }
  0xdb   :  { %v119_v24 = vadd.f32 %v118_v22, %v32_v16  ;;  %v172_v25 = vadd.f32 %v171_v23, %v40_v17  ;;  %v120_v26 = vpop.f32.mrb[2].mxu0  ;;  %v173_v27 = vpop.f32.mrb[2].mxu1 }
  0xdc   :  { %188 = vst [vmem:[%s320_s3] sm:$0xff] %v117_v20  ;;  %190 = vst [vmem:[%s320_s3 + $0x10] sm:$0xff] %v170_v21  ;;  %v121_v28 = vadd.f32 %v120_v26, %v28_v14  ;;  %v174_v29 = vadd.f32 %v173_v27, %v36_v15  ;;  %v122_v30 = vpop.f32.mrb[3].mxu0  ;;  %v175_v31 = vpop.f32.mrb[3].mxu1 }
  0xdd   :  { %189 = vst [vmem:[%s320_s3 + $0x8] sm:$0xff] %v119_v24  ;;  %191 = vst [vmem:[%s320_s3 + $0x18] sm:$0xff] %v172_v25  ;;  %v123_v32 = vadd.f32 %v122_v30, %v32_v16  ;;  %v176_v33 = vadd.f32 %v175_v31, %v40_v17 }
  0xde   :  { %192 = vst [vmem:[%s320_s3 + $0x20] sm:$0xff] %v121_v28  ;;  %194 = vst [vmem:[%s320_s3 + $0x30] sm:$0xff] %v174_v29 }
  0xdf   :  { %193 = vst [vmem:[%s320_s3 + $0x28] sm:$0xff] %v123_v32  ;;  %195 = vst [vmem:[%s320_s3 + $0x38] sm:$0xff] %v176_v33 }
  0xe1   :  { %v126_v34 = vpop.f32.mrb[4].mxu0  ;;  %v179_v35 = vpop.f32.mrb[4].mxu1 }
  0xe2   :  { %v127_v36 = vadd.f32 %v126_v34, %v28_v14  ;;  %v180_v37 = vadd.f32 %v179_v35, %v36_v15  ;;  %v128_v38 = vpop.f32.mrb[5].mxu0  ;;  %v181_v39 = vpop.f32.mrb[5].mxu1 }
  0xe3   :  { %v129_v40 = vadd.f32 %v128_v38, %v32_v16  ;;  %v182_v41 = vadd.f32 %v181_v39, %v40_v17  ;;  %v130_v42 = vpop.f32.mrb[6].mxu0  ;;  %v183_v43 = vpop.f32.mrb[6].mxu1 }
  0xe4   :  { %196 = vst [vmem:[%s320_s3 + $0x40] sm:$0xff] %v127_v36  ;;  %198 = vst [vmem:[%s320_s3 + $0x50] sm:$0xff] %v180_v37  ;;  %v131_v44 = vadd.f32 %v130_v42, %v28_v14  ;;  %v184_v45 = vadd.f32 %v183_v43, %v36_v15  ;;  %v132_v46 = vpop.f32.mrb[7].mxu0  ;;  %v185_v47 = vpop.f32.mrb[7].mxu1 }
  0xe5   :  { %197 = vst [vmem:[%s320_s3 + $0x48] sm:$0xff] %v129_v40  ;;  %199 = vst [vmem:[%s320_s3 + $0x58] sm:$0xff] %v182_v41  ;;  %v133_v48 = vadd.f32 %v132_v46, %v32_v16  ;;  %v186_v49 = vadd.f32 %v185_v47, %v40_v17 }
  0xe6   :  { %200 = vst [vmem:[%s320_s3 + $0x60] sm:$0xff] %v131_v44  ;;  %202 = vst [vmem:[%s320_s3 + $0x70] sm:$0xff] %v184_v45 }
  0xe7   :  { %201 = vst [vmem:[%s320_s3 + $0x68] sm:$0xff] %v133_v48  ;;  %203 = vst [vmem:[%s320_s3 + $0x78] sm:$0xff] %v186_v49 }

// kernel: cnn_lstm_forward.9
= control target key start
LH: loop header
LB: loop body
LE: loop exit
PB: predicated region body
PF: predicated region fallthrough
CT: control target
= control target key end

     0   :  { %s812_s15 = smov 0   ;;  %s1084_s0 = inlined_call_operand.vmem [shape: f32[4,8,512], index: 0, kind: input, shape index: {}]   ;;  %s1085_s1 = inlined_call_operand.vmem [shape: f32[128,512], index: 1, kind: input, shape index: {}]   ;;  %s1086_s2 = inlined_call_operand.vmem [shape: f32[128,128], index: 2, kind: input, shape index: {}]   ;;  %s1087_s3 = inlined_call_operand.vmem [shape: f32[1,128], index: 3, kind: input, shape index: {}]   ;;  %s1088_s4 = inlined_call_operand.vmem [shape: f32[4,8,128], index: 4, kind: output, shape index: {}]  }
   0x1 LB: > { %s591_s16 = sadd.s32 4294967295, %s781_s15   ;;  %p595_p0 = scmp.ge.s32.totalorder %s781_s15, 1  ;;  %s781_s15 = sphi %s812_s15, %s14_s15  }
   0x2   : > { %p162_p1 = scmp.lt.s32.totalorder %s781_s15, 5 }
   0x4   : > { %p163_p2 = pnand %p595_p0, %p162_p1 }
   0x5   : > { %p187_p3 = scmp.lt.s32.totalorder (!%p163_p2), %s591_s16, 3  ;;  %p599_p4 = scmp.ne.s32.totalorder (!%p163_p2), %s591_s16, 0 }
   0x6   : > { %166 = sbr.rel (%p163_p2) target bundleno = 530 (0x212), region = 36 }
   0xd   : > { %s188_s17 = scalar_select %p187_p3, %s591_s16, 3 }
   0xe   : > { %199 = sbr.rel (%p599_p4) target bundleno = 21 (0x15), region = 40  ;;  %v783_v0 = vmov (!%p599_p4), 0.0  }
   0xf   : > { %s606_s18 = sshll.u32 %s188_s17, 5  ;;  %s598_s19 = sshll.u32 %s188_s17, 3  ;;  %200 = vst [vmem:[#allocation2] sm:$0xff] (!%p599_p4), %v783_v0  ;;  %201 = vst [vmem:[#allocation3] sm:$0xff] (!%p599_p4), %v783_v0 }
  0x10   : > { %s823_s22 = scalar_lea.vmem %s1084_s0, %s606_s18  ;;  %s828_s25 = scalar_lea.vmem %s1088_s4, %s598_s19 }
  0x15 PF: > { %v208_v1 = vld [vmem:[%s1085_s1 + $0x8] sm:$0xff]  ;;  %v207_v3 = vld [vmem:[%s1085_s1] sm:$0xff]  ;;  %v784_v8 = vmov 0.0   ;;  %v210_v20 = vld [vmem:[%s1085_s1 + $0x18] sm:$0xff]  ;;  %vm786_vm0 = vmmov 0  }
  0x16   : > { %v212_v2 = vld [vmem:[%s1085_s1 + $0x28] sm:$0xff]  ;;  %v211_v5 = vld [vmem:[%s1085_s1 + $0x20] sm:$0xff]  ;;  %335 = vmatprep.mubr.f32.mxu0 %v784_v8  ;;  %406 = vmatprep.mubr.f32.mxu1 %v784_v8  ;;  %v214_v21 = vld [vmem:[%s1085_s1 + $0x38] sm:$0xff] }
  0x17   : > { %v659_v4 = vpack.c.bf16 %v212_v2, %v208_v1  ;;  %v216_v6 = vld [vmem:[%s1085_s1 + $0x48] sm:$0xff]  ;;  %v661_v9 = vpack.c.bf16 %v211_v5, %v207_v3  ;;  %v215_v11 = vld [vmem:[%s1085_s1 + $0x40] sm:$0xff]  ;;  %v691_v23 = vpack.c.bf16 %v214_v21, %v210_v20  ;;  %v209_v24 = vld [vmem:[%s1085_s1 + $0x10] sm:$0xff] }
  0x18   : > { %v220_v7 = vld [vmem:[%s1085_s1 + $0x68] sm:$0xff]  ;;  %v219_v12 = vld [vmem:[%s1085_s1 + $0x60] sm:$0xff]  ;;  %v213_v25 = vld [vmem:[%s1085_s1 + $0x30] sm:$0xff] }
  0x19   : > { %v663_v10 = vpack.c.bf16 %v220_v7, %v216_v6  ;;  %v224_v13 = vld [vmem:[%s1085_s1 + $0x88] sm:$0xff]  ;;  %660 = vmatprep.subr.bf16.mxu0 %v659_v4  ;;  %v665_v15 = vpack.c.bf16 %v219_v12, %v215_v11  ;;  %v223_v16 = vld [vmem:[%s1085_s1 + $0x80] sm:$0xff]  ;;  %v693_v26 = vpack.c.bf16 %v213_v25, %v209_v24  ;;  %692 = vmatprep.subr.bf16.mxu1 %v691_v23  ;;  %v218_v28 = vld [vmem:[%s1085_s1 + $0x58] sm:$0xff] }
  0x1a   : > { %v228_v14 = vld [vmem:[%s1085_s1 + $0xa8] sm:$0xff]  ;;  %662 = vmatpush1.bf16.msra.mxu0 %v661_v9  ;;  %v227_v17 = vld [vmem:[%s1085_s1 + $0xa0] sm:$0xff]  ;;  %v222_v29 = vld [vmem:[%s1085_s1 + $0x78] sm:$0xff] }
  0x1b   : > { %664 = vmatprep.subr.bf16.mxu0 %v663_v10  ;;  %v667_v18 = vpack.c.bf16 %v228_v14, %v224_v13  ;;  %v232_v19 = vld [vmem:[%s1085_s1 + $0xc8] sm:$0xff]  ;;  %v669_v27 = vpack.c.bf16 %v227_v17, %v223_v16  ;;  %v217_v30 = vld [vmem:[%s1085_s1 + $0x50] sm:$0xff]  ;;  %v231_v32 = vld [vmem:[%s1085_s1 + $0xc0] sm:$0xff]  ;;  %694 = vmatpush1.bf16.msra.mxu1 %v693_v26  ;;  %v695_v34 = vpack.c.bf16 %v222_v29, %v218_v28 }
  0x1c   : > { %v236_v22 = vld [vmem:[%s1085_s1 + $0xe8] sm:$0xff]  ;;  %v235_v33 = vld [vmem:[%s1085_s1 + $0xe0] sm:$0xff]  ;;  %v221_v35 = vld [vmem:[%s1085_s1 + $0x70] sm:$0xff] }
  0x1d   : > { %v671_v31 = vpack.c.bf16 %v236_v22, %v232_v19  ;;  %v240_v36 = vld [vmem:[%s1085_s1 + $0x108] sm:$0xff]  ;;  %v697_v38 = vpack.c.bf16 %v221_v35, %v217_v30  ;;  %v226_v39 = vld [vmem:[%s1085_s1 + $0x98] sm:$0xff]  ;;  %696 = vmatprep.subr.bf16.mxu1 %v695_v34  ;;  %v225_v41 = vld [vmem:[%s1085_s1 + $0x90] sm:$0xff]  ;;  %v673_v43 = vpack.c.bf16 %v235_v33, %v231_v32 }
  0x1e   : > { %666 = vmatpush1.bf16.msra.mxu0 %v665_v15  ;;  %v244_v37 = vld [vmem:[%s1085_s1 + $0x128] sm:$0xff]  ;;  %v230_v40 = vld [vmem:[%s1085_s1 + $0xb8] sm:$0xff]  ;;  %v229_v42 = vld [vmem:[%s1085_s1 + $0xb0] sm:$0xff] }
  0x1f   : > { %668 = vmatprep.subr.bf16.mxu0 %v667_v18  ;;  %v239_v44 = vld [vmem:[%s1085_s1 + $0x100] sm:$0xff]  ;;  %v699_v46 = vpack.c.bf16 %v230_v40, %v226_v39  ;;  %v675_v47 = vpack.c.bf16 %v244_v37, %v240_v36  ;;  %698 = vmatpush1.bf16.msra.mxu1 %v697_v38  ;;  %v248_v48 = vld [vmem:[%s1085_s1 + $0x148] sm:$0xff]  ;;  %v701_v49 = vpack.c.bf16 %v229_v42, %v225_v41  ;;  %v234_v50 = vld [vmem:[%s1085_s1 + $0xd8] sm:$0xff]  ;;  %v785_v39 = vmov 0.0|0.0  }
  0x20   : > { %v243_v45 = vld [vmem:[%s1085_s1 + $0x120] sm:$0xff]  ;;  %v238_v51 = vld [vmem:[%s1085_s1 + $0xf8] sm:$0xff]  ;;  %v252_v52 = vld [vmem:[%s1085_s1 + $0x168] sm:$0xff] }
  0x21   : > { %700 = vmatprep.subr.bf16.mxu1 %v699_v46  ;;  %v703_v53 = vpack.c.bf16 %v238_v51, %v234_v50  ;;  %v233_v54 = vld [vmem:[%s1085_s1 + $0xd0] sm:$0xff]  ;;  %v677_v56 = vpack.c.bf16 %v243_v45, %v239_v44  ;;  %v242_v57 = vld [vmem:[%s1085_s1 + $0x118] sm:$0xff]  ;;  %v679_v59 = vpack.c.bf16 %v252_v52, %v248_v48  ;;  %v247_v60 = vld [vmem:[%s1085_s1 + $0x140] sm:$0xff] }
  0x22   : > { %670 = vmatpush1.bf16.msra.mxu0 %v669_v27  ;;  %v237_v55 = vld [vmem:[%s1085_s1 + $0xf0] sm:$0xff]  ;;  %v246_v58 = vld [vmem:[%s1085_s1 + $0x138] sm:$0xff]  ;;  %v251_v61 = vld [vmem:[%s1085_s1 + $0x160] sm:$0xff] }
  0x23   : > { %672 = vmatprep.subr.bf16.mxu0 %v671_v31  ;;  %702 = vmatpush1.bf16.msra.mxu1 %v701_v49  ;;  %v256_v62 = vld [vmem:[%s1085_s1 + $0x188] sm:$0xff]  ;;  %v705_v63 = vpack.c.bf16 %v237_v55, %v233_v54  ;;  %v707_v1 = vpack.c.bf16 %v246_v58, %v242_v57  ;;  %v241_v2 = vld [vmem:[%s1085_s1 + $0x110] sm:$0xff]  ;;  %v250_v4 = vld [vmem:[%s1085_s1 + $0x158] sm:$0xff]  ;;  %v681_v6 = vpack.c.bf16 %v251_v61, %v247_v60 }
  0x24   : > { %v260_v0 = vld [vmem:[%s1085_s1 + $0x1a8] sm:$0xff]  ;;  %704 = vmatprep.subr.bf16.mxu1 %v703_v53  ;;  %v245_v3 = vld [vmem:[%s1085_s1 + $0x130] sm:$0xff]  ;;  %v254_v5 = vld [vmem:[%s1085_s1 + $0x178] sm:$0xff] }
  0x25   : > { %v683_v7 = vpack.c.bf16 %v260_v0, %v256_v62  ;;  %v255_v9 = vld [vmem:[%s1085_s1 + $0x180] sm:$0xff]  ;;  %v264_v11 = vld [vmem:[%s1085_s1 + $0x1c8] sm:$0xff]  ;;  %v709_v12 = vpack.c.bf16 %v245_v3, %v241_v2  ;;  %v711_v14 = vpack.c.bf16 %v254_v5, %v250_v4  ;;  %v249_v15 = vld [vmem:[%s1085_s1 + $0x150] sm:$0xff] }
  0x26   : > { %674 = vmatpush1.bf16.msra.mxu0 %v673_v43  ;;  %v259_v10 = vld [vmem:[%s1085_s1 + $0x1a0] sm:$0xff]  ;;  %v268_v13 = vld [vmem:[%s1085_s1 + $0x1e8] sm:$0xff]  ;;  %v253_v16 = vld [vmem:[%s1085_s1 + $0x170] sm:$0xff] }
  0x27   : > { %676 = vmatprep.subr.bf16.mxu0 %v675_v47  ;;  %706 = vmatpush1.bf16.msra.mxu1 %v705_v63  ;;  %v258_v17 = vld [vmem:[%s1085_s1 + $0x198] sm:$0xff]  ;;  %v685_v19 = vpack.c.bf16 %v259_v10, %v255_v9  ;;  %v687_v20 = vpack.c.bf16 %v268_v13, %v264_v11  ;;  %v263_v21 = vld [vmem:[%s1085_s1 + $0x1c0] sm:$0xff]  ;;  %v713_v23 = vpack.c.bf16 %v253_v16, %v249_v15  ;;  %v257_v25 = vld [vmem:[%s1085_s1 + $0x190] sm:$0xff] }
  0x28   : > { %708 = vmatprep.subr.bf16.mxu1 %v707_v1  ;;  %v262_v18 = vld [vmem:[%s1085_s1 + $0x1b8] sm:$0xff]  ;;  %v267_v22 = vld [vmem:[%s1085_s1 + $0x1e0] sm:$0xff]  ;;  %v261_v26 = vld [vmem:[%s1085_s1 + $0x1b0] sm:$0xff] }
  0x29   : > { %v715_v24 = vpack.c.bf16 %v262_v18, %v258_v17  ;;  %v266_v27 = vld [vmem:[%s1085_s1 + $0x1d8] sm:$0xff]  ;;  %v689_v29 = vpack.c.bf16 %v267_v22, %v263_v21  ;;  %v717_v30 = vpack.c.bf16 %v261_v26, %v257_v25  ;;  %v265_v32 = vld [vmem:[%s1085_s1 + $0x1d0] sm:$0xff]  ;;  %v206_v34 = vld [vmem:[#allocation2] sm:$0xff] }
  0x2a   : > { %678 = vmatpush1.bf16.msra.mxu0 %v677_v56  ;;  %v270_v28 = vld [vmem:[%s1085_s1 + $0x1f8] sm:$0xff]  ;;  %v269_v33 = vld [vmem:[%s1085_s1 + $0x1f0] sm:$0xff]  ;;  %v444_v36 = vld [vmem:[%s1086_s2] sm:$0xff] }
  0x2b   : > { %680 = vmatprep.subr.bf16.mxu0 %v679_v59  ;;  %710 = vmatpush1.bf16.msra.mxu1 %v709_v12  ;;  %v719_v31 = vpack.c.bf16 %v270_v28, %v266_v27  ;;  %v721_v35 = vpack.c.bf16 %v269_v33, %v265_v32  ;;  %v445_v37 = vld [vmem:[%s1086_s2 + $0x8] sm:$0xff]  ;;  %v446_v40 = vld [vmem:[%s1086_s2 + $0x10] sm:$0xff]  ;;  %v447_v41 = vld [vmem:[%s1086_s2 + $0x18] sm:$0xff] }
  0x2c   : > { %712 = vmatprep.subr.bf16.mxu1 %v711_v14  ;;  %v724_v38 = vpack.c.bf16 %v445_v37, %v444_v36  ;;  %v727_v42 = vpack.c.bf16 %v447_v41, %v446_v40  ;;  %v448_v43 = vld [vmem:[%s1086_s2 + $0x20] sm:$0xff]  ;;  %v449_v44 = vld [vmem:[%s1086_s2 + $0x28] sm:$0xff]  ;;  %v450_v46 = vld [vmem:[%s1086_s2 + $0x30] sm:$0xff] }
  0x2d   : > { %v730_v45 = vpack.c.bf16 %v449_v44, %v448_v43  ;;  %v451_v47 = vld [vmem:[%s1086_s2 + $0x38] sm:$0xff]  ;;  %v452_v49 = vld [vmem:[%s1086_s2 + $0x40] sm:$0xff]  ;;  %v453_v50 = vld [vmem:[%s1086_s2 + $0x48] sm:$0xff] }
  0x2e   : > { %682 = vmatpush1.bf16.msra.mxu0 %v681_v6  ;;  %v733_v48 = vpack.c.bf16 %v451_v47, %v450_v46  ;;  %v736_v51 = vpack.c.bf16 %v453_v50, %v452_v49  ;;  %v454_v52 = vld [vmem:[%s1086_s2 + $0x50] sm:$0xff]  ;;  %v455_v53 = vld [vmem:[%s1086_s2 + $0x58] sm:$0xff]  ;;  %v456_v55 = vld [vmem:[%s1086_s2 + $0x60] sm:$0xff] }
  0x2f   : > { %684 = vmatprep.subr.bf16.mxu0 %v683_v7  ;;  %714 = vmatpush1.bf16.msra.mxu1 %v713_v23  ;;  %v739_v54 = vpack.c.bf16 %v455_v53, %v454_v52  ;;  %v457_v56 = vld [vmem:[%s1086_s2 + $0x68] sm:$0xff]  ;;  %v458_v58 = vld [vmem:[%s1086_s2 + $0x70] sm:$0xff]  ;;  %v459_v59 = vld [vmem:[%s1086_s2 + $0x78] sm:$0xff] }
  0x30   : > { %716 = vmatprep.subr.bf16.mxu1 %v715_v24  ;;  %v742_v57 = vpack.c.bf16 %v457_v56, %v456_v55  ;;  %v745_v60 = vpack.c.bf16 %v459_v59, %v458_v58  ;;  %v202_v61 = vld [vmem:[%s823_s22] sm:$0xff]  ;;  %v203_v62 = vld [vmem:[%s823_s22 + $0x8] sm:$0xff]  ;;  %v205_v4 = vld [vmem:[%s823_s22 + $0x18] sm:$0xff] }
  0x31   : > { %v204_v9 = vld [vmem:[%s823_s22 + $0x10] sm:$0xff]  ;;  %v436_v18 = vld [vmem:[#allocation3] sm:$0xff]  ;;  %v603_v28 = vld [vmem:[%s1087_s3] ss:$0 sm:$0xff] }
  0x32   : > { %686 = vmatpush1.bf16.msra.mxu0 %v685_v19 }
  0x33   : > { %688 = vmatprep.subr.bf16.mxu0 %v687_v20  ;;  %718 = vmatpush1.bf16.msra.mxu1 %v717_v30 }
  0x34   : > { %720 = vmatprep.subr.bf16.mxu1 %v719_v31 }
  0x36   : > { %690 = vmatpush1.bf16.msra.mxu0 %v689_v29 }
  0x37   : > { %722 = vmatpush1.bf16.msra.mxu1 %v721_v35  ;;  %723 = vmatprep.subr.bf16.mxu0 %v785_v39 }
  0x39   : > { %336 = vmatmul.mubr.f32.vlgmr.msra.gmra.mrb[0].mxu0 %v206_v34 }
  0x3a   : > { %407 = vmatmul.mubr.f32.vlgmr.msra.gmra.mrb[0].mxu1 %v206_v34  ;;  %725 = vmatpush3.bf16.msra.mxu0 %v724_v38 }
  0x3b   : > { %726 = vmatprep.subr.bf16.mxu0 %v785_v39  ;;  %656 = vmatprep.mubr.msk.f32.mxu0 %vm786_vm0, %v784_v8 }
  0x3e   : > { %728 = vmatpush3.bf16.msra.mxu0 %v727_v42 }
  0x3f   : > { %729 = vmatprep.subr.bf16.mxu0 %v785_v39 }
  0x42   : > { %731 = vmatpush3.bf16.msra.mxu0 %v730_v45 }
  0x43   : > { %732 = vmatprep.subr.bf16.mxu0 %v785_v39 }
  0x46   : > { %734 = vmatpush3.bf16.msra.mxu0 %v733_v48 }
  0x47   : > { %735 = vmatprep.subr.bf16.mxu0 %v785_v39 }
  0x4a   : > { %737 = vmatpush3.bf16.msra.mxu0 %v736_v51 }
  0x4b   : > { %738 = vmatprep.subr.bf16.mxu0 %v785_v39 }
  0x4e   : > { %740 = vmatpush3.bf16.msra.mxu0 %v739_v54 }
  0x4f   : > { %741 = vmatprep.subr.bf16.mxu0 %v785_v39 }
  0x52   : > { %743 = vmatpush3.bf16.msra.mxu0 %v742_v57 }
  0x53   : > { %744 = vmatprep.subr.bf16.mxu0 %v785_v39 }
  0x56   : > { %746 = vmatpush3.bf16.msra.mxu0 %v745_v60 }
 0x10c   : > { %v337_v8 = vpop.f32.mrb[0].mxu0 }
 0x10d   : > { %v413_v63 = vadd.f32 %v337_v8, %v202_v61  ;;  %v339_v0 = vpop.f32.mrb[1].mxu0  ;;  %v408_v5 = vpop.f32.mrb[0].mxu1 }
 0x10e   : > { %v414_v1 = vadd.f32 %v339_v0, %v203_v62  ;;  %v410_v6 = vpop.f32.mrb[1].mxu1  ;;  %v415_v11 = vadd.f32 %v408_v5, %v204_v9 }
 0x10f   : > { %v600_v2 = vmul.f32 -1.442695, %v413_v63  ;;  %v416_v7 = vadd.f32 %v410_v6, %v205_v4 }
 0x110   : > { %v601_v3 = vmul.f32 -1.442695, %v414_v1 }
 0x111   : > { %759 = vpow2.f32 %v600_v2  ;;  %v602_v10 = vmul.f32 -1.442695, %v416_v7 }
 0x112   : > { %761 = vpow2.f32 %v601_v3 }
 0x113   : > { %763 = vpow2.f32 %v602_v10 }
 0x114   : > { %765 = vtanh.f32 %v415_v11 }
 0x11b   : > { %v760_v12 = vpop.eup %759 }
 0x11c   : > { %v762_v13 = vpop.eup %761  ;;  %v420_v14 = vadd.f32 1.0, %v760_v12 }
 0x11d   : > { %v426_v15 = vadd.f32 1.0, %v762_v13  ;;  %v764_v16 = vpop.eup %763 }
 0x11e   : > { %767 = vrcp.f32 %v420_v14  ;;  %v766_v17 = vpop.eup %765  ;;  %v433_v20 = vadd.f32 1.0, %v764_v16 }
 0x11f   : > { %769 = vrcp.f32 %v426_v15 }
 0x120   : > { %771 = vrcp.f32 %v433_v20 }
 0x128   : > { %v768_v19 = vpop.eup %767 }
 0x129   : > { %v770_v21 = vpop.eup %769  ;;  %v438_v22 = vmul.f32 %v768_v19, %v766_v17 }
 0x12a   : > { %v437_v23 = vmul.f32 %v770_v21, %v436_v18  ;;  %v772_v25 = vpop.eup %771 }
 0x12c   : > { %v439_v24 = vadd.f32 %v438_v22, %v437_v23 }
 0x12e   : > { %773 = vtanh.f32 %v439_v24  ;;  %442 = vst [vmem:[#allocation3] sm:$0xff] %v439_v24 }
 0x138   : > { %v774_v26 = vpop.eup %773 }
 0x139   : > { %v441_v27 = vmul.f32 %v774_v26, %v772_v25 }
 0x13b   : > { %443 = vst [vmem:[#allocation2] sm:$0xff] %v441_v27  ;;  %657 = vmatmul.mubr.f32.vlgmr.msra.gmra.mrb[2].mxu0 %v441_v27 }
 0x20e   : > { %v533_v29 = vpop.f32.mrb[2].mxu0 }
 0x20f   : > { %v534_v30 = vadd.f32 %v603_v28, %v533_v29  ;;  %v658_v31 = vpop.f32.mrb[3].mxu0 }
 0x211   : > { %537 = vst [vmem:[%s828_s25] sm:$0xff] %v534_v30 }
 0x212 PF: > { %s14_s15 = sadd.s32 1, %s781_s15  }
 0x213   : > { %p11_p5 = scmp.ge.s32.totalorder %s14_s15, 6  }
 0x215   :  { %13 = sbr.rel (!%p11_p5) target bundleno = 1 (0x1), region = 70 }

</bundles_post_ra>
